<compile_context>
chip_gen: v6e
topology: v6e:2x2x1
jax: 0.10.0
libtpu: 0.0.40
codegen_flags: <defaults>
</compile_context>

<pallas_src>
import jax
import jax.numpy as jnp
from jax.experimental import pallas as pl
from jax.experimental.pallas import tpu as pltpu

# ----------------------------- config (small, TPU-aligned) -----------------
VOCAB_SIZE = 256
EMBED_SIZE = 128
HIDDEN_SIZE = 128
NUM_LAYERS = 2
BATCH = 8
SEQ = 8

_VMEM = pl.BlockSpec(memory_space=pltpu.MemorySpace.VMEM)


# ----------------------------- fused Pallas kernel --------------------------
def _fused_lstm_kernel(x_ref,                         # (T*B, E)  bf16, time-major rows
                       wih1_ref, whh1_ref, b1_ref,    # (E,4H) bf16, (H,4H) bf16, (1,4H) f32
                       wcat2_ref, b2_ref,             # (2H,4H) bf16, (1,4H) f32
                       fcw_ref, fcb_ref,              # (H,V) bf16, (1,V) f32
                       h0_ref, c0_ref,                # (L,B,H) f32
                       out_ref, hn_ref, cn_ref,       # (T*B,V) f32, (L,B,H) f32 x2
                       h1_hist_ref):                  # scratch (T*B, H) f32
    _, B, H = h0_ref.shape
    TB = x_ref.shape[0]
    T = TB // B

    # Batched layer-0 input projection for ALL timesteps (off the serial
    # critical path), bias folded in: (T*B, E) @ (E, 4H) + b1.
    gx0 = (jnp.dot(x_ref[...], wih1_ref[...],
                   preferred_element_type=jnp.float32)
           + b1_ref[...])                                            # (T*B,4H) f32

    def gates_to_hc(gates, c):
        # Gate order [i, f, o, g]; sigmoid(x) == 0.5*tanh(0.5*x) + 0.5.
        sig = 0.5 * jnp.tanh(0.5 * gates[:, :3 * H]) + 0.5           # (B,3H)
        i = sig[:, 0 * H:1 * H]
        f = sig[:, 1 * H:2 * H]
        o = sig[:, 2 * H:3 * H]
        g = jnp.tanh(gates[:, 3 * H:4 * H])
        c_new = f * c + i * g
        h_new = o * jnp.tanh(c_new)
        return h_new, c_new

    # Initial states (read once, before any aliased writes).
    h0 = h0_ref[0]
    c0 = c0_ref[0]
    h1 = h0_ref[1]
    c1 = c0_ref[1]
    h0_prev_bf16 = None

    # Wavefront over the recurrence: super-step s computes layer-0 step s and
    # layer-1 step s-1.  The two halves are data-independent within a
    # super-step, so the serial chain is T+1 (not 2T) steps deep.  T is a
    # compile-time constant -> fully static unroll.
    for s in range(T + 1):
        if s < T:
            g0 = gx0[s * B:(s + 1) * B] + jnp.dot(
                h0.astype(jnp.bfloat16), whh1_ref[...],
                preferred_element_type=jnp.float32)                  # (B,4H) f32
            h0_new, c0 = gates_to_hc(g0, c0)
        if s >= 1:
            t = s - 1
            cat = jnp.concatenate(
                [h0_prev_bf16, h1.astype(jnp.bfloat16)], axis=1)     # (B,2H) bf16
            g1 = (jnp.dot(cat, wcat2_ref[...],
                          preferred_element_type=jnp.float32)
                  + b2_ref[...])                                     # (B,4H) f32
            h1, c1 = gates_to_hc(g1, c1)
            h1_hist_ref[t * B:(t + 1) * B, :] = h1                   # (B,H) f32
        if s < T:
            h0 = h0_new
            h0_prev_bf16 = h0.astype(jnp.bfloat16)

    hn_ref[0] = h0
    cn_ref[0] = c0
    hn_ref[1] = h1
    cn_ref[1] = c1

    # FC head on all T*B hidden states at once (off the critical path), then
    # one lane-dense unmasked store of the whole (T*B, V) slab.
    h_all = h1_hist_ref[...].astype(jnp.bfloat16)                    # (T*B,H)
    out_ref[...] = (jnp.dot(h_all, fcw_ref[...],
                            preferred_element_type=jnp.float32)
                    + fcb_ref[...])                                  # (T*B,V) f32


# ----------------------------- model wrapper -------------------------------
def init_params(key):
    """Parameter init mimicking PyTorch shapes; matmul weights stored bf16.

    Gate-column convention is [i, f, o, g] (kernel assumption).  Layer 1's
    W_ih / W_hh are pre-concatenated along the input axis into one (2H, 4H)
    matrix so the kernel can do a single fused per-step matmul.
    """
    k_emb, k_lstm, k_fc = jax.random.split(key, 3)
    bound = 1.0 / (HIDDEN_SIZE ** 0.5)

    params = {"embedding": jax.random.normal(
        k_emb, (VOCAB_SIZE, EMBED_SIZE), jnp.float32)}

    ks = jax.random.split(k_lstm, NUM_LAYERS * 4)
    # Layer 0: separate W_ih (E,4H) and W_hh (H,4H).
    k0, k1, k2, k3 = ks[0:4]
    wih1 = jax.random.uniform(k0, (EMBED_SIZE, 4 * HIDDEN_SIZE), jnp.float32,
                              -bound, bound).astype(jnp.bfloat16)
    whh1 = jax.random.uniform(k1, (HIDDEN_SIZE, 4 * HIDDEN_SIZE), jnp.float32,
                              -bound, bound).astype(jnp.bfloat16)
    b1 = (jax.random.uniform(k2, (4 * HIDDEN_SIZE,), jnp.float32, -bound, bound)
          + jax.random.uniform(k3, (4 * HIDDEN_SIZE,), jnp.float32, -bound, bound)
          ).reshape(1, 4 * HIDDEN_SIZE)
    # Layer 1: W_ih (H,4H) and W_hh (H,4H) concatenated -> (2H, 4H).
    k4, k5, k6, k7 = ks[4:8]
    wih2 = jax.random.uniform(k4, (HIDDEN_SIZE, 4 * HIDDEN_SIZE), jnp.float32,
                              -bound, bound)
    whh2 = jax.random.uniform(k5, (HIDDEN_SIZE, 4 * HIDDEN_SIZE), jnp.float32,
                              -bound, bound)
    wcat2 = jnp.concatenate([wih2, whh2], axis=0).astype(jnp.bfloat16)
    b2 = (jax.random.uniform(k6, (4 * HIDDEN_SIZE,), jnp.float32, -bound, bound)
          + jax.random.uniform(k7, (4 * HIDDEN_SIZE,), jnp.float32, -bound, bound)
          ).reshape(1, 4 * HIDDEN_SIZE)

    params["lstm"] = (wih1, whh1, b1, wcat2, b2)

    kf0, kf1 = jax.random.split(k_fc)
    params["fc_w"] = jax.random.uniform(kf0, (HIDDEN_SIZE, VOCAB_SIZE), jnp.float32,
                                        -bound, bound).astype(jnp.bfloat16)
    params["fc_b"] = jax.random.uniform(kf1, (1, VOCAB_SIZE), jnp.float32,
                                        -bound, bound)
    return params


@jax.jit
def lstm_model_forward(params, tokens, hidden):
    """Matches LSTMModel.forward(x, hidden).

    tokens: (B, T) int32; hidden: (h0, c0), each (NUM_LAYERS, B, H)
    returns: out (B, T, V), (h_n, c_n) each (NUM_LAYERS, B, H)
    """
    h0, c0 = hidden
    B, T = tokens.shape

    # Embedding lookup stays in XLA glue, emitted directly in the time-major
    # flattened layout the kernel consumes.
    # TODO(synk): the dynamic embedding-table gather is kept in XLA rather
    # than re-implemented as an in-kernel VMEM gather.
    emb_tm = jnp.take(params["embedding"], tokens.T.reshape(-1),
                      axis=0).astype(jnp.bfloat16)                 # (T*B, E)

    wih1, whh1, b1, wcat2, b2 = params["lstm"]

    flops = 2 * T * B * (EMBED_SIZE * 4 * HIDDEN_SIZE            # layer-0 x-proj
                         + HIDDEN_SIZE * 4 * HIDDEN_SIZE         # layer-0 h-proj
                         + 2 * HIDDEN_SIZE * 4 * HIDDEN_SIZE     # layer-1 fused proj
                         + HIDDEN_SIZE * VOCAB_SIZE)             # fc
    cost = pl.CostEstimate(
        flops=flops,
        transcendentals=NUM_LAYERS * T * B * 5 * HIDDEN_SIZE,
        bytes_accessed=(T * B * EMBED_SIZE * 2                    # embeddings (bf16)
                        + (EMBED_SIZE + 3 * HIDDEN_SIZE) * 4 * HIDDEN_SIZE * 2
                        + HIDDEN_SIZE * VOCAB_SIZE * 2            # fc_w (bf16)
                        + T * B * VOCAB_SIZE * 4                  # logits out
                        + 4 * NUM_LAYERS * B * HIDDEN_SIZE * 4))  # h0/c0/hn/cn

    out_flat, h_n, c_n = pl.pallas_call(
        _fused_lstm_kernel,
        out_shape=(
            jax.ShapeDtypeStruct((T * B, VOCAB_SIZE), jnp.float32),
            jax.ShapeDtypeStruct((NUM_LAYERS, B, HIDDEN_SIZE), jnp.float32),
            jax.ShapeDtypeStruct((NUM_LAYERS, B, HIDDEN_SIZE), jnp.float32),
        ),
        in_specs=[_VMEM] * 10,
        out_specs=(_VMEM, _VMEM, _VMEM),
        scratch_shapes=[pltpu.VMEM((T * B, HIDDEN_SIZE), jnp.float32)],
        cost_estimate=cost,
    )(emb_tm, wih1, whh1, b1, wcat2, b2,
      params["fc_w"], params["fc_b"], h0, c0)

    # Time-major (T*B, V) slab -> batch-first (B, T, V); tiny, fusable.
    out = jnp.transpose(out_flat.reshape(T, B, VOCAB_SIZE), (1, 0, 2))
    return out, (h_n, c_n)


def init_hidden(batch_size):
    shape = (NUM_LAYERS, batch_size, HIDDEN_SIZE)
    return (jnp.zeros(shape, jnp.float32), jnp.zeros(shape, jnp.float32))


# ----------------------------- main -----------------------------------------
if __name__ == "__main__":
    key = jax.random.PRNGKey(0)
    k_params, k_tokens = jax.random.split(key)

    params = init_params(k_params)
    tokens = jax.random.randint(k_tokens, (BATCH, SEQ), 0, VOCAB_SIZE,
                                dtype=jnp.int32)
    hidden = init_hidden(BATCH)

    out, (h_n, c_n) = lstm_model_forward(params, tokens, hidden)
    jax.block_until_ready((out, h_n, c_n))

    assert out.shape == (BATCH, SEQ, VOCAB_SIZE)
    assert h_n.shape == (NUM_LAYERS, BATCH, HIDDEN_SIZE)
    assert c_n.shape == (NUM_LAYERS, BATCH, HIDDEN_SIZE)
    assert bool(jnp.isfinite(out).all())
    assert bool(jnp.isfinite(h_n).all()) and bool(jnp.isfinite(c_n).all())

    print("KERNEL_OK")
</pallas_src>

<mosaic_0001>
module attributes {stable_mosaic.version = 11 : i64} {
  func.func @_fused_lstm_kernel(%arg0: memref<64x128xbf16, #tpu.memory_space<vmem>>, %arg1: memref<128x512xbf16, #tpu.memory_space<vmem>>, %arg2: memref<128x512xbf16, #tpu.memory_space<vmem>>, %arg3: memref<1x512xf32, #tpu.memory_space<vmem>>, %arg4: memref<256x512xbf16, #tpu.memory_space<vmem>>, %arg5: memref<1x512xf32, #tpu.memory_space<vmem>>, %arg6: memref<128x256xbf16, #tpu.memory_space<vmem>>, %arg7: memref<1x256xf32, #tpu.memory_space<vmem>>, %arg8: memref<2x8x128xf32, #tpu.memory_space<vmem>>, %arg9: memref<2x8x128xf32, #tpu.memory_space<vmem>>, %arg10: memref<64x256xf32, #tpu.memory_space<vmem>>, %arg11: memref<2x8x128xf32, #tpu.memory_space<vmem>>, %arg12: memref<2x8x128xf32, #tpu.memory_space<vmem>>, %arg13: memref<64x128xf32, #tpu.memory_space<vmem>>) attributes {dimension_semantics = [], scalar_prefetch = 0 : i64, scratch_operands = 1 : i64, tpu.core_type = #tpu.core_type<tc>} {
    %c0 = arith.constant 0 : index
    %c0_0 = arith.constant 0 : index
    %0 = vector.load %arg0[%c0, %c0_0] : memref<64x128xbf16, #tpu.memory_space<vmem>>, vector<64x128xbf16>
    %c0_1 = arith.constant 0 : index
    %c0_2 = arith.constant 0 : index
    %1 = vector.load %arg1[%c0_1, %c0_2] : memref<128x512xbf16, #tpu.memory_space<vmem>>, vector<128x512xbf16>
    %cst = arith.constant dense<0.000000e+00> : vector<64x512xf32>
    %2 = tpu.matmul %0, %1, %cst {dimension_numbers = #tpu.dot_dimension_numbers<[1], [0], [0], [1], [0, 0, 1, 1], [], []>} : vector<64x128xbf16>, vector<128x512xbf16>, vector<64x512xf32> -> vector<64x512xf32>
    %c0_3 = arith.constant 0 : index
    %c0_4 = arith.constant 0 : index
    %3 = vector.load %arg3[%c0_3, %c0_4] : memref<1x512xf32, #tpu.memory_space<vmem>>, vector<1x512xf32>
    %4 = vector.broadcast %3 : vector<1x512xf32> to vector<64x512xf32>
    %5 = arith.addf %2, %4 : vector<64x512xf32>
    %c0_5 = arith.constant 0 : index
    %c0_6 = arith.constant 0 : index
    %c0_7 = arith.constant 0 : index
    %6 = vector.load %arg8[%c0_5, %c0_6, %c0_7] : memref<2x8x128xf32, #tpu.memory_space<vmem>>, vector<1x8x128xf32>
    %7 = vector.shape_cast %6 : vector<1x8x128xf32> to vector<8x128xf32>
    %c0_8 = arith.constant 0 : index
    %c0_9 = arith.constant 0 : index
    %c0_10 = arith.constant 0 : index
    %8 = vector.load %arg9[%c0_8, %c0_9, %c0_10] : memref<2x8x128xf32, #tpu.memory_space<vmem>>, vector<1x8x128xf32>
    %9 = vector.shape_cast %8 : vector<1x8x128xf32> to vector<8x128xf32>
    %c1 = arith.constant 1 : index
    %c0_11 = arith.constant 0 : index
    %c0_12 = arith.constant 0 : index
    %10 = vector.load %arg8[%c1, %c0_11, %c0_12] : memref<2x8x128xf32, #tpu.memory_space<vmem>>, vector<1x8x128xf32>
    %11 = vector.shape_cast %10 : vector<1x8x128xf32> to vector<8x128xf32>
    %c1_13 = arith.constant 1 : index
    %c0_14 = arith.constant 0 : index
    %c0_15 = arith.constant 0 : index
    %12 = vector.load %arg9[%c1_13, %c0_14, %c0_15] : memref<2x8x128xf32, #tpu.memory_space<vmem>>, vector<1x8x128xf32>
    %13 = vector.shape_cast %12 : vector<1x8x128xf32> to vector<8x128xf32>
    %14 = vector.extract_strided_slice %5 {offsets = [0, 0], sizes = [8, 512], strides = [1, 1]} : vector<64x512xf32> to vector<8x512xf32>
    %15 = arith.truncf %7 : vector<8x128xf32> to vector<8x128xbf16>
    %c0_16 = arith.constant 0 : index
    %c0_17 = arith.constant 0 : index
    %16 = vector.load %arg2[%c0_16, %c0_17] : memref<128x512xbf16, #tpu.memory_space<vmem>>, vector<128x512xbf16>
    %cst_18 = arith.constant dense<0.000000e+00> : vector<8x512xf32>
    %17 = tpu.matmul %15, %16, %cst_18 {dimension_numbers = #tpu.dot_dimension_numbers<[1], [0], [0], [1], [0, 0, 1, 1], [], []>} : vector<8x128xbf16>, vector<128x512xbf16>, vector<8x512xf32> -> vector<8x512xf32>
    %18 = arith.addf %14, %17 : vector<8x512xf32>
    %19 = vector.extract_strided_slice %18 {offsets = [0, 0], sizes = [8, 384], strides = [1, 1]} : vector<8x512xf32> to vector<8x384xf32>
    %cst_19 = arith.constant 5.000000e-01 : f32
    %20 = vector.broadcast %cst_19 : f32 to vector<8x384xf32>
    %21 = arith.mulf %20, %19 : vector<8x384xf32>
    %22 = math.tanh %21 : vector<8x384xf32>
    %cst_20 = arith.constant 5.000000e-01 : f32
    %23 = vector.broadcast %cst_20 : f32 to vector<8x384xf32>
    %24 = arith.mulf %23, %22 : vector<8x384xf32>
    %cst_21 = arith.constant 5.000000e-01 : f32
    %25 = vector.broadcast %cst_21 : f32 to vector<8x384xf32>
    %26 = arith.addf %24, %25 : vector<8x384xf32>
    %27 = vector.extract_strided_slice %26 {offsets = [0, 0], sizes = [8, 128], strides = [1, 1]} : vector<8x384xf32> to vector<8x128xf32>
    %28 = vector.extract_strided_slice %26 {offsets = [0, 128], sizes = [8, 128], strides = [1, 1]} : vector<8x384xf32> to vector<8x128xf32>
    %29 = vector.extract_strided_slice %26 {offsets = [0, 256], sizes = [8, 128], strides = [1, 1]} : vector<8x384xf32> to vector<8x128xf32>
    %30 = vector.extract_strided_slice %18 {offsets = [0, 384], sizes = [8, 128], strides = [1, 1]} : vector<8x512xf32> to vector<8x128xf32>
    %31 = math.tanh %30 : vector<8x128xf32>
    %32 = arith.mulf %28, %9 : vector<8x128xf32>
    %33 = arith.mulf %27, %31 : vector<8x128xf32>
    %34 = arith.addf %32, %33 : vector<8x128xf32>
    %35 = math.tanh %34 : vector<8x128xf32>
    %36 = arith.mulf %29, %35 : vector<8x128xf32>
    %37 = arith.truncf %36 : vector<8x128xf32> to vector<8x128xbf16>
    %38 = vector.extract_strided_slice %5 {offsets = [8, 0], sizes = [8, 512], strides = [1, 1]} : vector<64x512xf32> to vector<8x512xf32>
    %39 = arith.truncf %36 : vector<8x128xf32> to vector<8x128xbf16>
    %c0_22 = arith.constant 0 : index
    %c0_23 = arith.constant 0 : index
    %40 = vector.load %arg2[%c0_22, %c0_23] : memref<128x512xbf16, #tpu.memory_space<vmem>>, vector<128x512xbf16>
    %cst_24 = arith.constant dense<0.000000e+00> : vector<8x512xf32>
    %41 = tpu.matmul %39, %40, %cst_24 {dimension_numbers = #tpu.dot_dimension_numbers<[1], [0], [0], [1], [0, 0, 1, 1], [], []>} : vector<8x128xbf16>, vector<128x512xbf16>, vector<8x512xf32> -> vector<8x512xf32>
    %42 = arith.addf %38, %41 : vector<8x512xf32>
    %43 = vector.extract_strided_slice %42 {offsets = [0, 0], sizes = [8, 384], strides = [1, 1]} : vector<8x512xf32> to vector<8x384xf32>
    %cst_25 = arith.constant 5.000000e-01 : f32
    %44 = vector.broadcast %cst_25 : f32 to vector<8x384xf32>
    %45 = arith.mulf %44, %43 : vector<8x384xf32>
    %46 = math.tanh %45 : vector<8x384xf32>
    %cst_26 = arith.constant 5.000000e-01 : f32
    %47 = vector.broadcast %cst_26 : f32 to vector<8x384xf32>
    %48 = arith.mulf %47, %46 : vector<8x384xf32>
    %cst_27 = arith.constant 5.000000e-01 : f32
    %49 = vector.broadcast %cst_27 : f32 to vector<8x384xf32>
    %50 = arith.addf %48, %49 : vector<8x384xf32>
    %51 = vector.extract_strided_slice %50 {offsets = [0, 0], sizes = [8, 128], strides = [1, 1]} : vector<8x384xf32> to vector<8x128xf32>
    %52 = vector.extract_strided_slice %50 {offsets = [0, 128], sizes = [8, 128], strides = [1, 1]} : vector<8x384xf32> to vector<8x128xf32>
    %53 = vector.extract_strided_slice %50 {offsets = [0, 256], sizes = [8, 128], strides = [1, 1]} : vector<8x384xf32> to vector<8x128xf32>
    %54 = vector.extract_strided_slice %42 {offsets = [0, 384], sizes = [8, 128], strides = [1, 1]} : vector<8x512xf32> to vector<8x128xf32>
    %55 = math.tanh %54 : vector<8x128xf32>
    %56 = arith.mulf %52, %34 : vector<8x128xf32>
    %57 = arith.mulf %51, %55 : vector<8x128xf32>
    %58 = arith.addf %56, %57 : vector<8x128xf32>
    %59 = math.tanh %58 : vector<8x128xf32>
    %60 = arith.mulf %53, %59 : vector<8x128xf32>
    %61 = arith.truncf %11 : vector<8x128xf32> to vector<8x128xbf16>
    %62 = tpu.concatenate %37, %61 in 1 : vector<8x128xbf16>, vector<8x128xbf16> -> vector<8x256xbf16>
    %c0_28 = arith.constant 0 : index
    %c0_29 = arith.constant 0 : index
    %63 = vector.load %arg4[%c0_28, %c0_29] : memref<256x512xbf16, #tpu.memory_space<vmem>>, vector<256x512xbf16>
    %cst_30 = arith.constant dense<0.000000e+00> : vector<8x512xf32>
    %64 = tpu.matmul %62, %63, %cst_30 {dimension_numbers = #tpu.dot_dimension_numbers<[1], [0], [0], [1], [0, 0, 1, 1], [], []>} : vector<8x256xbf16>, vector<256x512xbf16>, vector<8x512xf32> -> vector<8x512xf32>
    %c0_31 = arith.constant 0 : index
    %c0_32 = arith.constant 0 : index
    %65 = vector.load %arg5[%c0_31, %c0_32] : memref<1x512xf32, #tpu.memory_space<vmem>>, vector<1x512xf32>
    %66 = vector.broadcast %65 : vector<1x512xf32> to vector<8x512xf32>
    %67 = arith.addf %64, %66 : vector<8x512xf32>
    %68 = vector.extract_strided_slice %67 {offsets = [0, 0], sizes = [8, 384], strides = [1, 1]} : vector<8x512xf32> to vector<8x384xf32>
    %cst_33 = arith.constant 5.000000e-01 : f32
    %69 = vector.broadcast %cst_33 : f32 to vector<8x384xf32>
    %70 = arith.mulf %69, %68 : vector<8x384xf32>
    %71 = math.tanh %70 : vector<8x384xf32>
    %cst_34 = arith.constant 5.000000e-01 : f32
    %72 = vector.broadcast %cst_34 : f32 to vector<8x384xf32>
    %73 = arith.mulf %72, %71 : vector<8x384xf32>
    %cst_35 = arith.constant 5.000000e-01 : f32
    %74 = vector.broadcast %cst_35 : f32 to vector<8x384xf32>
    %75 = arith.addf %73, %74 : vector<8x384xf32>
    %76 = vector.extract_strided_slice %75 {offsets = [0, 0], sizes = [8, 128], strides = [1, 1]} : vector<8x384xf32> to vector<8x128xf32>
    %77 = vector.extract_strided_slice %75 {offsets = [0, 128], sizes = [8, 128], strides = [1, 1]} : vector<8x384xf32> to vector<8x128xf32>
    %78 = vector.extract_strided_slice %75 {offsets = [0, 256], sizes = [8, 128], strides = [1, 1]} : vector<8x384xf32> to vector<8x128xf32>
    %79 = vector.extract_strided_slice %67 {offsets = [0, 384], sizes = [8, 128], strides = [1, 1]} : vector<8x512xf32> to vector<8x128xf32>
    %80 = math.tanh %79 : vector<8x128xf32>
    %81 = arith.mulf %77, %13 : vector<8x128xf32>
    %82 = arith.mulf %76, %80 : vector<8x128xf32>
    %83 = arith.addf %81, %82 : vector<8x128xf32>
    %84 = math.tanh %83 : vector<8x128xf32>
    %85 = arith.mulf %78, %84 : vector<8x128xf32>
    %c0_36 = arith.constant 0 : index
    %c0_37 = arith.constant 0 : index
    %86 = vector.load %arg13[%c0_36, %c0_37] : memref<64x128xf32, #tpu.memory_space<vmem>>, vector<8x128xf32>
    tpu.vector_store %arg13[%c0_36, %c0_37], %85 {strides = array<i32>} : memref<64x128xf32, #tpu.memory_space<vmem>>, vector<8x128xf32>,
    %87 = arith.truncf %60 : vector<8x128xf32> to vector<8x128xbf16>
    %88 = vector.extract_strided_slice %5 {offsets = [16, 0], sizes = [8, 512], strides = [1, 1]} : vector<64x512xf32> to vector<8x512xf32>
    %89 = arith.truncf %60 : vector<8x128xf32> to vector<8x128xbf16>
    %c0_38 = arith.constant 0 : index
    %c0_39 = arith.constant 0 : index
    %90 = vector.load %arg2[%c0_38, %c0_39] : memref<128x512xbf16, #tpu.memory_space<vmem>>, vector<128x512xbf16>
    %cst_40 = arith.constant dense<0.000000e+00> : vector<8x512xf32>
    %91 = tpu.matmul %89, %90, %cst_40 {dimension_numbers = #tpu.dot_dimension_numbers<[1], [0], [0], [1], [0, 0, 1, 1], [], []>} : vector<8x128xbf16>, vector<128x512xbf16>, vector<8x512xf32> -> vector<8x512xf32>
    %92 = arith.addf %88, %91 : vector<8x512xf32>
    %93 = vector.extract_strided_slice %92 {offsets = [0, 0], sizes = [8, 384], strides = [1, 1]} : vector<8x512xf32> to vector<8x384xf32>
    %cst_41 = arith.constant 5.000000e-01 : f32
    %94 = vector.broadcast %cst_41 : f32 to vector<8x384xf32>
    %95 = arith.mulf %94, %93 : vector<8x384xf32>
    %96 = math.tanh %95 : vector<8x384xf32>
    %cst_42 = arith.constant 5.000000e-01 : f32
    %97 = vector.broadcast %cst_42 : f32 to vector<8x384xf32>
    %98 = arith.mulf %97, %96 : vector<8x384xf32>
    %cst_43 = arith.constant 5.000000e-01 : f32
    %99 = vector.broadcast %cst_43 : f32 to vector<8x384xf32>
    %100 = arith.addf %98, %99 : vector<8x384xf32>
    %101 = vector.extract_strided_slice %100 {offsets = [0, 0], sizes = [8, 128], strides = [1, 1]} : vector<8x384xf32> to vector<8x128xf32>
    %102 = vector.extract_strided_slice %100 {offsets = [0, 128], sizes = [8, 128], strides = [1, 1]} : vector<8x384xf32> to vector<8x128xf32>
    %103 = vector.extract_strided_slice %100 {offsets = [0, 256], sizes = [8, 128], strides = [1, 1]} : vector<8x384xf32> to vector<8x128xf32>
    %104 = vector.extract_strided_slice %92 {offsets = [0, 384], sizes = [8, 128], strides = [1, 1]} : vector<8x512xf32> to vector<8x128xf32>
    %105 = math.tanh %104 : vector<8x128xf32>
    %106 = arith.mulf %102, %58 : vector<8x128xf32>
    %107 = arith.mulf %101, %105 : vector<8x128xf32>
    %108 = arith.addf %106, %107 : vector<8x128xf32>
    %109 = math.tanh %108 : vector<8x128xf32>
    %110 = arith.mulf %103, %109 : vector<8x128xf32>
    %111 = arith.truncf %85 : vector<8x128xf32> to vector<8x128xbf16>
    %112 = tpu.concatenate %87, %111 in 1 : vector<8x128xbf16>, vector<8x128xbf16> -> vector<8x256xbf16>
    %c0_44 = arith.constant 0 : index
    %c0_45 = arith.constant 0 : index
    %113 = vector.load %arg4[%c0_44, %c0_45] : memref<256x512xbf16, #tpu.memory_space<vmem>>, vector<256x512xbf16>
    %cst_46 = arith.constant dense<0.000000e+00> : vector<8x512xf32>
    %114 = tpu.matmul %112, %113, %cst_46 {dimension_numbers = #tpu.dot_dimension_numbers<[1], [0], [0], [1], [0, 0, 1, 1], [], []>} : vector<8x256xbf16>, vector<256x512xbf16>, vector<8x512xf32> -> vector<8x512xf32>
    %c0_47 = arith.constant 0 : index
    %c0_48 = arith.constant 0 : index
    %115 = vector.load %arg5[%c0_47, %c0_48] : memref<1x512xf32, #tpu.memory_space<vmem>>, vector<1x512xf32>
    %116 = vector.broadcast %115 : vector<1x512xf32> to vector<8x512xf32>
    %117 = arith.addf %114, %116 : vector<8x512xf32>
    %118 = vector.extract_strided_slice %117 {offsets = [0, 0], sizes = [8, 384], strides = [1, 1]} : vector<8x512xf32> to vector<8x384xf32>
    %cst_49 = arith.constant 5.000000e-01 : f32
    %119 = vector.broadcast %cst_49 : f32 to vector<8x384xf32>
    %120 = arith.mulf %119, %118 : vector<8x384xf32>
    %121 = math.tanh %120 : vector<8x384xf32>
    %cst_50 = arith.constant 5.000000e-01 : f32
    %122 = vector.broadcast %cst_50 : f32 to vector<8x384xf32>
    %123 = arith.mulf %122, %121 : vector<8x384xf32>
    %cst_51 = arith.constant 5.000000e-01 : f32
    %124 = vector.broadcast %cst_51 : f32 to vector<8x384xf32>
    %125 = arith.addf %123, %124 : vector<8x384xf32>
    %126 = vector.extract_strided_slice %125 {offsets = [0, 0], sizes = [8, 128], strides = [1, 1]} : vector<8x384xf32> to vector<8x128xf32>
    %127 = vector.extract_strided_slice %125 {offsets = [0, 128], sizes = [8, 128], strides = [1, 1]} : vector<8x384xf32> to vector<8x128xf32>
    %128 = vector.extract_strided_slice %125 {offsets = [0, 256], sizes = [8, 128], strides = [1, 1]} : vector<8x384xf32> to vector<8x128xf32>
    %129 = vector.extract_strided_slice %117 {offsets = [0, 384], sizes = [8, 128], strides = [1, 1]} : vector<8x512xf32> to vector<8x128xf32>
    %130 = math.tanh %129 : vector<8x128xf32>
    %131 = arith.mulf %127, %83 : vector<8x128xf32>
    %132 = arith.mulf %126, %130 : vector<8x128xf32>
    %133 = arith.addf %131, %132 : vector<8x128xf32>
    %134 = math.tanh %133 : vector<8x128xf32>
    %135 = arith.mulf %128, %134 : vector<8x128xf32>
    %c8 = arith.constant 8 : index
    %c0_52 = arith.constant 0 : index
    %136 = vector.load %arg13[%c8, %c0_52] : memref<64x128xf32, #tpu.memory_space<vmem>>, vector<8x128xf32>
    tpu.vector_store %arg13[%c8, %c0_52], %135 {strides = array<i32>} : memref<64x128xf32, #tpu.memory_space<vmem>>, vector<8x128xf32>,
    %137 = arith.truncf %110 : vector<8x128xf32> to vector<8x128xbf16>
    %138 = vector.extract_strided_slice %5 {offsets = [24, 0], sizes = [8, 512], strides = [1, 1]} : vector<64x512xf32> to vector<8x512xf32>
    %139 = arith.truncf %110 : vector<8x128xf32> to vector<8x128xbf16>
    %c0_53 = arith.constant 0 : index
    %c0_54 = arith.constant 0 : index
    %140 = vector.load %arg2[%c0_53, %c0_54] : memref<128x512xbf16, #tpu.memory_space<vmem>>, vector<128x512xbf16>
    %cst_55 = arith.constant dense<0.000000e+00> : vector<8x512xf32>
    %141 = tpu.matmul %139, %140, %cst_55 {dimension_numbers = #tpu.dot_dimension_numbers<[1], [0], [0], [1], [0, 0, 1, 1], [], []>} : vector<8x128xbf16>, vector<128x512xbf16>, vector<8x512xf32> -> vector<8x512xf32>
    %142 = arith.addf %138, %141 : vector<8x512xf32>
    %143 = vector.extract_strided_slice %142 {offsets = [0, 0], sizes = [8, 384], strides = [1, 1]} : vector<8x512xf32> to vector<8x384xf32>
    %cst_56 = arith.constant 5.000000e-01 : f32
    %144 = vector.broadcast %cst_56 : f32 to vector<8x384xf32>
    %145 = arith.mulf %144, %143 : vector<8x384xf32>
    %146 = math.tanh %145 : vector<8x384xf32>
    %cst_57 = arith.constant 5.000000e-01 : f32
    %147 = vector.broadcast %cst_57 : f32 to vector<8x384xf32>
    %148 = arith.mulf %147, %146 : vector<8x384xf32>
    %cst_58 = arith.constant 5.000000e-01 : f32
    %149 = vector.broadcast %cst_58 : f32 to vector<8x384xf32>
    %150 = arith.addf %148, %149 : vector<8x384xf32>
    %151 = vector.extract_strided_slice %150 {offsets = [0, 0], sizes = [8, 128], strides = [1, 1]} : vector<8x384xf32> to vector<8x128xf32>
    %152 = vector.extract_strided_slice %150 {offsets = [0, 128], sizes = [8, 128], strides = [1, 1]} : vector<8x384xf32> to vector<8x128xf32>
    %153 = vector.extract_strided_slice %150 {offsets = [0, 256], sizes = [8, 128], strides = [1, 1]} : vector<8x384xf32> to vector<8x128xf32>
    %154 = vector.extract_strided_slice %142 {offsets = [0, 384], sizes = [8, 128], strides = [1, 1]} : vector<8x512xf32> to vector<8x128xf32>
    %155 = math.tanh %154 : vector<8x128xf32>
    %156 = arith.mulf %152, %108 : vector<8x128xf32>
    %157 = arith.mulf %151, %155 : vector<8x128xf32>
    %158 = arith.addf %156, %157 : vector<8x128xf32>
    %159 = math.tanh %158 : vector<8x128xf32>
    %160 = arith.mulf %153, %159 : vector<8x128xf32>
    %161 = arith.truncf %135 : vector<8x128xf32> to vector<8x128xbf16>
    %162 = tpu.concatenate %137, %161 in 1 : vector<8x128xbf16>, vector<8x128xbf16> -> vector<8x256xbf16>
    %c0_59 = arith.constant 0 : index
    %c0_60 = arith.constant 0 : index
    %163 = vector.load %arg4[%c0_59, %c0_60] : memref<256x512xbf16, #tpu.memory_space<vmem>>, vector<256x512xbf16>
    %cst_61 = arith.constant dense<0.000000e+00> : vector<8x512xf32>
    %164 = tpu.matmul %162, %163, %cst_61 {dimension_numbers = #tpu.dot_dimension_numbers<[1], [0], [0], [1], [0, 0, 1, 1], [], []>} : vector<8x256xbf16>, vector<256x512xbf16>, vector<8x512xf32> -> vector<8x512xf32>
    %c0_62 = arith.constant 0 : index
    %c0_63 = arith.constant 0 : index
    %165 = vector.load %arg5[%c0_62, %c0_63] : memref<1x512xf32, #tpu.memory_space<vmem>>, vector<1x512xf32>
    %166 = vector.broadcast %165 : vector<1x512xf32> to vector<8x512xf32>
    %167 = arith.addf %164, %166 : vector<8x512xf32>
    %168 = vector.extract_strided_slice %167 {offsets = [0, 0], sizes = [8, 384], strides = [1, 1]} : vector<8x512xf32> to vector<8x384xf32>
    %cst_64 = arith.constant 5.000000e-01 : f32
    %169 = vector.broadcast %cst_64 : f32 to vector<8x384xf32>
    %170 = arith.mulf %169, %168 : vector<8x384xf32>
    %171 = math.tanh %170 : vector<8x384xf32>
    %cst_65 = arith.constant 5.000000e-01 : f32
    %172 = vector.broadcast %cst_65 : f32 to vector<8x384xf32>
    %173 = arith.mulf %172, %171 : vector<8x384xf32>
    %cst_66 = arith.constant 5.000000e-01 : f32
    %174 = vector.broadcast %cst_66 : f32 to vector<8x384xf32>
    %175 = arith.addf %173, %174 : vector<8x384xf32>
    %176 = vector.extract_strided_slice %175 {offsets = [0, 0], sizes = [8, 128], strides = [1, 1]} : vector<8x384xf32> to vector<8x128xf32>
    %177 = vector.extract_strided_slice %175 {offsets = [0, 128], sizes = [8, 128], strides = [1, 1]} : vector<8x384xf32> to vector<8x128xf32>
    %178 = vector.extract_strided_slice %175 {offsets = [0, 256], sizes = [8, 128], strides = [1, 1]} : vector<8x384xf32> to vector<8x128xf32>
    %179 = vector.extract_strided_slice %167 {offsets = [0, 384], sizes = [8, 128], strides = [1, 1]} : vector<8x512xf32> to vector<8x128xf32>
    %180 = math.tanh %179 : vector<8x128xf32>
    %181 = arith.mulf %177, %133 : vector<8x128xf32>
    %182 = arith.mulf %176, %180 : vector<8x128xf32>
    %183 = arith.addf %181, %182 : vector<8x128xf32>
    %184 = math.tanh %183 : vector<8x128xf32>
    %185 = arith.mulf %178, %184 : vector<8x128xf32>
    %c16 = arith.constant 16 : index
    %c0_67 = arith.constant 0 : index
    %186 = vector.load %arg13[%c16, %c0_67] : memref<64x128xf32, #tpu.memory_space<vmem>>, vector<8x128xf32>
    tpu.vector_store %arg13[%c16, %c0_67], %185 {strides = array<i32>} : memref<64x128xf32, #tpu.memory_space<vmem>>, vector<8x128xf32>,
    %187 = arith.truncf %160 : vector<8x128xf32> to vector<8x128xbf16>
    %188 = vector.extract_strided_slice %5 {offsets = [32, 0], sizes = [8, 512], strides = [1, 1]} : vector<64x512xf32> to vector<8x512xf32>
    %189 = arith.truncf %160 : vector<8x128xf32> to vector<8x128xbf16>
    %c0_68 = arith.constant 0 : index
    %c0_69 = arith.constant 0 : index
    %190 = vector.load %arg2[%c0_68, %c0_69] : memref<128x512xbf16, #tpu.memory_space<vmem>>, vector<128x512xbf16>
    %cst_70 = arith.constant dense<0.000000e+00> : vector<8x512xf32>
    %191 = tpu.matmul %189, %190, %cst_70 {dimension_numbers = #tpu.dot_dimension_numbers<[1], [0], [0], [1], [0, 0, 1, 1], [], []>} : vector<8x128xbf16>, vector<128x512xbf16>, vector<8x512xf32> -> vector<8x512xf32>
    %192 = arith.addf %188, %191 : vector<8x512xf32>
    %193 = vector.extract_strided_slice %192 {offsets = [0, 0], sizes = [8, 384], strides = [1, 1]} : vector<8x512xf32> to vector<8x384xf32>
    %cst_71 = arith.constant 5.000000e-01 : f32
    %194 = vector.broadcast %cst_71 : f32 to vector<8x384xf32>
    %195 = arith.mulf %194, %193 : vector<8x384xf32>
    %196 = math.tanh %195 : vector<8x384xf32>
    %cst_72 = arith.constant 5.000000e-01 : f32
    %197 = vector.broadcast %cst_72 : f32 to vector<8x384xf32>
    %198 = arith.mulf %197, %196 : vector<8x384xf32>
    %cst_73 = arith.constant 5.000000e-01 : f32
    %199 = vector.broadcast %cst_73 : f32 to vector<8x384xf32>
    %200 = arith.addf %198, %199 : vector<8x384xf32>
    %201 = vector.extract_strided_slice %200 {offsets = [0, 0], sizes = [8, 128], strides = [1, 1]} : vector<8x384xf32> to vector<8x128xf32>
    %202 = vector.extract_strided_slice %200 {offsets = [0, 128], sizes = [8, 128], strides = [1, 1]} : vector<8x384xf32> to vector<8x128xf32>
    %203 = vector.extract_strided_slice %200 {offsets = [0, 256], sizes = [8, 128], strides = [1, 1]} : vector<8x384xf32> to vector<8x128xf32>
    %204 = vector.extract_strided_slice %192 {offsets = [0, 384], sizes = [8, 128], strides = [1, 1]} : vector<8x512xf32> to vector<8x128xf32>
    %205 = math.tanh %204 : vector<8x128xf32>
    %206 = arith.mulf %202, %158 : vector<8x128xf32>
    %207 = arith.mulf %201, %205 : vector<8x128xf32>
    %208 = arith.addf %206, %207 : vector<8x128xf32>
    %209 = math.tanh %208 : vector<8x128xf32>
    %210 = arith.mulf %203, %209 : vector<8x128xf32>
    %211 = arith.truncf %185 : vector<8x128xf32> to vector<8x128xbf16>
    %212 = tpu.concatenate %187, %211 in 1 : vector<8x128xbf16>, vector<8x128xbf16> -> vector<8x256xbf16>
    %c0_74 = arith.constant 0 : index
    %c0_75 = arith.constant 0 : index
    %213 = vector.load %arg4[%c0_74, %c0_75] : memref<256x512xbf16, #tpu.memory_space<vmem>>, vector<256x512xbf16>
    %cst_76 = arith.constant dense<0.000000e+00> : vector<8x512xf32>
    %214 = tpu.matmul %212, %213, %cst_76 {dimension_numbers = #tpu.dot_dimension_numbers<[1], [0], [0], [1], [0, 0, 1, 1], [], []>} : vector<8x256xbf16>, vector<256x512xbf16>, vector<8x512xf32> -> vector<8x512xf32>
    %c0_77 = arith.constant 0 : index
    %c0_78 = arith.constant 0 : index
    %215 = vector.load %arg5[%c0_77, %c0_78] : memref<1x512xf32, #tpu.memory_space<vmem>>, vector<1x512xf32>
    %216 = vector.broadcast %215 : vector<1x512xf32> to vector<8x512xf32>
    %217 = arith.addf %214, %216 : vector<8x512xf32>
    %218 = vector.extract_strided_slice %217 {offsets = [0, 0], sizes = [8, 384], strides = [1, 1]} : vector<8x512xf32> to vector<8x384xf32>
    %cst_79 = arith.constant 5.000000e-01 : f32
    %219 = vector.broadcast %cst_79 : f32 to vector<8x384xf32>
    %220 = arith.mulf %219, %218 : vector<8x384xf32>
    %221 = math.tanh %220 : vector<8x384xf32>
    %cst_80 = arith.constant 5.000000e-01 : f32
    %222 = vector.broadcast %cst_80 : f32 to vector<8x384xf32>
    %223 = arith.mulf %222, %221 : vector<8x384xf32>
    %cst_81 = arith.constant 5.000000e-01 : f32
    %224 = vector.broadcast %cst_81 : f32 to vector<8x384xf32>
    %225 = arith.addf %223, %224 : vector<8x384xf32>
    %226 = vector.extract_strided_slice %225 {offsets = [0, 0], sizes = [8, 128], strides = [1, 1]} : vector<8x384xf32> to vector<8x128xf32>
    %227 = vector.extract_strided_slice %225 {offsets = [0, 128], sizes = [8, 128], strides = [1, 1]} : vector<8x384xf32> to vector<8x128xf32>
    %228 = vector.extract_strided_slice %225 {offsets = [0, 256], sizes = [8, 128], strides = [1, 1]} : vector<8x384xf32> to vector<8x128xf32>
    %229 = vector.extract_strided_slice %217 {offsets = [0, 384], sizes = [8, 128], strides = [1, 1]} : vector<8x512xf32> to vector<8x128xf32>
    %230 = math.tanh %229 : vector<8x128xf32>
    %231 = arith.mulf %227, %183 : vector<8x128xf32>
    %232 = arith.mulf %226, %230 : vector<8x128xf32>
    %233 = arith.addf %231, %232 : vector<8x128xf32>
    %234 = math.tanh %233 : vector<8x128xf32>
    %235 = arith.mulf %228, %234 : vector<8x128xf32>
    %c24 = arith.constant 24 : index
    %c0_82 = arith.constant 0 : index
    %236 = vector.load %arg13[%c24, %c0_82] : memref<64x128xf32, #tpu.memory_space<vmem>>, vector<8x128xf32>
    tpu.vector_store %arg13[%c24, %c0_82], %235 {strides = array<i32>} : memref<64x128xf32, #tpu.memory_space<vmem>>, vector<8x128xf32>,
    %237 = arith.truncf %210 : vector<8x128xf32> to vector<8x128xbf16>
    %238 = vector.extract_strided_slice %5 {offsets = [40, 0], sizes = [8, 512], strides = [1, 1]} : vector<64x512xf32> to vector<8x512xf32>
    %239 = arith.truncf %210 : vector<8x128xf32> to vector<8x128xbf16>
    %c0_83 = arith.constant 0 : index
    %c0_84 = arith.constant 0 : index
    %240 = vector.load %arg2[%c0_83, %c0_84] : memref<128x512xbf16, #tpu.memory_space<vmem>>, vector<128x512xbf16>
    %cst_85 = arith.constant dense<0.000000e+00> : vector<8x512xf32>
    %241 = tpu.matmul %239, %240, %cst_85 {dimension_numbers = #tpu.dot_dimension_numbers<[1], [0], [0], [1], [0, 0, 1, 1], [], []>} : vector<8x128xbf16>, vector<128x512xbf16>, vector<8x512xf32> -> vector<8x512xf32>
    %242 = arith.addf %238, %241 : vector<8x512xf32>
    %243 = vector.extract_strided_slice %242 {offsets = [0, 0], sizes = [8, 384], strides = [1, 1]} : vector<8x512xf32> to vector<8x384xf32>
    %cst_86 = arith.constant 5.000000e-01 : f32
    %244 = vector.broadcast %cst_86 : f32 to vector<8x384xf32>
    %245 = arith.mulf %244, %243 : vector<8x384xf32>
    %246 = math.tanh %245 : vector<8x384xf32>
    %cst_87 = arith.constant 5.000000e-01 : f32
    %247 = vector.broadcast %cst_87 : f32 to vector<8x384xf32>
    %248 = arith.mulf %247, %246 : vector<8x384xf32>
    %cst_88 = arith.constant 5.000000e-01 : f32
    %249 = vector.broadcast %cst_88 : f32 to vector<8x384xf32>
    %250 = arith.addf %248, %249 : vector<8x384xf32>
    %251 = vector.extract_strided_slice %250 {offsets = [0, 0], sizes = [8, 128], strides = [1, 1]} : vector<8x384xf32> to vector<8x128xf32>
    %252 = vector.extract_strided_slice %250 {offsets = [0, 128], sizes = [8, 128], strides = [1, 1]} : vector<8x384xf32> to vector<8x128xf32>
    %253 = vector.extract_strided_slice %250 {offsets = [0, 256], sizes = [8, 128], strides = [1, 1]} : vector<8x384xf32> to vector<8x128xf32>
    %254 = vector.extract_strided_slice %242 {offsets = [0, 384], sizes = [8, 128], strides = [1, 1]} : vector<8x512xf32> to vector<8x128xf32>
    %255 = math.tanh %254 : vector<8x128xf32>
    %256 = arith.mulf %252, %208 : vector<8x128xf32>
    %257 = arith.mulf %251, %255 : vector<8x128xf32>
    %258 = arith.addf %256, %257 : vector<8x128xf32>
    %259 = math.tanh %258 : vector<8x128xf32>
    %260 = arith.mulf %253, %259 : vector<8x128xf32>
    %261 = arith.truncf %235 : vector<8x128xf32> to vector<8x128xbf16>
    %262 = tpu.concatenate %237, %261 in 1 : vector<8x128xbf16>, vector<8x128xbf16> -> vector<8x256xbf16>
    %c0_89 = arith.constant 0 : index
    %c0_90 = arith.constant 0 : index
    %263 = vector.load %arg4[%c0_89, %c0_90] : memref<256x512xbf16, #tpu.memory_space<vmem>>, vector<256x512xbf16>
    %cst_91 = arith.constant dense<0.000000e+00> : vector<8x512xf32>
    %264 = tpu.matmul %262, %263, %cst_91 {dimension_numbers = #tpu.dot_dimension_numbers<[1], [0], [0], [1], [0, 0, 1, 1], [], []>} : vector<8x256xbf16>, vector<256x512xbf16>, vector<8x512xf32> -> vector<8x512xf32>
    %c0_92 = arith.constant 0 : index
    %c0_93 = arith.constant 0 : index
    %265 = vector.load %arg5[%c0_92, %c0_93] : memref<1x512xf32, #tpu.memory_space<vmem>>, vector<1x512xf32>
    %266 = vector.broadcast %265 : vector<1x512xf32> to vector<8x512xf32>
    %267 = arith.addf %264, %266 : vector<8x512xf32>
    %268 = vector.extract_strided_slice %267 {offsets = [0, 0], sizes = [8, 384], strides = [1, 1]} : vector<8x512xf32> to vector<8x384xf32>
    %cst_94 = arith.constant 5.000000e-01 : f32
    %269 = vector.broadcast %cst_94 : f32 to vector<8x384xf32>
    %270 = arith.mulf %269, %268 : vector<8x384xf32>
    %271 = math.tanh %270 : vector<8x384xf32>
    %cst_95 = arith.constant 5.000000e-01 : f32
    %272 = vector.broadcast %cst_95 : f32 to vector<8x384xf32>
    %273 = arith.mulf %272, %271 : vector<8x384xf32>
    %cst_96 = arith.constant 5.000000e-01 : f32
    %274 = vector.broadcast %cst_96 : f32 to vector<8x384xf32>
    %275 = arith.addf %273, %274 : vector<8x384xf32>
    %276 = vector.extract_strided_slice %275 {offsets = [0, 0], sizes = [8, 128], strides = [1, 1]} : vector<8x384xf32> to vector<8x128xf32>
    %277 = vector.extract_strided_slice %275 {offsets = [0, 128], sizes = [8, 128], strides = [1, 1]} : vector<8x384xf32> to vector<8x128xf32>
    %278 = vector.extract_strided_slice %275 {offsets = [0, 256], sizes = [8, 128], strides = [1, 1]} : vector<8x384xf32> to vector<8x128xf32>
    %279 = vector.extract_strided_slice %267 {offsets = [0, 384], sizes = [8, 128], strides = [1, 1]} : vector<8x512xf32> to vector<8x128xf32>
    %280 = math.tanh %279 : vector<8x128xf32>
    %281 = arith.mulf %277, %233 : vector<8x128xf32>
    %282 = arith.mulf %276, %280 : vector<8x128xf32>
    %283 = arith.addf %281, %282 : vector<8x128xf32>
    %284 = math.tanh %283 : vector<8x128xf32>
    %285 = arith.mulf %278, %284 : vector<8x128xf32>
    %c32 = arith.constant 32 : index
    %c0_97 = arith.constant 0 : index
    %286 = vector.load %arg13[%c32, %c0_97] : memref<64x128xf32, #tpu.memory_space<vmem>>, vector<8x128xf32>
    tpu.vector_store %arg13[%c32, %c0_97], %285 {strides = array<i32>} : memref<64x128xf32, #tpu.memory_space<vmem>>, vector<8x128xf32>,
    %287 = arith.truncf %260 : vector<8x128xf32> to vector<8x128xbf16>
    %288 = vector.extract_strided_slice %5 {offsets = [48, 0], sizes = [8, 512], strides = [1, 1]} : vector<64x512xf32> to vector<8x512xf32>
    %289 = arith.truncf %260 : vector<8x128xf32> to vector<8x128xbf16>
    %c0_98 = arith.constant 0 : index
    %c0_99 = arith.constant 0 : index
    %290 = vector.load %arg2[%c0_98, %c0_99] : memref<128x512xbf16, #tpu.memory_space<vmem>>, vector<128x512xbf16>
    %cst_100 = arith.constant dense<0.000000e+00> : vector<8x512xf32>
    %291 = tpu.matmul %289, %290, %cst_100 {dimension_numbers = #tpu.dot_dimension_numbers<[1], [0], [0], [1], [0, 0, 1, 1], [], []>} : vector<8x128xbf16>, vector<128x512xbf16>, vector<8x512xf32> -> vector<8x512xf32>
    %292 = arith.addf %288, %291 : vector<8x512xf32>
    %293 = vector.extract_strided_slice %292 {offsets = [0, 0], sizes = [8, 384], strides = [1, 1]} : vector<8x512xf32> to vector<8x384xf32>
    %cst_101 = arith.constant 5.000000e-01 : f32
    %294 = vector.broadcast %cst_101 : f32 to vector<8x384xf32>
    %295 = arith.mulf %294, %293 : vector<8x384xf32>
    %296 = math.tanh %295 : vector<8x384xf32>
    %cst_102 = arith.constant 5.000000e-01 : f32
    %297 = vector.broadcast %cst_102 : f32 to vector<8x384xf32>
    %298 = arith.mulf %297, %296 : vector<8x384xf32>
    %cst_103 = arith.constant 5.000000e-01 : f32
    %299 = vector.broadcast %cst_103 : f32 to vector<8x384xf32>
    %300 = arith.addf %298, %299 : vector<8x384xf32>
    %301 = vector.extract_strided_slice %300 {offsets = [0, 0], sizes = [8, 128], strides = [1, 1]} : vector<8x384xf32> to vector<8x128xf32>
    %302 = vector.extract_strided_slice %300 {offsets = [0, 128], sizes = [8, 128], strides = [1, 1]} : vector<8x384xf32> to vector<8x128xf32>
    %303 = vector.extract_strided_slice %300 {offsets = [0, 256], sizes = [8, 128], strides = [1, 1]} : vector<8x384xf32> to vector<8x128xf32>
    %304 = vector.extract_strided_slice %292 {offsets = [0, 384], sizes = [8, 128], strides = [1, 1]} : vector<8x512xf32> to vector<8x128xf32>
    %305 = math.tanh %304 : vector<8x128xf32>
    %306 = arith.mulf %302, %258 : vector<8x128xf32>
    %307 = arith.mulf %301, %305 : vector<8x128xf32>
    %308 = arith.addf %306, %307 : vector<8x128xf32>
    %309 = math.tanh %308 : vector<8x128xf32>
    %310 = arith.mulf %303, %309 : vector<8x128xf32>
    %311 = arith.truncf %285 : vector<8x128xf32> to vector<8x128xbf16>
    %312 = tpu.concatenate %287, %311 in 1 : vector<8x128xbf16>, vector<8x128xbf16> -> vector<8x256xbf16>
    %c0_104 = arith.constant 0 : index
    %c0_105 = arith.constant 0 : index
    %313 = vector.load %arg4[%c0_104, %c0_105] : memref<256x512xbf16, #tpu.memory_space<vmem>>, vector<256x512xbf16>
    %cst_106 = arith.constant dense<0.000000e+00> : vector<8x512xf32>
    %314 = tpu.matmul %312, %313, %cst_106 {dimension_numbers = #tpu.dot_dimension_numbers<[1], [0], [0], [1], [0, 0, 1, 1], [], []>} : vector<8x256xbf16>, vector<256x512xbf16>, vector<8x512xf32> -> vector<8x512xf32>
    %c0_107 = arith.constant 0 : index
    %c0_108 = arith.constant 0 : index
    %315 = vector.load %arg5[%c0_107, %c0_108] : memref<1x512xf32, #tpu.memory_space<vmem>>, vector<1x512xf32>
    %316 = vector.broadcast %315 : vector<1x512xf32> to vector<8x512xf32>
    %317 = arith.addf %314, %316 : vector<8x512xf32>
    %318 = vector.extract_strided_slice %317 {offsets = [0, 0], sizes = [8, 384], strides = [1, 1]} : vector<8x512xf32> to vector<8x384xf32>
    %cst_109 = arith.constant 5.000000e-01 : f32
    %319 = vector.broadcast %cst_109 : f32 to vector<8x384xf32>
    %320 = arith.mulf %319, %318 : vector<8x384xf32>
    %321 = math.tanh %320 : vector<8x384xf32>
    %cst_110 = arith.constant 5.000000e-01 : f32
    %322 = vector.broadcast %cst_110 : f32 to vector<8x384xf32>
    %323 = arith.mulf %322, %321 : vector<8x384xf32>
    %cst_111 = arith.constant 5.000000e-01 : f32
    %324 = vector.broadcast %cst_111 : f32 to vector<8x384xf32>
    %325 = arith.addf %323, %324 : vector<8x384xf32>
    %326 = vector.extract_strided_slice %325 {offsets = [0, 0], sizes = [8, 128], strides = [1, 1]} : vector<8x384xf32> to vector<8x128xf32>
    %327 = vector.extract_strided_slice %325 {offsets = [0, 128], sizes = [8, 128], strides = [1, 1]} : vector<8x384xf32> to vector<8x128xf32>
    %328 = vector.extract_strided_slice %325 {offsets = [0, 256], sizes = [8, 128], strides = [1, 1]} : vector<8x384xf32> to vector<8x128xf32>
    %329 = vector.extract_strided_slice %317 {offsets = [0, 384], sizes = [8, 128], strides = [1, 1]} : vector<8x512xf32> to vector<8x128xf32>
    %330 = math.tanh %329 : vector<8x128xf32>
    %331 = arith.mulf %327, %283 : vector<8x128xf32>
    %332 = arith.mulf %326, %330 : vector<8x128xf32>
    %333 = arith.addf %331, %332 : vector<8x128xf32>
    %334 = math.tanh %333 : vector<8x128xf32>
    %335 = arith.mulf %328, %334 : vector<8x128xf32>
    %c40 = arith.constant 40 : index
    %c0_112 = arith.constant 0 : index
    %336 = vector.load %arg13[%c40, %c0_112] : memref<64x128xf32, #tpu.memory_space<vmem>>, vector<8x128xf32>
    tpu.vector_store %arg13[%c40, %c0_112], %335 {strides = array<i32>} : memref<64x128xf32, #tpu.memory_space<vmem>>, vector<8x128xf32>,
    %337 = arith.truncf %310 : vector<8x128xf32> to vector<8x128xbf16>
    %338 = vector.extract_strided_slice %5 {offsets = [56, 0], sizes = [8, 512], strides = [1, 1]} : vector<64x512xf32> to vector<8x512xf32>
    %339 = arith.truncf %310 : vector<8x128xf32> to vector<8x128xbf16>
    %c0_113 = arith.constant 0 : index
    %c0_114 = arith.constant 0 : index
    %340 = vector.load %arg2[%c0_113, %c0_114] : memref<128x512xbf16, #tpu.memory_space<vmem>>, vector<128x512xbf16>
    %cst_115 = arith.constant dense<0.000000e+00> : vector<8x512xf32>
    %341 = tpu.matmul %339, %340, %cst_115 {dimension_numbers = #tpu.dot_dimension_numbers<[1], [0], [0], [1], [0, 0, 1, 1], [], []>} : vector<8x128xbf16>, vector<128x512xbf16>, vector<8x512xf32> -> vector<8x512xf32>
    %342 = arith.addf %338, %341 : vector<8x512xf32>
    %343 = vector.extract_strided_slice %342 {offsets = [0, 0], sizes = [8, 384], strides = [1, 1]} : vector<8x512xf32> to vector<8x384xf32>
    %cst_116 = arith.constant 5.000000e-01 : f32
    %344 = vector.broadcast %cst_116 : f32 to vector<8x384xf32>
    %345 = arith.mulf %344, %343 : vector<8x384xf32>
    %346 = math.tanh %345 : vector<8x384xf32>
    %cst_117 = arith.constant 5.000000e-01 : f32
    %347 = vector.broadcast %cst_117 : f32 to vector<8x384xf32>
    %348 = arith.mulf %347, %346 : vector<8x384xf32>
    %cst_118 = arith.constant 5.000000e-01 : f32
    %349 = vector.broadcast %cst_118 : f32 to vector<8x384xf32>
    %350 = arith.addf %348, %349 : vector<8x384xf32>
    %351 = vector.extract_strided_slice %350 {offsets = [0, 0], sizes = [8, 128], strides = [1, 1]} : vector<8x384xf32> to vector<8x128xf32>
    %352 = vector.extract_strided_slice %350 {offsets = [0, 128], sizes = [8, 128], strides = [1, 1]} : vector<8x384xf32> to vector<8x128xf32>
    %353 = vector.extract_strided_slice %350 {offsets = [0, 256], sizes = [8, 128], strides = [1, 1]} : vector<8x384xf32> to vector<8x128xf32>
    %354 = vector.extract_strided_slice %342 {offsets = [0, 384], sizes = [8, 128], strides = [1, 1]} : vector<8x512xf32> to vector<8x128xf32>
    %355 = math.tanh %354 : vector<8x128xf32>
    %356 = arith.mulf %352, %308 : vector<8x128xf32>
    %357 = arith.mulf %351, %355 : vector<8x128xf32>
    %358 = arith.addf %356, %357 : vector<8x128xf32>
    %359 = math.tanh %358 : vector<8x128xf32>
    %360 = arith.mulf %353, %359 : vector<8x128xf32>
    %361 = arith.truncf %335 : vector<8x128xf32> to vector<8x128xbf16>
    %362 = tpu.concatenate %337, %361 in 1 : vector<8x128xbf16>, vector<8x128xbf16> -> vector<8x256xbf16>
    %c0_119 = arith.constant 0 : index
    %c0_120 = arith.constant 0 : index
    %363 = vector.load %arg4[%c0_119, %c0_120] : memref<256x512xbf16, #tpu.memory_space<vmem>>, vector<256x512xbf16>
    %cst_121 = arith.constant dense<0.000000e+00> : vector<8x512xf32>
    %364 = tpu.matmul %362, %363, %cst_121 {dimension_numbers = #tpu.dot_dimension_numbers<[1], [0], [0], [1], [0, 0, 1, 1], [], []>} : vector<8x256xbf16>, vector<256x512xbf16>, vector<8x512xf32> -> vector<8x512xf32>
    %c0_122 = arith.constant 0 : index
    %c0_123 = arith.constant 0 : index
    %365 = vector.load %arg5[%c0_122, %c0_123] : memref<1x512xf32, #tpu.memory_space<vmem>>, vector<1x512xf32>
    %366 = vector.broadcast %365 : vector<1x512xf32> to vector<8x512xf32>
    %367 = arith.addf %364, %366 : vector<8x512xf32>
    %368 = vector.extract_strided_slice %367 {offsets = [0, 0], sizes = [8, 384], strides = [1, 1]} : vector<8x512xf32> to vector<8x384xf32>
    %cst_124 = arith.constant 5.000000e-01 : f32
    %369 = vector.broadcast %cst_124 : f32 to vector<8x384xf32>
    %370 = arith.mulf %369, %368 : vector<8x384xf32>
    %371 = math.tanh %370 : vector<8x384xf32>
    %cst_125 = arith.constant 5.000000e-01 : f32
    %372 = vector.broadcast %cst_125 : f32 to vector<8x384xf32>
    %373 = arith.mulf %372, %371 : vector<8x384xf32>
    %cst_126 = arith.constant 5.000000e-01 : f32
    %374 = vector.broadcast %cst_126 : f32 to vector<8x384xf32>
    %375 = arith.addf %373, %374 : vector<8x384xf32>
    %376 = vector.extract_strided_slice %375 {offsets = [0, 0], sizes = [8, 128], strides = [1, 1]} : vector<8x384xf32> to vector<8x128xf32>
    %377 = vector.extract_strided_slice %375 {offsets = [0, 128], sizes = [8, 128], strides = [1, 1]} : vector<8x384xf32> to vector<8x128xf32>
    %378 = vector.extract_strided_slice %375 {offsets = [0, 256], sizes = [8, 128], strides = [1, 1]} : vector<8x384xf32> to vector<8x128xf32>
    %379 = vector.extract_strided_slice %367 {offsets = [0, 384], sizes = [8, 128], strides = [1, 1]} : vector<8x512xf32> to vector<8x128xf32>
    %380 = math.tanh %379 : vector<8x128xf32>
    %381 = arith.mulf %377, %333 : vector<8x128xf32>
    %382 = arith.mulf %376, %380 : vector<8x128xf32>
    %383 = arith.addf %381, %382 : vector<8x128xf32>
    %384 = math.tanh %383 : vector<8x128xf32>
    %385 = arith.mulf %378, %384 : vector<8x128xf32>
    %c48 = arith.constant 48 : index
    %c0_127 = arith.constant 0 : index
    %386 = vector.load %arg13[%c48, %c0_127] : memref<64x128xf32, #tpu.memory_space<vmem>>, vector<8x128xf32>
    tpu.vector_store %arg13[%c48, %c0_127], %385 {strides = array<i32>} : memref<64x128xf32, #tpu.memory_space<vmem>>, vector<8x128xf32>,
    %387 = arith.truncf %360 : vector<8x128xf32> to vector<8x128xbf16>
    %388 = arith.truncf %385 : vector<8x128xf32> to vector<8x128xbf16>
    %389 = tpu.concatenate %387, %388 in 1 : vector<8x128xbf16>, vector<8x128xbf16> -> vector<8x256xbf16>
    %c0_128 = arith.constant 0 : index
    %c0_129 = arith.constant 0 : index
    %390 = vector.load %arg4[%c0_128, %c0_129] : memref<256x512xbf16, #tpu.memory_space<vmem>>, vector<256x512xbf16>
    %cst_130 = arith.constant dense<0.000000e+00> : vector<8x512xf32>
    %391 = tpu.matmul %389, %390, %cst_130 {dimension_numbers = #tpu.dot_dimension_numbers<[1], [0], [0], [1], [0, 0, 1, 1], [], []>} : vector<8x256xbf16>, vector<256x512xbf16>, vector<8x512xf32> -> vector<8x512xf32>
    %c0_131 = arith.constant 0 : index
    %c0_132 = arith.constant 0 : index
    %392 = vector.load %arg5[%c0_131, %c0_132] : memref<1x512xf32, #tpu.memory_space<vmem>>, vector<1x512xf32>
    %393 = vector.broadcast %392 : vector<1x512xf32> to vector<8x512xf32>
    %394 = arith.addf %391, %393 : vector<8x512xf32>
    %395 = vector.extract_strided_slice %394 {offsets = [0, 0], sizes = [8, 384], strides = [1, 1]} : vector<8x512xf32> to vector<8x384xf32>
    %cst_133 = arith.constant 5.000000e-01 : f32
    %396 = vector.broadcast %cst_133 : f32 to vector<8x384xf32>
    %397 = arith.mulf %396, %395 : vector<8x384xf32>
    %398 = math.tanh %397 : vector<8x384xf32>
    %cst_134 = arith.constant 5.000000e-01 : f32
    %399 = vector.broadcast %cst_134 : f32 to vector<8x384xf32>
    %400 = arith.mulf %399, %398 : vector<8x384xf32>
    %cst_135 = arith.constant 5.000000e-01 : f32
    %401 = vector.broadcast %cst_135 : f32 to vector<8x384xf32>
    %402 = arith.addf %400, %401 : vector<8x384xf32>
    %403 = vector.extract_strided_slice %402 {offsets = [0, 0], sizes = [8, 128], strides = [1, 1]} : vector<8x384xf32> to vector<8x128xf32>
    %404 = vector.extract_strided_slice %402 {offsets = [0, 128], sizes = [8, 128], strides = [1, 1]} : vector<8x384xf32> to vector<8x128xf32>
    %405 = vector.extract_strided_slice %402 {offsets = [0, 256], sizes = [8, 128], strides = [1, 1]} : vector<8x384xf32> to vector<8x128xf32>
    %406 = vector.extract_strided_slice %394 {offsets = [0, 384], sizes = [8, 128], strides = [1, 1]} : vector<8x512xf32> to vector<8x128xf32>
    %407 = math.tanh %406 : vector<8x128xf32>
    %408 = arith.mulf %404, %383 : vector<8x128xf32>
    %409 = arith.mulf %403, %407 : vector<8x128xf32>
    %410 = arith.addf %408, %409 : vector<8x128xf32>
    %411 = math.tanh %410 : vector<8x128xf32>
    %412 = arith.mulf %405, %411 : vector<8x128xf32>
    %c56 = arith.constant 56 : index
    %c0_136 = arith.constant 0 : index
    %413 = vector.load %arg13[%c56, %c0_136] : memref<64x128xf32, #tpu.memory_space<vmem>>, vector<8x128xf32>
    tpu.vector_store %arg13[%c56, %c0_136], %412 {strides = array<i32>} : memref<64x128xf32, #tpu.memory_space<vmem>>, vector<8x128xf32>,
    %c0_137 = arith.constant 0 : index
    %c0_138 = arith.constant 0 : index
    %c0_139 = arith.constant 0 : index
    %414 = vector.load %arg11[%c0_137, %c0_138, %c0_139] : memref<2x8x128xf32, #tpu.memory_space<vmem>>, vector<1x8x128xf32>
    %415 = vector.shape_cast %414 : vector<1x8x128xf32> to vector<8x128xf32>
    %416 = vector.shape_cast %360 : vector<8x128xf32> to vector<1x8x128xf32>
    tpu.vector_store %arg11[%c0_137, %c0_138, %c0_139], %416 {strides = array<i32>} : memref<2x8x128xf32, #tpu.memory_space<vmem>>, vector<1x8x128xf32>,
    %c0_140 = arith.constant 0 : index
    %c0_141 = arith.constant 0 : index
    %c0_142 = arith.constant 0 : index
    %417 = vector.load %arg12[%c0_140, %c0_141, %c0_142] : memref<2x8x128xf32, #tpu.memory_space<vmem>>, vector<1x8x128xf32>
    %418 = vector.shape_cast %417 : vector<1x8x128xf32> to vector<8x128xf32>
    %419 = vector.shape_cast %358 : vector<8x128xf32> to vector<1x8x128xf32>
    tpu.vector_store %arg12[%c0_140, %c0_141, %c0_142], %419 {strides = array<i32>} : memref<2x8x128xf32, #tpu.memory_space<vmem>>, vector<1x8x128xf32>,
    %c1_143 = arith.constant 1 : index
    %c0_144 = arith.constant 0 : index
    %c0_145 = arith.constant 0 : index
    %420 = vector.load %arg11[%c1_143, %c0_144, %c0_145] : memref<2x8x128xf32, #tpu.memory_space<vmem>>, vector<1x8x128xf32>
    %421 = vector.shape_cast %420 : vector<1x8x128xf32> to vector<8x128xf32>
    %422 = vector.shape_cast %412 : vector<8x128xf32> to vector<1x8x128xf32>
    tpu.vector_store %arg11[%c1_143, %c0_144, %c0_145], %422 {strides = array<i32>} : memref<2x8x128xf32, #tpu.memory_space<vmem>>, vector<1x8x128xf32>,
    %c1_146 = arith.constant 1 : index
    %c0_147 = arith.constant 0 : index
    %c0_148 = arith.constant 0 : index
    %423 = vector.load %arg12[%c1_146, %c0_147, %c0_148] : memref<2x8x128xf32, #tpu.memory_space<vmem>>, vector<1x8x128xf32>
    %424 = vector.shape_cast %423 : vector<1x8x128xf32> to vector<8x128xf32>
    %425 = vector.shape_cast %410 : vector<8x128xf32> to vector<1x8x128xf32>
    tpu.vector_store %arg12[%c1_146, %c0_147, %c0_148], %425 {strides = array<i32>} : memref<2x8x128xf32, #tpu.memory_space<vmem>>, vector<1x8x128xf32>,
    %c0_149 = arith.constant 0 : index
    %c0_150 = arith.constant 0 : index
    %426 = vector.load %arg13[%c0_149, %c0_150] : memref<64x128xf32, #tpu.memory_space<vmem>>, vector<64x128xf32>
    %427 = arith.truncf %426 : vector<64x128xf32> to vector<64x128xbf16>
    %c0_151 = arith.constant 0 : index
    %c0_152 = arith.constant 0 : index
    %428 = vector.load %arg6[%c0_151, %c0_152] : memref<128x256xbf16, #tpu.memory_space<vmem>>, vector<128x256xbf16>
    %cst_153 = arith.constant dense<0.000000e+00> : vector<64x256xf32>
    %429 = tpu.matmul %427, %428, %cst_153 {dimension_numbers = #tpu.dot_dimension_numbers<[1], [0], [0], [1], [0, 0, 1, 1], [], []>} : vector<64x128xbf16>, vector<128x256xbf16>, vector<64x256xf32> -> vector<64x256xf32>
    %c0_154 = arith.constant 0 : index
    %c0_155 = arith.constant 0 : index
    %430 = vector.load %arg7[%c0_154, %c0_155] : memref<1x256xf32, #tpu.memory_space<vmem>>, vector<1x256xf32>
    %431 = vector.broadcast %430 : vector<1x256xf32> to vector<64x256xf32>
    %432 = arith.addf %429, %431 : vector<64x256xf32>
    %c0_156 = arith.constant 0 : index
    %c0_157 = arith.constant 0 : index
    %433 = vector.load %arg10[%c0_156, %c0_157] : memref<64x256xf32, #tpu.memory_space<vmem>>, vector<64x256xf32>
    tpu.vector_store %arg10[%c0_156, %c0_157], %432 {strides = array<i32>} : memref<64x256xf32, #tpu.memory_space<vmem>>, vector<64x256xf32>,
    return
  }
}

</mosaic_0001>

<bundles_post_ra>
// kernel: lstm_model_forward.1
= control target key start
LH: loop header
LB: loop body
LE: loop exit
PB: predicated region body
PF: predicated region fallthrough
CT: control target
= control target key end

     0   :  { %18 = vsyncpa [#allocation4], 0  ;;  %s10825_s0 = inlined_call_operand.vmem [shape: bf16[64,128], index: 0, kind: input, shape index: {}]   ;;  %s10826_s1 = inlined_call_operand.vmem [shape: bf16[128,512], index: 1, kind: input, shape index: {}]   ;;  %s10827_s2 = inlined_call_operand.hbm [shape: bf16[128,512], index: 2, kind: input, shape index: {}]   ;;  %s10828_s3 = inlined_call_operand.hbm [shape: f32[1,512], index: 3, kind: input, shape index: {}]   ;;  %s10829_s4 = inlined_call_operand.hbm [shape: bf16[256,512], index: 4, kind: input, shape index: {}]   ;;  %s10830_s5 = inlined_call_operand.hbm [shape: f32[1,512], index: 5, kind: input, shape index: {}]   ;;  %s10831_s6 = inlined_call_operand.vmem [shape: bf16[128,256], index: 6, kind: input, shape index: {}]   ;;  %s10832_s7 = inlined_call_operand.hbm [shape: f32[1,256], index: 7, kind: input, shape index: {}]   ;;  %s10833_s8 = inlined_call_operand.vmem [shape: f32[2,8,128], index: 8, kind: input, shape index: {}]   ;;  %s10834_s9 = inlined_call_operand.vmem [shape: f32[2,8,128], index: 9, kind: input, shape index: {}]   ;;  %s10835_s10 = inlined_call_operand.vmem [shape: f32[64,256], index: 10, kind: output, shape index: {0}]   ;;  %s10836_s11 = inlined_call_operand.hbm [shape: f32[2,8,128], index: 11, kind: output, shape index: {1}]   ;;  %s10837_s12 = inlined_call_operand.hbm [shape: f32[2,8,128], index: 12, kind: output, shape index: {2}]  }
   0x1   :  { %19 = vsyncpa [#allocation7], 0 }
   0x2   :  { %20 = vsyncpa [#allocation10], 0 }
   0x3   :  { %21 = vsyncpa [#allocation5], 0 }
   0x4   :  { %22 = vsyncpa [#allocation14], 0  ;;  %s8784_s21 = smov [#allocation6]   ;;  %s8785_s23 = smov [#allocation9]  }
   0x5   :  { %s45_s22 = sshll.u32 %s8784_s21, 4  ;;  %s67_s24 = sshll.u32 %s8785_s23, 4  ;;  %s46_s22 = int_to_ptr.vmem [resolvable:$true] %s45_s22  ;;  %s68_s24 = int_to_ptr.vmem [resolvable:$true] %s67_s24 }
   0x6   :  { %s8642_s25 = scalar_lea.vmem %s46_s22, 64  ;;  %p8647_p1 = scmp.lt.s32.totalorder %s46_s22, %s46_s22 }
   0x7   :  { %p8643_p0 = scmp.ne.s32.totalorder %s46_s22, %s8642_s25  ;;  %p8648_p2 = scmp.lt.s32.totalorder %s8642_s25, %s8642_s25 }
   0x9   :  { %p8649_p3 = por %p8648_p2, %p8647_p1 }
   0xb   :  { %p8650_p4 = pnand %p8649_p3, %p8643_p0 }
   0xd   :  { %8653 = shalt.err (!%p8650_p4)
}
   0xe   :  { %48 = dma.hbm_to_vmem [thread:$0]  %s10828_s3, 64, %s46_s22, [#allocation7]  }
   0xf   :  { %s8662_s28 = scalar_lea.vmem %s68_s24, 64  ;;  %p8667_p6 = scmp.lt.s32.totalorder %s68_s24, %s68_s24 }
  0x10   :  { %p8663_p5 = scmp.ne.s32.totalorder %s68_s24, %s8662_s28  ;;  %p8668_p7 = scmp.lt.s32.totalorder %s8662_s28, %s8662_s28 }
  0x12   :  { %p8669_p8 = por %p8668_p7, %p8667_p6 }
  0x14   :  { %p8670_p9 = pnand %p8669_p8, %p8663_p5 }
  0x16   :  { %8673 = shalt.err (!%p8670_p9)
}
  0x17   :  { %70 = dma.hbm_to_vmem [thread:$0]  %s10830_s5, 64, %s68_s24, [#allocation10]  }
  0x18   :  { %s8786_s13 = smov [#allocation3]  }
  0x19   :  { %s32_s14 = sshll.u32 %s8786_s13, 4  ;;  %s33_s14 = int_to_ptr.vmem [resolvable:$true] %s32_s14 }
  0x1a   :  { %s8682_s15 = scalar_lea.vmem %s33_s14, 4096  ;;  %p8687_p11 = scmp.lt.s32.totalorder %s33_s14, %s33_s14 }
  0x1b   :  { %p8683_p10 = scmp.ne.s32.totalorder %s33_s14, %s8682_s15  ;;  %p8688_p12 = scmp.lt.s32.totalorder %s8682_s15, %s8682_s15 }
  0x1d   :  { %p8689_p13 = por %p8688_p12, %p8687_p11 }
  0x1f   :  { %p8690_p0 = pnand %p8689_p13, %p8683_p10 }
  0x21   :  { %8693 = shalt.err (!%p8690_p0)
}
  0x22   :  { %s8787_s3 = smov 256   ;;  %s8788_s16 = smov 16  }
  0x23   :  { %38 = dma.hbm_to_vmem [thread:$0]  %s10827_s2, 4096, %s33_s14, [#allocation4], %s8787_s3, %s8787_s3, %s8788_s16  }
  0x24   :  { %s8789_s19 = smov [#allocation8]   ;;  %s8790_s5 = smov [#allocation11]  }
  0x25   :  { %s54_s20 = sshll.u32 %s8789_s19, 4  ;;  %s79_s21 = sshll.u32 %s8790_s5, 4  ;;  %s55_s20 = int_to_ptr.vmem [resolvable:$true] %s54_s20  ;;  %s80_s21 = int_to_ptr.vmem [resolvable:$true] %s79_s21 }
  0x26   :  { %s8702_s22 = scalar_lea.vmem %s55_s20, 8192  ;;  %p8707_p2 = scmp.lt.s32.totalorder %s55_s20, %s55_s20 }
  0x27   :  { %p8703_p1 = scmp.ne.s32.totalorder %s55_s20, %s8702_s22  ;;  %p8708_p3 = scmp.lt.s32.totalorder %s8702_s22, %s8702_s22 }
  0x29   :  { %p8709_p4 = por %p8708_p3, %p8707_p2 }
  0x2b   :  { %p8710_p5 = pnand %p8709_p4, %p8703_p1 }
  0x2d   :  { %8713 = shalt.err (!%p8710_p5)
}
  0x2e   :  { %60 = dma.hbm_to_vmem [thread:$0]  %s10829_s4, 8192, %s55_s20, [#allocation7], %s8787_s3, %s8787_s3, %s8788_s16  }
  0x2f   :  { %s8722_s25 = scalar_lea.vmem %s80_s21, 32  ;;  %p8727_p7 = scmp.lt.s32.totalorder %s80_s21, %s80_s21 }
  0x30   :  { %p8723_p6 = scmp.ne.s32.totalorder %s80_s21, %s8722_s25  ;;  %p8728_p8 = scmp.lt.s32.totalorder %s8722_s25, %s8722_s25 }
  0x32   :  { %p8729_p9 = por %p8728_p8, %p8727_p7 }
  0x34   :  { %p8730_p10 = pnand %p8729_p9, %p8723_p6 }
  0x36   :  { %8733 = shalt.err (!%p8730_p10)
}
  0x37   :  { %82 = dma.hbm_to_vmem [thread:$0]  %s10832_s7, 32, %s80_s21, [#allocation10]  }
  0x38   :  { %8774 = dma.done.wait [#allocation4], 4096  }
  0x39   :  { %8775 = vsyncadd [#allocation4], 4294963200 }
  0x3a   :  { %8776 = dma.done.wait [#allocation7], 8256  }
  0x3b   :  { %8777 = vsyncadd [#allocation7], 4294959040 }
  0x3c   :  { %8778 = dma.done.wait [#allocation10], 96  }
  0x3d   :  { %8779 = vsyncadd [#allocation10], 4294967200  ;;  %v10838_v0 = vmov 0   ;;  %v7806_v1 = vld [vmem:[%s10826_s1 + $0xe4] ss:$16 sps:$4 sm:$0xff]   ;;  %v7861_v41 = vld [vmem:[%s10825_s0 + $0x8] sm:$0xff]  }
  0x3e   :  { %381 = vmatprep.mubr.bf16.mxu1 %v10838_v0  ;;  %726 = vmatprep.mubr.bf16.mxu0 %v10838_v0  ;;  %v7808_v2 = vld [vmem:[%s10826_s1 + $0xe0] ss:$16 sps:$4 sm:$0xff]   ;;  %v8884_v3 = vld [vmem:[#allocation3 + $0xe4] ss:$16 sps:$4 sm:$0xff]   ;;  %v7857_v33 = vld [vmem:[%s10826_s1 + $0xec] ss:$16 sps:$4 sm:$0xff]  }
  0x3f   :  { %349 = vmatprep.subr.bf16.mxu1 %v7806_v1  ;;  %v8886_v4 = vld [vmem:[#allocation3 + $0xe0] ss:$16 sps:$4 sm:$0xff]   ;;  %v7812_v5 = vld [vmem:[%s10826_s1 + $0xc4] ss:$16 sps:$4 sm:$0xff]   ;;  %694 = vmatprep.subr.bf16.mxu0 %v8884_v3  ;;  %v7855_v36 = vld [vmem:[%s10826_s1 + $0xe8] ss:$16 sps:$4 sm:$0xff]  }
  0x40   :  { %350 = vmatpush1.bf16.msra.mxu1 %v7808_v2  ;;  %v7814_v6 = vld [vmem:[%s10826_s1 + $0xc0] ss:$16 sps:$4 sm:$0xff]   ;;  %v8895_v7 = vld [vmem:[#allocation3 + $0xc4] ss:$16 sps:$4 sm:$0xff]   ;;  %695 = vmatpush1.bf16.msra.mxu0 %v8886_v4  ;;  %v7860_v38 = vld [vmem:[%s10826_s1 + $0xcc] ss:$16 sps:$4 sm:$0xff]  }
  0x41   :  { %351 = vmatprep.subr.bf16.mxu1 %v7812_v5  ;;  %v8898_v8 = vld [vmem:[#allocation3 + $0xc0] ss:$16 sps:$4 sm:$0xff]   ;;  %696 = vmatprep.subr.bf16.mxu0 %v8895_v7  ;;  %v7818_v9 = vld [vmem:[%s10826_s1 + $0xa4] ss:$16 sps:$4 sm:$0xff]   ;;  %v7858_v39 = vld [vmem:[%s10826_s1 + $0xc8] ss:$16 sps:$4 sm:$0xff]  }
  0x42   :  { %v7820_v10 = vld [vmem:[%s10826_s1 + $0xa0] ss:$16 sps:$4 sm:$0xff]   ;;  %v8907_v11 = vld [vmem:[#allocation3 + $0xa4] ss:$16 sps:$4 sm:$0xff]   ;;  %v7864_v40 = vld [vmem:[%s10826_s1 + $0xac] ss:$16 sps:$4 sm:$0xff]  }
  0x43   :  { %v7824_v12 = vld [vmem:[%s10826_s1 + $0x84] ss:$16 sps:$4 sm:$0xff]   ;;  %v8913_v13 = vld [vmem:[#allocation3 + $0xa0] ss:$16 sps:$4 sm:$0xff]   ;;  %v7862_v42 = vld [vmem:[%s10826_s1 + $0xa8] ss:$16 sps:$4 sm:$0xff]  }
  0x44   :  { %352 = vmatpush1.bf16.msra.mxu1 %v7814_v6  ;;  %697 = vmatpush1.bf16.msra.mxu0 %v8898_v8  ;;  %v8916_v14 = vld [vmem:[#allocation3 + $0x84] ss:$16 sps:$4 sm:$0xff]   ;;  %v7826_v15 = vld [vmem:[%s10826_s1 + $0x80] ss:$16 sps:$4 sm:$0xff]   ;;  %v7867_v43 = vld [vmem:[%s10826_s1 + $0x8c] ss:$16 sps:$4 sm:$0xff]  }
  0x45   :  { %353 = vmatprep.subr.bf16.mxu1 %v7818_v9  ;;  %698 = vmatprep.subr.bf16.mxu0 %v8907_v11  ;;  %v7830_v16 = vld [vmem:[%s10826_s1 + $0x64] ss:$16 sps:$4 sm:$0xff]   ;;  %v8925_v17 = vld [vmem:[#allocation3 + $0x80] ss:$16 sps:$4 sm:$0xff]   ;;  %v7865_v44 = vld [vmem:[%s10826_s1 + $0x88] ss:$16 sps:$4 sm:$0xff]  }
  0x46   :  { %v8928_v18 = vld [vmem:[#allocation3 + $0x64] ss:$16 sps:$4 sm:$0xff]   ;;  %v7832_v19 = vld [vmem:[%s10826_s1 + $0x60] ss:$16 sps:$4 sm:$0xff]   ;;  %v7871_v45 = vld [vmem:[%s10826_s1 + $0x6c] ss:$16 sps:$4 sm:$0xff]  }
  0x47   :  { %v7836_v20 = vld [vmem:[%s10826_s1 + $0x44] ss:$16 sps:$4 sm:$0xff]   ;;  %v8937_v21 = vld [vmem:[#allocation3 + $0x60] ss:$16 sps:$4 sm:$0xff]   ;;  %v7869_v47 = vld [vmem:[%s10826_s1 + $0x68] ss:$16 sps:$4 sm:$0xff]  }
  0x48   :  { %354 = vmatpush1.bf16.msra.mxu1 %v7820_v10  ;;  %699 = vmatpush1.bf16.msra.mxu0 %v8913_v13  ;;  %v8940_v22 = vld [vmem:[#allocation3 + $0x44] ss:$16 sps:$4 sm:$0xff]   ;;  %v7838_v23 = vld [vmem:[%s10826_s1 + $0x40] ss:$16 sps:$4 sm:$0xff]   ;;  %v7874_v48 = vld [vmem:[%s10826_s1 + $0x4c] ss:$16 sps:$4 sm:$0xff]   ;;  %v145_v10 = vlaneseq }
  0x49   :  { %355 = vmatprep.subr.bf16.mxu1 %v7824_v12  ;;  %700 = vmatprep.subr.bf16.mxu0 %v8916_v14  ;;  %v7842_v24 = vld [vmem:[%s10826_s1 + $0x24] ss:$16 sps:$4 sm:$0xff]   ;;  %v8949_v25 = vld [vmem:[#allocation3 + $0x40] ss:$16 sps:$4 sm:$0xff]   ;;  %v7872_v49 = vld [vmem:[%s10826_s1 + $0x48] ss:$16 sps:$4 sm:$0xff]  }
  0x4a   :  { %v8952_v26 = vld [vmem:[#allocation3 + $0x24] ss:$16 sps:$4 sm:$0xff]   ;;  %v7844_v27 = vld [vmem:[%s10826_s1 + $0x20] ss:$16 sps:$4 sm:$0xff]   ;;  %v7878_v50 = vld [vmem:[%s10826_s1 + $0x2c] ss:$16 sps:$4 sm:$0xff]  }
  0x4b   :  { %v7848_v28 = vld [vmem:[%s10826_s1 + $0x4] ss:$16 sps:$4 sm:$0xff]   ;;  %v8961_v29 = vld [vmem:[#allocation3 + $0x20] ss:$16 sps:$4 sm:$0xff]   ;;  %v7875_v51 = vld [vmem:[%s10825_s0 + $0x18] sm:$0xff]   ;;  %s8792_s15 = smov [#allocation12]  }
  0x4c   :  { %356 = vmatpush1.bf16.msra.mxu1 %v7826_v15  ;;  %701 = vmatpush1.bf16.msra.mxu0 %v8925_v17  ;;  %v8964_v30 = vld [vmem:[#allocation3 + $0x4] ss:$16 sps:$4 sm:$0xff]   ;;  %v7850_v31 = vld [vmem:[%s10826_s1] ss:$16 sps:$4 sm:$0xff]   ;;  %v7876_v52 = vld [vmem:[%s10826_s1 + $0x28] ss:$16 sps:$4 sm:$0xff]  }
  0x4d   :  { %357 = vmatprep.subr.bf16.mxu1 %v7830_v16  ;;  %702 = vmatprep.subr.bf16.mxu0 %v8928_v18  ;;  %v8969_v32 = vld [vmem:[#allocation3] ss:$16 sps:$4 sm:$0xff]   ;;  %v7881_v53 = vld [vmem:[%s10826_s1 + $0xc] ss:$16 sps:$4 sm:$0xff]   ;;  %v7879_v54 = vld [vmem:[%s10826_s1 + $0x8] ss:$16 sps:$4 sm:$0xff]  }
  0x4e   :  { %v495_v34 = vld [vmem:[%s10833_s8] sm:$0xff]  ;;  %v7868_v46 = vld [vmem:[%s10825_s0 + $0x10] sm:$0xff]   ;;  %v7884_v55 = vld [vmem:[#allocation3 + $0xec] ss:$16 sps:$4 sm:$0xff]   ;;  %s6972_s3 = sshll.u32 %s8792_s15, 4  ;;  %s6973_s3 = int_to_ptr.vmem [resolvable:$true] %s6972_s3 }
  0x4f   :  { %v8982_v35 = vld [vmem:[%s10825_s0] sm:$0xff]   ;;  %v8987_v37 = vpack.c.bf16 %v495_v34, %v495_v34  ;;  %v7882_v56 = vld [vmem:[#allocation3 + $0xe8] ss:$16 sps:$4 sm:$0xff]   ;;  %v7887_v57 = vld [vmem:[#allocation3 + $0xcc] ss:$16 sps:$4 sm:$0xff]   ;;  %s8734_s16 = scalar_lea.vmem %s6973_s3, 256  ;;  %p8739_p12 = scmp.lt.s32.totalorder %s6973_s3, %s6973_s3 }
  0x50   :  { %358 = vmatpush1.bf16.msra.mxu1 %v7832_v19  ;;  %703 = vmatpush1.bf16.msra.mxu0 %v8937_v21  ;;  %v7885_v58 = vld [vmem:[#allocation3 + $0xc8] ss:$16 sps:$4 sm:$0xff]   ;;  %v7890_v59 = vld [vmem:[#allocation3 + $0xac] ss:$16 sps:$4 sm:$0xff]   ;;  %v9073_v9 = vld [vmem:[#allocation8 + $0xec] ss:$16 sps:$4 sm:$0xff]   ;;  %p8735_p11 = scmp.ne.s32.totalorder %s6973_s3, %s8734_s16  ;;  %p8740_p13 = scmp.lt.s32.totalorder %s8734_s16, %s8734_s16 }
  0x51   :  { %359 = vmatprep.subr.bf16.mxu1 %v7836_v20  ;;  %704 = vmatprep.subr.bf16.mxu0 %v8940_v22  ;;  %v7888_v60 = vld [vmem:[#allocation3 + $0xa8] ss:$16 sps:$4 sm:$0xff]   ;;  %v7893_v61 = vld [vmem:[#allocation3 + $0x8c] ss:$16 sps:$4 sm:$0xff]  }
  0x52   :  { %v7891_v62 = vld [vmem:[#allocation3 + $0x88] ss:$16 sps:$4 sm:$0xff]   ;;  %v7896_v63 = vld [vmem:[#allocation3 + $0x6c] ss:$16 sps:$4 sm:$0xff]   ;;  %p8741_p0 = por %p8740_p13, %p8739_p12 }
  0x53   :  { %v7894_v1 = vld [vmem:[#allocation3 + $0x68] ss:$16 sps:$4 sm:$0xff]   ;;  %v7899_v2 = vld [vmem:[#allocation3 + $0x4c] ss:$16 sps:$4 sm:$0xff]  }
  0x54   :  { %360 = vmatpush1.bf16.msra.mxu1 %v7838_v23  ;;  %705 = vmatpush1.bf16.msra.mxu0 %v8949_v25  ;;  %v7900_v5 = vld [vmem:[#allocation3 + $0x28] ss:$16 sps:$4 sm:$0xff]   ;;  %v7905_v6 = vld [vmem:[#allocation3 + $0xc] ss:$16 sps:$4 sm:$0xff]   ;;  %p8742_p1 = pnand %p8741_p0, %p8735_p11 }
  0x55   :  { %361 = vmatprep.subr.bf16.mxu1 %v7842_v24  ;;  %706 = vmatprep.subr.bf16.mxu0 %v8952_v26 }
  0x58   :  { %362 = vmatpush1.bf16.msra.mxu1 %v7844_v27  ;;  %707 = vmatpush1.bf16.msra.mxu0 %v8961_v29 }
  0x59   :  { %363 = vmatprep.subr.bf16.mxu1 %v7848_v28  ;;  %708 = vmatprep.subr.bf16.mxu0 %v8964_v30 }
  0x5c   :  { %364 = vmatpush1.bf16.msra.mxu1 %v7850_v31  ;;  %709 = vmatpush1.bf16.msra.mxu0 %v8969_v32 }
  0x5d   :  { %422 = vmatprep.subr.bf16.mxu1 %v7857_v33  ;;  %799 = vmatprep.subr.bf16.mxu0 %v8884_v3  ;;  %v7897_v3 = vld [vmem:[#allocation3 + $0x48] ss:$16 sps:$4 sm:$0xff]  }
  0x5f   :  { %382 = vmatmul.mubr.bf16.vlgmr.msra.gmra.mxu1 %v8982_v35  ;;  %727 = vmatmul.mubr.bf16.vlgmr.msra.gmra.mxu0 %v8987_v37 }
  0x60   :  { %423 = vmatpush1.bf16.msra.mxu1 %v7855_v36  ;;  %391 = vmatprep.mubr.bf16.mxu1 %v10838_v0 }
  0x61   :  { %424 = vmatprep.subr.bf16.mxu1 %v7860_v38  ;;  %800 = vmatpush1.bf16.msra.mxu0 %v8886_v4  ;;  %v7902_v4 = vld [vmem:[#allocation3 + $0x2c] ss:$16 sps:$4 sm:$0xff]  }
  0x62   :  { %831 = vmatprep.mubr.bf16.mxu0 %v10838_v0  ;;  %801 = vmatprep.subr.bf16.mxu0 %v8895_v7  ;;  %v7903_v7 = vld [vmem:[#allocation3 + $0x8] ss:$16 sps:$4 sm:$0xff]  }
  0x64   :  { %425 = vmatpush1.bf16.msra.mxu1 %v7858_v39 }
  0x65   :  { %426 = vmatprep.subr.bf16.mxu1 %v7864_v40  ;;  %802 = vmatpush1.bf16.msra.mxu0 %v8898_v8  ;;  %v9071_v8 = vld [vmem:[#allocation8 + $0xe4] ss:$16 sps:$4 sm:$0xff]  }
  0x66   :  { %803 = vmatprep.subr.bf16.mxu0 %v8907_v11  ;;  %v146_v11 = vshrl.u32 %v145_v10, 7 }
  0x67   :  { %392 = vmatmul.mubr.bf16.gmra.mxu1 %v7861_v41 }
  0x68   :  { %427 = vmatpush1.bf16.msra.mxu1 %v7862_v42  ;;  %401 = vmatprep.mubr.bf16.mxu1 %v10838_v0  ;;  %v9077_v12 = vsub.s32 0, %v146_v11  ;;  %v9079_v15 = vsub.s32 1, %v146_v11 }
  0x69   :  { %428 = vmatprep.subr.bf16.mxu1 %v7867_v43  ;;  %804 = vmatpush1.bf16.msra.mxu0 %v8913_v13  ;;  %v143_v13 = vld [vmem:[#allocation6] sm:$0xf] }
  0x6a   :  { %805 = vmatprep.subr.bf16.mxu0 %v8916_v14  ;;  %10988 = vst [vmem:[#allocation20_spill] sm:$0xff] %v9077_v12  ;;  %10989 = vst [vmem:[#allocation21_spill] sm:$0xff] %v9079_v15 }
  0x6c   :  { %429 = vmatpush1.bf16.msra.mxu1 %v7865_v44 }
  0x6d   :  { %430 = vmatprep.subr.bf16.mxu1 %v7871_v45  ;;  %806 = vmatpush1.bf16.msra.mxu0 %v8925_v17 }
  0x6e   :  { %807 = vmatprep.subr.bf16.mxu0 %v8928_v18  ;;  %v148_v18 = vrot.slane %v143_v13, %v9077_v12 }
  0x6f   :  { %402 = vmatmul.mubr.bf16.gmra.mxu1 %v7868_v46 }
  0x70   :  { %431 = vmatpush1.bf16.msra.mxu1 %v7869_v47  ;;  %411 = vmatprep.mubr.bf16.mxu1 %v10838_v0 }
  0x71   :  { %432 = vmatprep.subr.bf16.mxu1 %v7874_v48  ;;  %808 = vmatpush1.bf16.msra.mxu0 %v8937_v21  ;;  %v152_v21 = vrot.slane %v143_v13, %v9079_v15 }
  0x72   :  { %809 = vmatprep.subr.bf16.mxu0 %v8940_v22 }
  0x74   :  { %433 = vmatpush1.bf16.msra.mxu1 %v7872_v49 }
  0x75   :  { %434 = vmatprep.subr.bf16.mxu1 %v7878_v50  ;;  %810 = vmatpush1.bf16.msra.mxu0 %v8949_v25 }
  0x76   :  { %811 = vmatprep.subr.bf16.mxu0 %v8952_v26 }
  0x77   :  { %412 = vmatmul.mubr.bf16.gmra.mxu1 %v7875_v51 }
  0x78   :  { %435 = vmatpush1.bf16.msra.mxu1 %v7876_v52  ;;  %454 = vmatprep.mubr.bf16.mxu1 %v10838_v0 }
  0x79   :  { %436 = vmatprep.subr.bf16.mxu1 %v7881_v53  ;;  %812 = vmatpush1.bf16.msra.mxu0 %v8961_v29  ;;  %v9113_v53 = vsub.s32 3, %v146_v11 }
  0x7a   :  { %813 = vmatprep.subr.bf16.mxu0 %v8964_v30 }
  0x7b   :  { %11003 = vst [vmem:[#allocation35_spill] sm:$0xff] %v9113_v53 }
  0x7c   :  { %437 = vmatpush1.bf16.msra.mxu1 %v7879_v54 }
  0x7d   :  { %735 = vmatprep.subr.bf16.mxu1 %v7884_v55  ;;  %814 = vmatpush1.bf16.msra.mxu0 %v8969_v32 }
  0x7e   :  { %1310 = vmatprep.subr.bf16.mxu0 %v9071_v8 }
  0x7f   :  { %455 = vmatmul.mubr.bf16.vlgmr.msra.gmra.mxu1 %v8982_v35 }
  0x80   :  { %736 = vmatpush1.bf16.msra.mxu1 %v7882_v56  ;;  %464 = vmatprep.mubr.bf16.mxu1 %v10838_v0 }
  0x81   :  { %737 = vmatprep.subr.bf16.mxu1 %v7887_v57 }
  0x84   :  { %738 = vmatpush1.bf16.msra.mxu1 %v7885_v58 }
  0x85   :  { %739 = vmatprep.subr.bf16.mxu1 %v7890_v59 }
  0x87   :  { %465 = vmatmul.mubr.bf16.gmra.mxu1 %v7861_v41 }
  0x88   :  { %740 = vmatpush1.bf16.msra.mxu1 %v7888_v60  ;;  %474 = vmatprep.mubr.bf16.mxu1 %v10838_v0 }
  0x89   :  { %741 = vmatprep.subr.bf16.mxu1 %v7893_v61 }
  0x8c   :  { %742 = vmatpush1.bf16.msra.mxu1 %v7891_v62 }
  0x8d   :  { %743 = vmatprep.subr.bf16.mxu1 %v7896_v63 }
  0x8f   :  { %475 = vmatmul.mubr.bf16.gmra.mxu1 %v7868_v46 }
  0x90   :  { %744 = vmatpush1.bf16.msra.mxu1 %v7894_v1  ;;  %484 = vmatprep.mubr.bf16.mxu1 %v10838_v0 }
  0x91   :  { %745 = vmatprep.subr.bf16.mxu1 %v7899_v2 }
  0x94   :  { %746 = vmatpush1.bf16.msra.mxu1 %v7897_v3 }
  0x95   :  { %747 = vmatprep.subr.bf16.mxu1 %v7902_v4 }
  0x97   :  { %485 = vmatmul.mubr.bf16.gmra.mxu1 %v7875_v51  ;;  %v9111_v51 = vsub.s32 2, %v146_v11 }
  0x98   :  { %748 = vmatpush1.bf16.msra.mxu1 %v7900_v5  ;;  %767 = vmatprep.mubr.bf16.mxu1 %v10838_v0 }
  0x99   :  { %749 = vmatprep.subr.bf16.mxu1 %v7905_v6  ;;  %11002 = vst [vmem:[#allocation34_spill] sm:$0xff] %v9111_v51 }
  0x9c   :  { %750 = vmatpush1.bf16.msra.mxu1 %v7903_v7 }
  0x9d   :  { %840 = vmatprep.subr.bf16.mxu1 %v7884_v55  ;;  %v156_v55 = vrot.slane %v143_v13, %v9111_v51 }
  0x9f   :  { %768 = vmatmul.mubr.bf16.vlgmr.msra.gmra.mxu1 %v8987_v37 }
  0xa0   :  { %841 = vmatpush1.bf16.msra.mxu1 %v7882_v56  ;;  %872 = vmatprep.mubr.bf16.mxu1 %v10838_v0  ;;  %v9236_v0 = vld [vmem:[#allocation8 + $0xc] ss:$16 sps:$4 sm:$0xff]  }
  0xa1   :  { %842 = vmatprep.subr.bf16.mxu1 %v7887_v57  ;;  %v160_v57 = vrot.slane %v143_v13, %v9113_v53 }
  0xa4   :  { %843 = vmatpush1.bf16.msra.mxu1 %v7885_v58 }
  0xa5   :  { %844 = vmatprep.subr.bf16.mxu1 %v7890_v59 }
  0xa8   :  { %845 = vmatpush1.bf16.msra.mxu1 %v7888_v60 }
  0xa9   :  { %846 = vmatprep.subr.bf16.mxu1 %v7893_v61 }
  0xac   :  { %847 = vmatpush1.bf16.msra.mxu1 %v7891_v62 }
  0xad   :  { %848 = vmatprep.subr.bf16.mxu1 %v7896_v63 }
  0xb0   :  { %849 = vmatpush1.bf16.msra.mxu1 %v7894_v1 }
  0xb1   :  { %850 = vmatprep.subr.bf16.mxu1 %v7899_v2 }
  0xb4   :  { %851 = vmatpush1.bf16.msra.mxu1 %v7897_v3 }
  0xb5   :  { %852 = vmatprep.subr.bf16.mxu1 %v7902_v4 }
  0xb8   :  { %853 = vmatpush1.bf16.msra.mxu1 %v7900_v5 }
  0xb9   :  { %854 = vmatprep.subr.bf16.mxu1 %v7905_v6 }
  0xbc   :  { %855 = vmatpush1.bf16.msra.mxu1 %v7903_v7 }
  0xbd   :  { %1351 = vmatprep.subr.bf16.mxu1 %v9073_v9 }
 0x11f   :  { %v383_v14 = vpop.f32.mrf.mxu1  ;;  %v728_v17 = vpop.f32.mrf.mxu0 }
 0x120   :  { %v384_v11 = vadd.f32 %v383_v14, %v148_v18 }
 0x121   :  { %v385_v16 = vpop.f32.mrf.mxu1  ;;  %v730_v20 = vpop.f32.mrf.mxu0 }
 0x122   :  { %v386_v6 = vadd.f32 %v385_v16, %v152_v21 }
 0x123   :  { %v387_v19 = vpop.f32.mrf.mxu1  ;;  %v732_v24 = vpop.f32.mrf.mxu0 }
 0x124   :  { %v9083_v22 = vadd.f32 %v387_v19, %v148_v18 }
 0x125   :  { %v389_v23 = vpop.f32.mrf.mxu1  ;;  %v733_v27 = vpop.f32.mrf.mxu0 }
 0x126   :  { %v9085_v25 = vadd.f32 %v389_v23, %v152_v21  ;;  %v777_v23 = vadd.f32 %v730_v20, %v386_v6  ;;  %v776_v27 = vadd.f32 %v728_v17, %v384_v11 }
 0x127   :  { %v393_v26 = vpop.f32.mrf.mxu1 }
 0x128   :  { %v9087_v28 = vadd.f32 %v393_v26, %v148_v18  ;;  %v780_v16 = vmul.f32 0.5, %v776_v27 }
 0x129   :  { %v395_v29 = vpop.f32.mrf.mxu1 }
 0x12a   :  { %10990 = vst [vmem:[#allocation22_spill] sm:$0xff] %v9087_v28  ;;  %v9089_v30 = vadd.f32 %v395_v29, %v152_v21  ;;  %v9308_v28 = vld [vmem:[#allocation8 + $0x14c] ss:$16 sps:$4 sm:$0xff]  }
 0x12b   :  { %v397_v31 = vpop.f32.mrf.mxu1  ;;  %11029 = vst [vmem:[#allocation61_spill] sm:$0xff] %v9308_v28 }
 0x12c   :  { %10991 = vst [vmem:[#allocation23_spill] sm:$0xff] %v9089_v30  ;;  %v9091_v32 = vadd.f32 %v397_v31, %v148_v18  ;;  %v9306_v30 = vld [vmem:[#allocation8 + $0x144] ss:$16 sps:$4 sm:$0xff]  }
 0x12d   :  { %v399_v33 = vpop.f32.mrf.mxu1  ;;  %11028 = vst [vmem:[#allocation60_spill] sm:$0xff] %v9306_v30 }
 0x12e   :  { %10992 = vst [vmem:[#allocation24_spill] sm:$0xff] %v9091_v32  ;;  %v9093_v34 = vadd.f32 %v399_v33, %v152_v21  ;;  %v781_v33 = vmul.f32 0.5, %v777_v23  ;;  %v9296_v32 = vld [vmem:[#allocation8 + $0x16c] ss:$16 sps:$4 sm:$0xff]  }
 0x12f   :  { %v403_v35 = vpop.f32.mrf.mxu1  ;;  %11025 = vst [vmem:[#allocation57_spill] sm:$0xff] %v9296_v32 }
 0x130   :  { %10993 = vst [vmem:[#allocation25_spill] sm:$0xff] %v9093_v34  ;;  %v9095_v36 = vadd.f32 %v403_v35, %v148_v18  ;;  %8458 = vtanh.f32 %v781_v33  ;;  %v9294_v34 = vld [vmem:[#allocation8 + $0x164] ss:$16 sps:$4 sm:$0xff]  }
 0x131   :  { %v405_v37 = vpop.f32.mrf.mxu1  ;;  %8460 = vtanh.f32 %v780_v16  ;;  %v7040_v16 = vld [vmem:[%s10833_s8 + $0x8] sm:$0xff]  ;;  %11024 = vst [vmem:[#allocation56_spill] sm:$0xff] %v9294_v34 }
 0x132   :  { %10994 = vst [vmem:[#allocation26_spill] sm:$0xff] %v9095_v36  ;;  %v9097_v38 = vadd.f32 %v405_v37, %v152_v21  ;;  %v9284_v36 = vld [vmem:[#allocation8 + $0x18c] ss:$16 sps:$4 sm:$0xff]  }
 0x133   :  { %v407_v39 = vpop.f32.mrf.mxu1  ;;  %11021 = vst [vmem:[#allocation53_spill] sm:$0xff] %v9284_v36 }
 0x134   :  { %10995 = vst [vmem:[#allocation27_spill] sm:$0xff] %v9097_v38  ;;  %v9099_v40 = vadd.f32 %v407_v39, %v148_v18  ;;  %v9282_v38 = vld [vmem:[#allocation8 + $0x184] ss:$16 sps:$4 sm:$0xff]  }
 0x135   :  { %v409_v41 = vpop.f32.mrf.mxu1  ;;  %11020 = vst [vmem:[#allocation52_spill] sm:$0xff] %v9282_v38 }
 0x136   :  { %10996 = vst [vmem:[#allocation28_spill] sm:$0xff] %v9099_v40  ;;  %v9101_v42 = vadd.f32 %v409_v41, %v152_v21  ;;  %v9272_v40 = vld [vmem:[#allocation8 + $0x1ac] ss:$16 sps:$4 sm:$0xff]  }
 0x137   :  { %v413_v43 = vpop.f32.mrf.mxu1  ;;  %11017 = vst [vmem:[#allocation49_spill] sm:$0xff] %v9272_v40 }
 0x138   :  { %10997 = vst [vmem:[#allocation29_spill] sm:$0xff] %v9101_v42  ;;  %v9103_v44 = vadd.f32 %v413_v43, %v148_v18  ;;  %v9270_v42 = vld [vmem:[#allocation8 + $0x1a4] ss:$16 sps:$4 sm:$0xff]  }
 0x139   :  { %v415_v45 = vpop.f32.mrf.mxu1  ;;  %11016 = vst [vmem:[#allocation48_spill] sm:$0xff] %v9270_v42 }
 0x13a   :  { %10998 = vst [vmem:[#allocation30_spill] sm:$0xff] %v9103_v44  ;;  %v9105_v46 = vadd.f32 %v415_v45, %v152_v21  ;;  %v9260_v44 = vld [vmem:[#allocation8 + $0x1cc] ss:$16 sps:$4 sm:$0xff]  }
 0x13b   :  { %v417_v47 = vpop.f32.mrf.mxu1 }
 0x13c   :  { %10999 = vst [vmem:[#allocation31_spill] sm:$0xff] %v9105_v46  ;;  %v9107_v48 = vadd.f32 %v417_v47, %v148_v18  ;;  %v9258_v46 = vld [vmem:[#allocation8 + $0x1c4] ss:$16 sps:$4 sm:$0xff]  }
 0x13d   :  { %v419_v49 = vpop.f32.mrf.mxu1 }
 0x13e   :  { %11000 = vst [vmem:[#allocation32_spill] sm:$0xff] %v9107_v48  ;;  %v9109_v50 = vadd.f32 %v419_v49, %v152_v21  ;;  %v9248_v48 = vld [vmem:[#allocation8 + $0x1ec] ss:$16 sps:$4 sm:$0xff]  }
 0x13f   :  { %v456_v52 = vpop.f32.mrf.mxu1 }
 0x140   :  { %11001 = vst [vmem:[#allocation33_spill] sm:$0xff] %v9109_v50  ;;  %v9246_v50 = vld [vmem:[#allocation8 + $0x1e4] ss:$16 sps:$4 sm:$0xff]  }
 0x141   :  { %v458_v54 = vpop.f32.mrf.mxu1 }
 0x142   :  { %v459_v43 = vadd.f32 %v458_v54, %v160_v57 }
 0x143   :  { %v460_v56 = vpop.f32.mrf.mxu1 }
 0x144   :  { %v9117_v58 = vadd.f32 %v460_v56, %v156_v55  ;;  %v457_v56 = vadd.f32 %v456_v52, %v156_v55 }
 0x145   :  { %v462_v59 = vpop.f32.mrf.mxu1 }
 0x146   :  { %v9119_v60 = vadd.f32 %v462_v59, %v160_v57 }
 0x147   :  { %v466_v61 = vpop.f32.mrf.mxu1 }
 0x148   :  { %v9121_v62 = vadd.f32 %v466_v61, %v156_v55 }
 0x149   :  { %v468_v63 = vpop.f32.mrf.mxu1 }
 0x14a   :  { %11004 = vst [vmem:[#allocation36_spill] sm:$0xff] %v9121_v62  ;;  %v9123_v1 = vadd.f32 %v468_v63, %v160_v57  ;;  %v8459_v63 = vpop.eup %8458  ;;  %v9300_v62 = vld [vmem:[#allocation8 + $0x160] ss:$16 sps:$4 sm:$0xff]  }
 0x14b   :  { %v470_v2 = vpop.f32.mrf.mxu1  ;;  %11026 = vst [vmem:[#allocation58_spill] sm:$0xff] %v9300_v62 }
 0x14c   :  { %11005 = vst [vmem:[#allocation37_spill] sm:$0xff] %v9123_v1  ;;  %v9125_v3 = vadd.f32 %v470_v2, %v156_v55  ;;  %v8461_v2 = vpop.eup %8460  ;;  %v9302_v1 = vld [vmem:[#allocation8 + $0x168] ss:$16 sps:$4 sm:$0xff]  }
 0x14d   :  { %v472_v4 = vpop.f32.mrf.mxu1  ;;  %11027 = vst [vmem:[#allocation59_spill] sm:$0xff] %v9302_v1 }
 0x14e   :  { %11006 = vst [vmem:[#allocation38_spill] sm:$0xff] %v9125_v3  ;;  %v9127_v5 = vadd.f32 %v472_v4, %v160_v57  ;;  %v787_v4 = vmul.f32 0.5, %v8459_v63  ;;  %v9182_v63 = vld [vmem:[#allocation8 + $0xa8] ss:$16 sps:$4 sm:$0xff]   ;;  %v9288_v3 = vld [vmem:[#allocation8 + $0x180] ss:$16 sps:$4 sm:$0xff]  }
 0x14f   :  { %v476_v7 = vpop.f32.mrf.mxu1  ;;  %11022 = vst [vmem:[#allocation54_spill] sm:$0xff] %v9288_v3 }
 0x150   :  { %11007 = vst [vmem:[#allocation39_spill] sm:$0xff] %v9127_v5  ;;  %v9129_v10 = vadd.f32 %v476_v7, %v156_v55  ;;  %v786_v7 = vmul.f32 0.5, %v8461_v2  ;;  %v790_v11 = vadd.f32 0.5, %v787_v4  ;;  %v9186_v2 = vld [vmem:[#allocation8 + $0x84] ss:$16 sps:$4 sm:$0xff]  }
 0x151   :  { %v478_v13 = vpop.f32.mrf.mxu1  ;;  %v9188_v4 = vld [vmem:[#allocation8 + $0x8c] ss:$16 sps:$4 sm:$0xff]   ;;  %v9290_v5 = vld [vmem:[#allocation8 + $0x188] ss:$16 sps:$4 sm:$0xff]  }
 0x152   :  { %11008 = vst [vmem:[#allocation40_spill] sm:$0xff] %v9129_v10  ;;  %v9131_v19 = vadd.f32 %v478_v13, %v160_v57  ;;  %v496_v13 = vld [vmem:[%s10834_s9] sm:$0xff]  ;;  %v789_v23 = vadd.f32 0.5, %v786_v7  ;;  %v9194_v7 = vld [vmem:[#allocation8 + $0x88] ss:$16 sps:$4 sm:$0xff]   ;;  %11023 = vst [vmem:[#allocation55_spill] sm:$0xff] %v9290_v5 }
 0x153   :  { %v480_v24 = vpop.f32.mrf.mxu1  ;;  %v9276_v10 = vld [vmem:[#allocation8 + $0x1a0] ss:$16 sps:$4 sm:$0xff]  }
 0x154   :  { %11009 = vst [vmem:[#allocation41_spill] sm:$0xff] %v9131_v19  ;;  %v9133_v26 = vadd.f32 %v480_v24, %v156_v55  ;;  %11018 = vst [vmem:[#allocation50_spill] sm:$0xff] %v9276_v10  ;;  %v9278_v19 = vld [vmem:[#allocation8 + $0x1a8] ss:$16 sps:$4 sm:$0xff]  }
 0x155   :  { %v482_v29 = vpop.f32.mrf.mxu1  ;;  %11019 = vst [vmem:[#allocation51_spill] sm:$0xff] %v9278_v19 }
 0x156   :  { %11010 = vst [vmem:[#allocation42_spill] sm:$0xff] %v9133_v26  ;;  %v9135_v31 = vadd.f32 %v482_v29, %v160_v57  ;;  %v9264_v26 = vld [vmem:[#allocation8 + $0x1c0] ss:$16 sps:$4 sm:$0xff]  }
 0x157   :  { %v486_v35 = vpop.f32.mrf.mxu1 }
 0x158   :  { %11011 = vst [vmem:[#allocation43_spill] sm:$0xff] %v9135_v31  ;;  %v9137_v37 = vadd.f32 %v486_v35, %v156_v55  ;;  %v9266_v31 = vld [vmem:[#allocation8 + $0x1c8] ss:$16 sps:$4 sm:$0xff]  }
 0x159   :  { %v488_v21 = vpop.f32.mrf.mxu1 }
 0x15a   :  { %11012 = vst [vmem:[#allocation44_spill] sm:$0xff] %v9137_v37  ;;  %v9139_v39 = vadd.f32 %v488_v21, %v160_v57  ;;  %v9154_v21 = vld [vmem:[#allocation8 + $0xe0] ss:$16 sps:$4 sm:$0xff]  }
 0x15b   :  { %v490_v14 = vpop.f32.mrf.mxu1  ;;  %v9252_v37 = vld [vmem:[#allocation8 + $0x1e0] ss:$16 sps:$4 sm:$0xff]  }
 0x15c   :  { %11013 = vst [vmem:[#allocation45_spill] sm:$0xff] %v9139_v39  ;;  %v9141_v18 = vadd.f32 %v490_v14, %v156_v55  ;;  %v9156_v14 = vld [vmem:[#allocation8 + $0xe8] ss:$16 sps:$4 sm:$0xff]  }
 0x15d   :  { %v492_v20 = vpop.f32.mrf.mxu1  ;;  %v9254_v39 = vld [vmem:[#allocation8 + $0x1e8] ss:$16 sps:$4 sm:$0xff]  }
 0x15e   :  { %11014 = vst [vmem:[#allocation46_spill] sm:$0xff] %v9141_v18  ;;  %v9143_v41 = vadd.f32 %v492_v20, %v160_v57  ;;  %v793_v57 = vmul.f32 %v790_v11, %v496_v13  ;;  %v9198_v11 = vld [vmem:[#allocation8 + $0x64] ss:$16 sps:$4 sm:$0xff]   ;;  %v9200_v13 = vld [vmem:[#allocation8 + $0x6c] ss:$16 sps:$4 sm:$0xff]  }
 0x15f   :  { %v769_v17 = vpop.f32.mrf.mxu1  ;;  %v9240_v18 = vld [vmem:[#allocation8] ss:$16 sps:$4 sm:$0xff]  }
 0x160   :  { %11015 = vst [vmem:[#allocation47_spill] sm:$0xff] %v9143_v41  ;;  %v778_v61 = vadd.f32 %v769_v17, %v457_v56  ;;  %v9160_v17 = vld [vmem:[#allocation8 + $0xc4] ss:$16 sps:$4 sm:$0xff]   ;;  %v9242_v41 = vld [vmem:[#allocation8 + $0x8] ss:$16 sps:$4 sm:$0xff]  }
 0x161   :  { %v771_v45 = vpop.f32.mrf.mxu1  ;;  %v9174_v56 = vld [vmem:[#allocation8 + $0xa4] ss:$16 sps:$4 sm:$0xff]  }
 0x162   :  { %v779_v47 = vadd.f32 %v771_v45, %v459_v43  ;;  %v782_v6 = vmul.f32 0.5, %v778_v61  ;;  %v9162_v43 = vld [vmem:[#allocation8 + $0xcc] ss:$16 sps:$4 sm:$0xff]   ;;  %v903_v45 = vpack.c.bf16 %v7040_v16, %v7040_v16  ;;  %v9180_v61 = vld [vmem:[#allocation8 + $0xa0] ss:$16 sps:$4 sm:$0xff]  }
 0x163   :  { %v773_v49 = vpop.f32.mrf.mxu1  ;;  %v9230_v16 = vld [vmem:[#allocation8 + $0x28] ss:$16 sps:$4 sm:$0xff]  }
 0x164   :  { %8462 = vtanh.f32 %v779_v47  ;;  %v9168_v47 = vld [vmem:[#allocation8 + $0xc0] ss:$16 sps:$4 sm:$0xff]   ;;  %v9170_v49 = vld [vmem:[#allocation8 + $0xc8] ss:$16 sps:$4 sm:$0xff]  }
 0x165   :  { %v774_v59 = vpop.f32.mrf.mxu1  ;;  %8464 = vtanh.f32 %v782_v6  ;;  %v9192_v6 = vld [vmem:[#allocation8 + $0x80] ss:$16 sps:$4 sm:$0xff]  }
 0x166   :  { %v9176_v59 = vld [vmem:[#allocation8 + $0xac] ss:$16 sps:$4 sm:$0xff]  }
 0x171   :  { %v8463_v54 = vpop.eup %8462 }
 0x172   :  { %v794_v24 = vmul.f32 %v8463_v54, %v789_v23  ;;  %v8465_v52 = vpop.eup %8464  ;;  %v9204_v23 = vld [vmem:[#allocation8 + $0x60] ss:$16 sps:$4 sm:$0xff]   ;;  %v9206_v54 = vld [vmem:[#allocation8 + $0x68] ss:$16 sps:$4 sm:$0xff]  }
 0x173   :  { %v788_v55 = vmul.f32 0.5, %v8465_v52  ;;  %v9216_v52 = vld [vmem:[#allocation8 + $0x40] ss:$16 sps:$4 sm:$0xff]  }
 0x174   :  { %v9148_v27 = vadd.f32 %v794_v24, %v793_v57  ;;  %v9210_v57 = vld [vmem:[#allocation8 + $0x44] ss:$16 sps:$4 sm:$0xff]   ;;  %v9212_v24 = vld [vmem:[#allocation8 + $0x4c] ss:$16 sps:$4 sm:$0xff]  }
 0x175   :  { %v791_v29 = vadd.f32 0.5, %v788_v55  ;;  %v9218_v55 = vld [vmem:[#allocation8 + $0x48] ss:$16 sps:$4 sm:$0xff]  }
 0x176   :  { %8466 = vtanh.f32 %v9148_v27 }
 0x183   :  { %v8467_v33 = vpop.eup %8466 }
 0x184   :  { %v797_v35 = vmul.f32 %v8467_v33, %v791_v29  ;;  %v9222_v29 = vld [vmem:[#allocation8 + $0x24] ss:$16 sps:$4 sm:$0xff]   ;;  %v9224_v33 = vld [vmem:[#allocation8 + $0x2c] ss:$16 sps:$4 sm:$0xff]  }
 0x186   :  { %v9158_v20 = vpack.c.bf16 %v797_v35, %v797_v35  ;;  %v9228_v35 = vld [vmem:[#allocation8 + $0x20] ss:$16 sps:$4 sm:$0xff]  }
 0x188   :  { %832 = vmatmul.mubr.bf16.vlgmr.msra.gmra.mxu0 %v9158_v20  ;;  %873 = vmatmul.mubr.bf16.vlgmr.msra.gmra.mxu1 %v9158_v20 }
 0x189   :  { %1311 = vmatpush1.bf16.msra.mxu0 %v9154_v21  ;;  %1352 = vmatpush1.bf16.msra.mxu1 %v9156_v14 }
 0x18a   :  { %1312 = vmatprep.subr.bf16.mxu0 %v9160_v17  ;;  %1353 = vmatprep.subr.bf16.mxu1 %v9162_v43 }
 0x18b   :  { %1342 = vmatprep.mubr.bf16.mxu0 %v903_v45  ;;  %1383 = vmatprep.mubr.bf16.mxu1 %v903_v45  ;;  %v9234_v45 = vld [vmem:[#allocation8 + $0x4] ss:$16 sps:$4 sm:$0xff]  }
 0x18d   :  { %1313 = vmatpush1.bf16.msra.mxu0 %v9168_v47  ;;  %1354 = vmatpush1.bf16.msra.mxu1 %v9170_v49 }
 0x18e   :  { %1314 = vmatprep.subr.bf16.mxu0 %v9174_v56  ;;  %1355 = vmatprep.subr.bf16.mxu1 %v9176_v59 }
 0x191   :  { %1315 = vmatpush1.bf16.msra.mxu0 %v9180_v61  ;;  %1356 = vmatpush1.bf16.msra.mxu1 %v9182_v63 }
 0x192   :  { %1316 = vmatprep.subr.bf16.mxu0 %v9186_v2  ;;  %1357 = vmatprep.subr.bf16.mxu1 %v9188_v4 }
 0x195   :  { %1317 = vmatpush1.bf16.msra.mxu0 %v9192_v6  ;;  %1358 = vmatpush1.bf16.msra.mxu1 %v9194_v7 }
 0x196   :  { %1318 = vmatprep.subr.bf16.mxu0 %v9198_v11  ;;  %1359 = vmatprep.subr.bf16.mxu1 %v9200_v13 }
 0x199   :  { %1319 = vmatpush1.bf16.msra.mxu0 %v9204_v23  ;;  %1360 = vmatpush1.bf16.msra.mxu1 %v9206_v54 }
 0x19a   :  { %1320 = vmatprep.subr.bf16.mxu0 %v9210_v57  ;;  %1361 = vmatprep.subr.bf16.mxu1 %v9212_v24 }
 0x19d   :  { %1321 = vmatpush1.bf16.msra.mxu0 %v9216_v52  ;;  %1362 = vmatpush1.bf16.msra.mxu1 %v9218_v55 }
 0x19e   :  { %1322 = vmatprep.subr.bf16.mxu0 %v9222_v29  ;;  %1363 = vmatprep.subr.bf16.mxu1 %v9224_v33 }
 0x1a1   :  { %1323 = vmatpush1.bf16.msra.mxu0 %v9228_v35  ;;  %1364 = vmatpush1.bf16.msra.mxu1 %v9230_v16 }
 0x1a2   :  { %1324 = vmatprep.subr.bf16.mxu0 %v9234_v45  ;;  %1365 = vmatprep.subr.bf16.mxu1 %v9236_v0 }
 0x1a5   :  { %1325 = vmatpush1.bf16.msra.mxu0 %v9240_v18  ;;  %1366 = vmatpush1.bf16.msra.mxu1 %v9242_v41 }
 0x1a6   :  { %1326 = vmatprep.subr.bf16.mxu0 %v9246_v50  ;;  %1367 = vmatprep.subr.bf16.mxu1 %v9248_v48 }
 0x1a9   :  { %1327 = vmatpush2.bf16.msra.mxu0 %v9252_v37  ;;  %1368 = vmatpush2.bf16.msra.mxu1 %v9254_v39 }
 0x1aa   :  { %1328 = vmatprep.subr.bf16.mxu0 %v9258_v46  ;;  %1369 = vmatprep.subr.bf16.mxu1 %v9260_v44 }
 0x1ad   :  { %1329 = vmatpush2.bf16.msra.mxu0 %v9264_v26  ;;  %1370 = vmatpush2.bf16.msra.mxu1 %v9266_v31 }
 0x1ae   :  { %1330 = vmatprep.subr.bf16.mxu0 %v9270_v42  ;;  %1371 = vmatprep.subr.bf16.mxu1 %v9272_v40 }
 0x1b1   :  { %1331 = vmatpush2.bf16.msra.mxu0 %v9276_v10  ;;  %1372 = vmatpush2.bf16.msra.mxu1 %v9278_v19 }
 0x1b2   :  { %1332 = vmatprep.subr.bf16.mxu0 %v9282_v38  ;;  %1373 = vmatprep.subr.bf16.mxu1 %v9284_v36  ;;  %v9312_v36 = vld [vmem:[#allocation8 + $0x140] ss:$16 sps:$4 sm:$0xff]   ;;  %v8627_v38 = vld [vmem:[#allocation3 + $0x68] ss:$16 sps:$4 sm:$0xff]  }
 0x1b3   :  { %11030 = vst [vmem:[#allocation62_spill] sm:$0xff] %v9312_v36 }
 0x1b5   :  { %1333 = vmatpush2.bf16.msra.mxu0 %v9288_v3  ;;  %1374 = vmatpush2.bf16.msra.mxu1 %v9290_v5  ;;  %v9314_v3 = vld [vmem:[#allocation8 + $0x148] ss:$16 sps:$4 sm:$0xff]   ;;  %v9318_v5 = vld [vmem:[#allocation8 + $0x124] ss:$16 sps:$4 sm:$0xff]  }
 0x1b6   :  { %1334 = vmatprep.subr.bf16.mxu0 %v9294_v34  ;;  %1375 = vmatprep.subr.bf16.mxu1 %v9296_v32  ;;  %11031 = vst [vmem:[#allocation63_spill] sm:$0xff] %v9314_v3  ;;  %11032 = vst [vmem:[#allocation64_spill] sm:$0xff] %v9318_v5  ;;  %v9320_v34 = vld [vmem:[#allocation8 + $0x12c] ss:$16 sps:$4 sm:$0xff]   ;;  %v9324_v32 = vld [vmem:[#allocation8 + $0x120] ss:$16 sps:$4 sm:$0xff]  }
 0x1b7   :  { %11033 = vst [vmem:[#allocation65_spill] sm:$0xff] %v9320_v34  ;;  %11034 = vst [vmem:[#allocation66_spill] sm:$0xff] %v9324_v32 }
 0x1b9   :  { %1335 = vmatpush2.bf16.msra.mxu0 %v9300_v62  ;;  %1376 = vmatpush2.bf16.msra.mxu1 %v9302_v1  ;;  %v9326_v62 = vld [vmem:[#allocation8 + $0x128] ss:$16 sps:$4 sm:$0xff]   ;;  %v9330_v1 = vld [vmem:[#allocation8 + $0x104] ss:$16 sps:$4 sm:$0xff]  }
 0x1ba   :  { %1336 = vmatprep.subr.bf16.mxu0 %v9306_v30  ;;  %1377 = vmatprep.subr.bf16.mxu1 %v9308_v28  ;;  %11035 = vst [vmem:[#allocation67_spill] sm:$0xff] %v9326_v62  ;;  %11036 = vst [vmem:[#allocation68_spill] sm:$0xff] %v9330_v1  ;;  %v9332_v30 = vld [vmem:[#allocation8 + $0x10c] ss:$16 sps:$4 sm:$0xff]   ;;  %v9336_v28 = vld [vmem:[#allocation8 + $0x100] ss:$16 sps:$4 sm:$0xff]  }
 0x1bb   :  { %11037 = vst [vmem:[#allocation69_spill] sm:$0xff] %v9332_v30  ;;  %11038 = vst [vmem:[#allocation70_spill] sm:$0xff] %v9336_v28 }
 0x1bd   :  { %1337 = vmatpush2.bf16.msra.mxu0 %v9312_v36  ;;  %1378 = vmatpush2.bf16.msra.mxu1 %v9314_v3  ;;  %v9338_v36 = vld [vmem:[#allocation8 + $0x108] ss:$16 sps:$4 sm:$0xff]  }
 0x1be   :  { %1338 = vmatprep.subr.bf16.mxu0 %v9318_v5  ;;  %1379 = vmatprep.subr.bf16.mxu1 %v9320_v34  ;;  %11039 = vst [vmem:[#allocation71_spill] sm:$0xff] %v9338_v36  ;;  %v8618_v34 = vld [vmem:[#allocation3 + $0xec] ss:$16 sps:$4 sm:$0xff]  }
 0x1bf   :  { %v8620_v5 = vld [vmem:[#allocation3 + $0xcc] ss:$16 sps:$4 sm:$0xff]  }
 0x1c0   :  { %v8626_v3 = vld [vmem:[#allocation3 + $0x6c] ss:$16 sps:$4 sm:$0xff]  }
 0x1c1   :  { %1339 = vmatpush2.bf16.msra.mxu0 %v9324_v32  ;;  %1380 = vmatpush2.bf16.msra.mxu1 %v9326_v62  ;;  %v8619_v32 = vld [vmem:[#allocation3 + $0xe8] ss:$16 sps:$4 sm:$0xff]   ;;  %v11040_v62 = vmov 0  }
 0x1c2   :  { %1340 = vmatprep.subr.bf16.mxu0 %v9330_v1  ;;  %1381 = vmatprep.subr.bf16.mxu1 %v9332_v30  ;;  %v8621_v1 = vld [vmem:[#allocation3 + $0xc8] ss:$16 sps:$4 sm:$0xff]   ;;  %v8622_v30 = vld [vmem:[#allocation3 + $0xac] ss:$16 sps:$4 sm:$0xff]  }
 0x1c5   :  { %1341 = vmatpush2.bf16.msra.mxu0 %v9336_v28  ;;  %1382 = vmatpush2.bf16.msra.mxu1 %v9338_v36  ;;  %v8623_v28 = vld [vmem:[#allocation3 + $0xa8] ss:$16 sps:$4 sm:$0xff]   ;;  %v8624_v36 = vld [vmem:[#allocation3 + $0x8c] ss:$16 sps:$4 sm:$0xff]  }
 0x1c6   :  { %1645 = vmatprep.subr.bf16.mxu1 %v8618_v34  ;;  %v8625_v34 = vld [vmem:[#allocation3 + $0x88] ss:$16 sps:$4 sm:$0xff]  }
 0x1c8   :  { %1343 = vmatmul.mubr.bf16.vlgmr.msra.gmra.mxu0 %v9158_v20  ;;  %1384 = vmatmul.mubr.bf16.vlgmr.msra.gmra.mxu1 %v9158_v20  ;;  %v9348_v20 = vld [vmem:[#allocation3 + $0xe4] ss:$16 sps:$4 sm:$0xff]  }
 0x1c9   :  { %1646 = vmatpush1.bf16.msra.mxu1 %v8619_v32  ;;  %1636 = vmatprep.mubr.bf16.mxu0 %v11040_v62  ;;  %11041 = vst [vmem:[#allocation72_spill] sm:$0xff] %v9348_v20  ;;  %v9350_v32 = vld [vmem:[#allocation3 + $0xe0] ss:$16 sps:$4 sm:$0xff]  }
 0x1ca   :  { %1647 = vmatprep.subr.bf16.mxu1 %v8620_v5  ;;  %1677 = vmatprep.mubr.bf16.mxu1 %v11040_v62  ;;  %11042 = vst [vmem:[#allocation73_spill] sm:$0xff] %v9350_v32  ;;  %v8628_v5 = vld [vmem:[#allocation3 + $0x4c] ss:$16 sps:$4 sm:$0xff]   ;;  %v9366_v62 = vld [vmem:[#allocation3 + $0x84] ss:$16 sps:$4 sm:$0xff]  }
 0x1cb   :  { %1604 = vmatprep.subr.bf16.mxu0 %v9348_v20  ;;  %11047 = vst [vmem:[#allocation78_spill] sm:$0xff] %v9366_v62 }
 0x1cc   :  { %1605 = vmatpush1.bf16.msra.mxu0 %v9350_v32 }
 0x1cd   :  { %1648 = vmatpush1.bf16.msra.mxu1 %v8621_v1  ;;  %v8630_v1 = vld [vmem:[#allocation3 + $0x2c] ss:$16 sps:$4 sm:$0xff]  }
 0x1ce   :  { %1649 = vmatprep.subr.bf16.mxu1 %v8622_v30  ;;  %v9354_v30 = vld [vmem:[#allocation3 + $0xc4] ss:$16 sps:$4 sm:$0xff]  }
 0x1cf   :  { %11043 = vst [vmem:[#allocation74_spill] sm:$0xff] %v9354_v30  ;;  %1606 = vmatprep.subr.bf16.mxu0 %v9354_v30  ;;  %v9370_v30 = vld [vmem:[#allocation3 + $0x64] ss:$16 sps:$4 sm:$0xff]  }
 0x1d0   :  { %11049 = vst [vmem:[#allocation80_spill] sm:$0xff] %v9370_v30 }
 0x1d1   :  { %1650 = vmatpush1.bf16.msra.mxu1 %v8623_v28  ;;  %v9356_v28 = vld [vmem:[#allocation3 + $0xc0] ss:$16 sps:$4 sm:$0xff]  }
 0x1d2   :  { %1651 = vmatprep.subr.bf16.mxu1 %v8624_v36  ;;  %11044 = vst [vmem:[#allocation75_spill] sm:$0xff] %v9356_v28  ;;  %v8629_v36 = vld [vmem:[#allocation3 + $0x48] ss:$16 sps:$4 sm:$0xff]   ;;  %1607 = vmatpush1.bf16.msra.mxu0 %v9356_v28 }
 0x1d5   :  { %1652 = vmatpush1.bf16.msra.mxu1 %v8625_v34  ;;  %v8631_v34 = vld [vmem:[#allocation3 + $0x28] ss:$16 sps:$4 sm:$0xff]  }
 0x1d6   :  { %1653 = vmatprep.subr.bf16.mxu1 %v8626_v3  ;;  %v9360_v3 = vld [vmem:[#allocation3 + $0xa4] ss:$16 sps:$4 sm:$0xff]  }
 0x1d7   :  { %11045 = vst [vmem:[#allocation76_spill] sm:$0xff] %v9360_v3  ;;  %1608 = vmatprep.subr.bf16.mxu0 %v9360_v3  ;;  %v9384_v3 = vld [vmem:[#allocation3 + $0x24] ss:$16 sps:$4 sm:$0xff]  }
 0x1d8   :  { %11053 = vst [vmem:[#allocation84_spill] sm:$0xff] %v9384_v3 }
 0x1d9   :  { %1654 = vmatpush1.bf16.msra.mxu1 %v8627_v38  ;;  %v9362_v38 = vld [vmem:[#allocation3 + $0xa0] ss:$16 sps:$4 sm:$0xff]  }
 0x1da   :  { %1655 = vmatprep.subr.bf16.mxu1 %v8628_v5  ;;  %11046 = vst [vmem:[#allocation77_spill] sm:$0xff] %v9362_v38  ;;  %v8632_v5 = vld [vmem:[#allocation3 + $0xc] ss:$16 sps:$4 sm:$0xff]   ;;  %1609 = vmatpush1.bf16.msra.mxu0 %v9362_v38  ;;  %v9381_v38 = vld [vmem:[#allocation3 + $0x40] ss:$16 sps:$4 sm:$0xff]  }
 0x1db   :  { %1610 = vmatprep.subr.bf16.mxu0 %v9366_v62  ;;  %11052 = vst [vmem:[#allocation83_spill] sm:$0xff] %v9381_v38 }
 0x1dd   :  { %1656 = vmatpush1.bf16.msra.mxu1 %v8629_v36  ;;  %v9368_v36 = vld [vmem:[#allocation3 + $0x80] ss:$16 sps:$4 sm:$0xff]  }
 0x1de   :  { %1657 = vmatprep.subr.bf16.mxu1 %v8630_v1  ;;  %11048 = vst [vmem:[#allocation79_spill] sm:$0xff] %v9368_v36  ;;  %v8633_v1 = vld [vmem:[#allocation3 + $0x8] ss:$16 sps:$4 sm:$0xff]   ;;  %1611 = vmatpush1.bf16.msra.mxu0 %v9368_v36 }
 0x1df   :  { %1612 = vmatprep.subr.bf16.mxu0 %v9370_v30  ;;  %v9393_v30 = vld [vmem:[#allocation3] ss:$16 sps:$4 sm:$0xff]  }
 0x1e0   :  { %11056 = vst [vmem:[#allocation87_spill] sm:$0xff] %v9393_v30 }
 0x1e1   :  { %1658 = vmatpush1.bf16.msra.mxu1 %v8631_v34  ;;  %v9375_v34 = vld [vmem:[#allocation3 + $0x60] ss:$16 sps:$4 sm:$0xff]  }
 0x1e2   :  { %1659 = vmatprep.subr.bf16.mxu1 %v8632_v5  ;;  %11050 = vst [vmem:[#allocation81_spill] sm:$0xff] %v9375_v34  ;;  %v9378_v5 = vld [vmem:[#allocation3 + $0x44] ss:$16 sps:$4 sm:$0xff]   ;;  %1613 = vmatpush1.bf16.msra.mxu0 %v9375_v34 }
 0x1e3   :  { %11051 = vst [vmem:[#allocation82_spill] sm:$0xff] %v9378_v5  ;;  %1614 = vmatprep.subr.bf16.mxu0 %v9378_v5 }
 0x1e5   :  { %1660 = vmatpush1.bf16.msra.mxu1 %v8633_v1  ;;  %v9387_v1 = vld [vmem:[#allocation3 + $0x20] ss:$16 sps:$4 sm:$0xff]  }
 0x1e6   :  { %2156 = vmatprep.subr.bf16.mxu1 %v9073_v9  ;;  %1615 = vmatpush1.bf16.msra.mxu0 %v9381_v38  ;;  %11054 = vst [vmem:[#allocation85_spill] sm:$0xff] %v9387_v1  ;;  %v9390_v9 = vld [vmem:[#allocation3 + $0x4] ss:$16 sps:$4 sm:$0xff]  }
 0x1e7   :  { %1616 = vmatprep.subr.bf16.mxu0 %v9384_v3  ;;  %11055 = vst [vmem:[#allocation86_spill] sm:$0xff] %v9390_v9 }
 0x1ea   :  { %1617 = vmatpush1.bf16.msra.mxu0 %v9387_v1 }
 0x1eb   :  { %1618 = vmatprep.subr.bf16.mxu0 %v9390_v9 }
 0x1ee   :  { %1619 = vmatpush1.bf16.msra.mxu0 %v9393_v30 }
 0x1ef   :  { %2115 = vmatprep.subr.bf16.mxu0 %v9071_v8 }
 0x248   :  { %v833_v5 = vpop.f32.mrf.mxu0  ;;  %v874_v34 = vpop.f32.mrf.mxu1 }
 0x249   :  { %v881_v38 = vadd.f32 %v833_v5, %v9083_v22  ;;  %v883_v8 = vadd.f32 %v874_v34, %v9117_v58  ;;  %v11068_v34 = vld [vmem:[#allocation59_spill] sm:$0xff] }
 0x24a   :  { %v835_v36 = vpop.f32.mrf.mxu0  ;;  %v876_v62 = vpop.f32.mrf.mxu1 }
 0x24b   :  { %v885_v28 = vmul.f32 0.5, %v881_v38  ;;  %v882_v3 = vadd.f32 %v835_v36, %v9085_v25  ;;  %v884_v19 = vadd.f32 %v876_v62, %v9119_v60  ;;  %v887_v30 = vmul.f32 0.5, %v883_v8 }
 0x24c   :  { %v837_v32 = vpop.f32.mrf.mxu0  ;;  %v878_v20 = vpop.f32.mrf.mxu1 }
 0x24d   :  { %8468 = vtanh.f32 %v885_v28  ;;  %v886_v1 = vmul.f32 0.5, %v882_v3 }
 0x24e   :  { %v838_v9 = vpop.f32.mrf.mxu0  ;;  %v879_v10 = vpop.f32.mrf.mxu1 }
 0x24f   :  { %8470 = vtanh.f32 %v886_v1  ;;  %v11069_v1 = vld [vmem:[#allocation60_spill] sm:$0xff]  ;;  %v11070_v9 = vld [vmem:[#allocation61_spill] sm:$0xff] }
 0x250   :  { %8472 = vtanh.f32 %v884_v19 }
 0x251   :  { %8474 = vtanh.f32 %v887_v30  ;;  %v11067_v30 = vld [vmem:[#allocation58_spill] sm:$0xff] }
 0x25a   :  { %v8469_v40 = vpop.eup %8468 }
 0x25b   :  { %v891_v22 = vmul.f32 0.5, %v8469_v40  ;;  %v968_v40 = vld [vmem:[#allocation9] sm:$0xf] }
 0x25c   :  { %v8471_v5 = vpop.eup %8470 }
 0x25d   :  { %v894_v42 = vadd.f32 0.5, %v891_v22  ;;  %v892_v38 = vmul.f32 0.5, %v8471_v5  ;;  %v8473_v25 = vpop.eup %8472  ;;  %v11071_v22 = vld [vmem:[#allocation62_spill] sm:$0xff]  ;;  %v11072_v5 = vld [vmem:[#allocation63_spill] sm:$0xff] }
 0x25e   :  { %v8475_v60 = vpop.eup %8474 }
 0x25f   :  { %v895_v32 = vadd.f32 0.5, %v892_v38  ;;  %v899_v20 = vmul.f32 %v8473_v25, %v894_v42  ;;  %v893_v62 = vmul.f32 0.5, %v8475_v60  ;;  %v973_v42 = vrot.slane %v968_v40, %v9077_v12  ;;  %v11073_v25 = vld [vmem:[#allocation64_spill] sm:$0xff] }
 0x261   :  { %v898_v28 = vmul.f32 %v895_v32, %v9148_v27  ;;  %v896_v10 = vadd.f32 0.5, %v893_v62  ;;  %v977_v27 = vrot.slane %v968_v40, %v9079_v15  ;;  %v11074_v32 = vld [vmem:[#allocation65_spill] sm:$0xff]  ;;  %v11077_v62 = vld [vmem:[#allocation68_spill] sm:$0xff] }
 0x263   :  { %v9403_v3 = vadd.f32 %v899_v20, %v898_v28  ;;  %v11075_v20 = vld [vmem:[#allocation66_spill] sm:$0xff]  ;;  %v11076_v28 = vld [vmem:[#allocation67_spill] sm:$0xff] }
 0x265   :  { %8476 = vtanh.f32 %v9403_v3 }
 0x272   :  { %v8477_v58 = vpop.eup %8476 }
 0x273   :  { %v902_v19 = vmul.f32 %v8477_v58, %v896_v10  ;;  %v11078_v10 = vld [vmem:[#allocation69_spill] sm:$0xff] }
 0x275   :  { %v9406_v36 = vpack.c.bf16 %v902_v19, %v902_v19 }
 0x277   :  { %1637 = vmatmul.mubr.bf16.vlgmr.msra.gmra.mxu0 %v9406_v36  ;;  %1678 = vmatmul.mubr.bf16.vlgmr.msra.gmra.mxu1 %v9406_v36 }
 0x278   :  { %2116 = vmatpush1.bf16.msra.mxu0 %v9154_v21  ;;  %2157 = vmatpush1.bf16.msra.mxu1 %v9156_v14 }
 0x279   :  { %2117 = vmatprep.subr.bf16.mxu0 %v9160_v17  ;;  %2158 = vmatprep.subr.bf16.mxu1 %v9162_v43 }
 0x27c   :  { %2118 = vmatpush1.bf16.msra.mxu0 %v9168_v47  ;;  %2159 = vmatpush1.bf16.msra.mxu1 %v9170_v49 }
 0x27d   :  { %2119 = vmatprep.subr.bf16.mxu0 %v9174_v56  ;;  %2160 = vmatprep.subr.bf16.mxu1 %v9176_v59  ;;  %v985_v59 = vrot.slane %v968_v40, %v9113_v53 }
 0x280   :  { %2120 = vmatpush1.bf16.msra.mxu0 %v9180_v61  ;;  %2161 = vmatpush1.bf16.msra.mxu1 %v9182_v63 }
 0x281   :  { %2121 = vmatprep.subr.bf16.mxu0 %v9186_v2  ;;  %2162 = vmatprep.subr.bf16.mxu1 %v9188_v4 }
 0x284   :  { %2122 = vmatpush1.bf16.msra.mxu0 %v9192_v6  ;;  %2163 = vmatpush1.bf16.msra.mxu1 %v9194_v7 }
 0x285   :  { %2123 = vmatprep.subr.bf16.mxu0 %v9198_v11  ;;  %2164 = vmatprep.subr.bf16.mxu1 %v9200_v13  ;;  %v981_v11 = vrot.slane %v968_v40, %v9111_v51  ;;  %v11080_v40 = vld [vmem:[#allocation70_spill] sm:$0xff] }
 0x288   :  { %v1344_v21 = vpop.f32.mrf.mxu0  ;;  %v1385_v14 = vpop.f32.mrf.mxu1  ;;  %2124 = vmatpush1.bf16.msra.mxu0 %v9204_v23  ;;  %2165 = vmatpush1.bf16.msra.mxu1 %v9206_v54 }
 0x289   :  { %v1345_v17 = vadd.f32 %v1344_v21, %v973_v42  ;;  %2125 = vmatprep.subr.bf16.mxu0 %v9210_v57  ;;  %2166 = vmatprep.subr.bf16.mxu1 %v9212_v24  ;;  %v1386_v13 = vadd.f32 %v1385_v14, %v981_v11  ;;  %v11060_v24 = vld [vmem:[#allocation51_spill] sm:$0xff]  ;;  %v11082_v21 = vld [vmem:[#allocation72_spill] sm:$0xff]  ;;  %v11083_v14 = vld [vmem:[#allocation73_spill] sm:$0xff] }
 0x28a   :  { %v1346_v43 = vpop.f32.mrf.mxu0  ;;  %v1387_v47 = vpop.f32.mrf.mxu1  ;;  %v11081_v42 = vld [vmem:[#allocation71_spill] sm:$0xff] }
 0x28b   :  { %v1392_v49 = vmul.f32 0.5, %v1345_v17  ;;  %v1347_v56 = vadd.f32 %v1346_v43, %v977_v27  ;;  %v1388_v7 = vadd.f32 %v1387_v47, %v985_v59  ;;  %v1394_v23 = vmul.f32 0.5, %v1386_v13  ;;  %v11085_v43 = vld [vmem:[#allocation74_spill] sm:$0xff]  ;;  %v11086_v47 = vld [vmem:[#allocation75_spill] sm:$0xff] }
 0x28c   :  { %v1348_v61 = vpop.f32.mrf.mxu0  ;;  %v1389_v63 = vpop.f32.mrf.mxu1  ;;  %2126 = vmatpush1.bf16.msra.mxu0 %v9216_v52  ;;  %2167 = vmatpush1.bf16.msra.mxu1 %v9218_v55  ;;  %v11062_v55 = vld [vmem:[#allocation53_spill] sm:$0xff]  ;;  %v11084_v17 = vmov 0   ;;  %v11089_v59 = vld [vmem:[#allocation78_spill] sm:$0xff]  ;;  %v11094_v13 = vld [vmem:[#allocation83_spill] sm:$0xff] }
 0x28d   :  { %8478 = vtanh.f32 %v1392_v49  ;;  %v1393_v2 = vmul.f32 0.5, %v1347_v56  ;;  %2127 = vmatprep.subr.bf16.mxu0 %v9222_v29  ;;  %2168 = vmatprep.subr.bf16.mxu1 %v9224_v33  ;;  %v11063_v33 = vld [vmem:[#allocation54_spill] sm:$0xff]  ;;  %v11087_v49 = vld [vmem:[#allocation76_spill] sm:$0xff]  ;;  %v11088_v56 = vld [vmem:[#allocation77_spill] sm:$0xff] }
 0x28e   :  { %v1349_v4 = vpop.f32.mrf.mxu0  ;;  %v1390_v6 = vpop.f32.mrf.mxu1  ;;  %v11090_v61 = vld [vmem:[#allocation79_spill] sm:$0xff]  ;;  %v11091_v63 = vld [vmem:[#allocation80_spill] sm:$0xff] }
 0x28f   :  { %8480 = vtanh.f32 %v1393_v2  ;;  %v9501_v2 = vld [vmem:[#allocation3 + $0xe8] ss:$16 sps:$4 sm:$0xff]  }
 0x290   :  { %2128 = vmatpush1.bf16.msra.mxu0 %v9228_v35  ;;  %2169 = vmatpush1.bf16.msra.mxu1 %v9230_v16  ;;  %8482 = vtanh.f32 %v1388_v7  ;;  %v11064_v35 = vld [vmem:[#allocation55_spill] sm:$0xff]  ;;  %v11065_v16 = vld [vmem:[#allocation56_spill] sm:$0xff]  ;;  %v11092_v4 = vld [vmem:[#allocation81_spill] sm:$0xff] }
 0x291   :  { %2129 = vmatprep.subr.bf16.mxu0 %v9234_v45  ;;  %2170 = vmatprep.subr.bf16.mxu1 %v9236_v0  ;;  %8484 = vtanh.f32 %v1394_v23  ;;  %v11066_v45 = vld [vmem:[#allocation57_spill] sm:$0xff]  ;;  %v11093_v6 = vld [vmem:[#allocation82_spill] sm:$0xff]  ;;  %v11095_v23 = vld [vmem:[#allocation84_spill] sm:$0xff] }
 0x292   :  { %v9507_v7 = vld [vmem:[#allocation3 + $0xcc] ss:$16 sps:$4 sm:$0xff]   ;;  %v9509_v11 = vld [vmem:[#allocation3 + $0xc8] ss:$16 sps:$4 sm:$0xff]  }
 0x294   :  { %2130 = vmatpush1.bf16.msra.mxu0 %v9240_v18  ;;  %2171 = vmatpush1.bf16.msra.mxu1 %v9242_v41  ;;  %v11059_v41 = vld [vmem:[#allocation50_spill] sm:$0xff] }
 0x295   :  { %2131 = vmatprep.subr.bf16.mxu0 %v9246_v50  ;;  %2172 = vmatprep.subr.bf16.mxu1 %v9248_v48  ;;  %v11057_v48 = vld [vmem:[#allocation48_spill] sm:$0xff] }
 0x298   :  { %2132 = vmatpush2.bf16.msra.mxu0 %v9252_v37  ;;  %2173 = vmatpush2.bf16.msra.mxu1 %v9254_v39  ;;  %v11058_v37 = vld [vmem:[#allocation49_spill] sm:$0xff] }
 0x299   :  { %2133 = vmatprep.subr.bf16.mxu0 %v9258_v46  ;;  %2174 = vmatprep.subr.bf16.mxu1 %v9260_v44  ;;  %v7041_v46 = vld [vmem:[%s10834_s9 + $0x8] sm:$0xff] }
 0x29a   :  { %v8479_v0 = vpop.eup %8478 }
 0x29b   :  { %v1398_v54 = vmul.f32 0.5, %v8479_v0  ;;  %v9515_v0 = vld [vmem:[#allocation3 + $0xac] ss:$16 sps:$4 sm:$0xff]  }
 0x29c   :  { %v8481_v57 = vpop.eup %8480  ;;  %2134 = vmatpush2.bf16.msra.mxu0 %v9264_v26  ;;  %2175 = vmatpush2.bf16.msra.mxu1 %v9266_v31  ;;  %v11061_v31 = vld [vmem:[#allocation52_spill] sm:$0xff] }
 0x29d   :  { %v1401_v18 = vadd.f32 0.5, %v1398_v54  ;;  %v1399_v50 = vmul.f32 0.5, %v8481_v57  ;;  %2135 = vmatprep.subr.bf16.mxu0 %v11057_v48  ;;  %2176 = vmatprep.subr.bf16.mxu1 %v11058_v37  ;;  %v8483_v44 = vpop.eup %8482  ;;  %v9517_v54 = vld [vmem:[#allocation3 + $0xa8] ss:$16 sps:$4 sm:$0xff]   ;;  %v9525_v48 = vld [vmem:[#allocation3 + $0x8c] ss:$16 sps:$4 sm:$0xff]  }
 0x29e   :  { %v8485_v8 = vpop.eup %8484  ;;  %v11096_v57 = vld [vmem:[#allocation85_spill] sm:$0xff]  ;;  %v9527_v37 = vld [vmem:[#allocation3 + $0x6c] ss:$16 sps:$4 sm:$0xff]  }
 0x29f   :  { %v1402_v39 = vadd.f32 0.5, %v1399_v50  ;;  %v1406_v52 = vmul.f32 %v8483_v44, %v1401_v18  ;;  %v1400_v38 = vmul.f32 0.5, %v8485_v8  ;;  %v11097_v18 = vld [vmem:[#allocation86_spill] sm:$0xff]  ;;  %v11100_v8 = vld [vmem:[#allocation23_spill] sm:$0xff] }
 0x2a0   :  { %2136 = vmatpush2.bf16.msra.mxu0 %v11059_v41  ;;  %2177 = vmatpush2.bf16.msra.mxu1 %v11060_v24  ;;  %v9523_v50 = vld [vmem:[#allocation3 + $0x88] ss:$16 sps:$4 sm:$0xff]   ;;  %v9535_v44 = vld [vmem:[#allocation3 + $0x4c] ss:$16 sps:$4 sm:$0xff]  }
 0x2a1   :  { %v1405_v26 = vmul.f32 %v7041_v46, %v1402_v39  ;;  %2137 = vmatprep.subr.bf16.mxu0 %v11061_v31  ;;  %2178 = vmatprep.subr.bf16.mxu1 %v11062_v55  ;;  %v1403_v60 = vadd.f32 0.5, %v1400_v38  ;;  %v11098_v46 = vld [vmem:[#allocation87_spill] sm:$0xff]  ;;  %v9541_v24 = vld [vmem:[#allocation3 + $0x2c] ss:$16 sps:$4 sm:$0xff]  }
 0x2a2   :  { %v9532_v39 = vld [vmem:[#allocation3 + $0x68] ss:$16 sps:$4 sm:$0xff]  }
 0x2a3   :  { %v9461_v29 = vadd.f32 %v1406_v52, %v1405_v26  ;;  %v9538_v41 = vld [vmem:[#allocation3 + $0x48] ss:$16 sps:$4 sm:$0xff]   ;;  %v9547_v52 = vld [vmem:[#allocation3 + $0xc] ss:$16 sps:$4 sm:$0xff]  }
 0x2a4   :  { %2138 = vmatpush2.bf16.msra.mxu0 %v11063_v33  ;;  %2179 = vmatpush2.bf16.msra.mxu1 %v11064_v35  ;;  %v9544_v26 = vld [vmem:[#allocation3 + $0x28] ss:$16 sps:$4 sm:$0xff]   ;;  %v9556_v33 = vld [vmem:[#allocation8 + $0xec] ss:$16 sps:$4 sm:$0xff]  }
 0x2a5   :  { %8486 = vtanh.f32 %v9461_v29  ;;  %2139 = vmatprep.subr.bf16.mxu0 %v11065_v16  ;;  %2180 = vmatprep.subr.bf16.mxu1 %v11066_v45  ;;  %v9550_v31 = vld [vmem:[#allocation3 + $0x8] ss:$16 sps:$4 sm:$0xff]  }
 0x2a6   :  { %v9553_v55 = vld [vmem:[#allocation8 + $0xe4] ss:$16 sps:$4 sm:$0xff]  }
 0x2a7   :  { %v11099_v45 = vld [vmem:[#allocation22_spill] sm:$0xff] }
 0x2a8   :  { %2140 = vmatpush2.bf16.msra.mxu0 %v11067_v30  ;;  %2181 = vmatpush2.bf16.msra.mxu1 %v11068_v34 }
 0x2a9   :  { %2141 = vmatprep.subr.bf16.mxu0 %v11069_v1  ;;  %2182 = vmatprep.subr.bf16.mxu1 %v11070_v9 }
 0x2ac   :  { %2142 = vmatpush2.bf16.msra.mxu0 %v11071_v22  ;;  %2183 = vmatpush2.bf16.msra.mxu1 %v11072_v5 }
 0x2ad   :  { %2143 = vmatprep.subr.bf16.mxu0 %v11073_v25  ;;  %2184 = vmatprep.subr.bf16.mxu1 %v11074_v32  ;;  %v11101_v32 = vld [vmem:[#allocation37_spill] sm:$0xff] }
 0x2b0   :  { %2144 = vmatpush2.bf16.msra.mxu0 %v11075_v20  ;;  %2185 = vmatpush2.bf16.msra.mxu1 %v11076_v28 }
 0x2b1   :  { %2145 = vmatprep.subr.bf16.mxu0 %v11077_v62  ;;  %2186 = vmatprep.subr.bf16.mxu1 %v11078_v10  ;;  %v11102_v62 = vld [vmem:[#allocation36_spill] sm:$0xff] }
 0x2b2   :  { %v8487_v58 = vpop.eup %8486 }
 0x2b3   :  { %v9480_v19 = vmul.f32 %v8487_v58, %v1403_v60 }
 0x2b4   :  { %2146 = vmatpush2.bf16.msra.mxu0 %v11080_v40  ;;  %2187 = vmatpush2.bf16.msra.mxu1 %v11081_v42 }
 0x2b5   :  { %11079 = vst [vmem:[#allocation48_spill] sm:$0xff] %v9480_v19  ;;  %v1708_v27 = vpack.c.bf16 %v9480_v19, %v9480_v19  ;;  %2409 = vmatprep.subr.bf16.mxu0 %v11082_v21 }
 0x2b7   :  { %2147 = vmatprep.mubr.bf16.mxu0 %v1708_v27  ;;  %2188 = vmatprep.mubr.bf16.mxu1 %v1708_v27 }
 0x2b8   :  { %2148 = vmatmul.mubr.bf16.vlgmr.msra.gmra.mxu0 %v9406_v36  ;;  %2189 = vmatmul.mubr.bf16.vlgmr.msra.gmra.mxu1 %v9406_v36  ;;  %v9499_v36 = vld [vmem:[#allocation3 + $0xec] ss:$16 sps:$4 sm:$0xff]  }
 0x2b9   :  { %2410 = vmatpush1.bf16.msra.mxu0 %v11083_v14  ;;  %2441 = vmatprep.mubr.bf16.mxu0 %v11084_v17 }
 0x2ba   :  { %2411 = vmatprep.subr.bf16.mxu0 %v11085_v43  ;;  %2482 = vmatprep.mubr.bf16.mxu1 %v11084_v17 }
 0x2bb   :  { %2450 = vmatprep.subr.bf16.mxu1 %v9499_v36 }
 0x2bc   :  { %2451 = vmatpush1.bf16.msra.mxu1 %v9501_v2 }
 0x2bd   :  { %2412 = vmatpush1.bf16.msra.mxu0 %v11086_v47  ;;  %2452 = vmatprep.subr.bf16.mxu1 %v9507_v7 }
 0x2be   :  { %2413 = vmatprep.subr.bf16.mxu0 %v11087_v49 }
 0x2c0   :  { %2453 = vmatpush1.bf16.msra.mxu1 %v9509_v11 }
 0x2c1   :  { %2414 = vmatpush1.bf16.msra.mxu0 %v11088_v56  ;;  %2454 = vmatprep.subr.bf16.mxu1 %v9515_v0 }
 0x2c2   :  { %2415 = vmatprep.subr.bf16.mxu0 %v11089_v59 }
 0x2c4   :  { %2455 = vmatpush1.bf16.msra.mxu1 %v9517_v54 }
 0x2c5   :  { %2416 = vmatpush1.bf16.msra.mxu0 %v11090_v61  ;;  %2456 = vmatprep.subr.bf16.mxu1 %v9525_v48 }
 0x2c6   :  { %2417 = vmatprep.subr.bf16.mxu0 %v11091_v63 }
 0x2c8   :  { %2457 = vmatpush1.bf16.msra.mxu1 %v9523_v50 }
 0x2c9   :  { %2418 = vmatpush1.bf16.msra.mxu0 %v11092_v4  ;;  %2458 = vmatprep.subr.bf16.mxu1 %v9527_v37 }
 0x2ca   :  { %2419 = vmatprep.subr.bf16.mxu0 %v11093_v6 }
 0x2cc   :  { %2459 = vmatpush1.bf16.msra.mxu1 %v9532_v39 }
 0x2cd   :  { %2420 = vmatpush1.bf16.msra.mxu0 %v11094_v13  ;;  %2460 = vmatprep.subr.bf16.mxu1 %v9535_v44 }
 0x2ce   :  { %2421 = vmatprep.subr.bf16.mxu0 %v11095_v23  ;;  %v9568_v23 = vld [vmem:[#allocation8 + $0xe0] ss:$16 sps:$4 sm:$0xff]  }
 0x2d0   :  { %2461 = vmatpush1.bf16.msra.mxu1 %v9538_v41 }
 0x2d1   :  { %2422 = vmatpush1.bf16.msra.mxu0 %v11096_v57  ;;  %2462 = vmatprep.subr.bf16.mxu1 %v9541_v24  ;;  %v9570_v57 = vld [vmem:[#allocation8 + $0xe8] ss:$16 sps:$4 sm:$0xff]  }
 0x2d2   :  { %2423 = vmatprep.subr.bf16.mxu0 %v11097_v18 }
 0x2d4   :  { %2463 = vmatpush1.bf16.msra.mxu1 %v9544_v26 }
 0x2d5   :  { %2424 = vmatpush1.bf16.msra.mxu0 %v11098_v46  ;;  %2464 = vmatprep.subr.bf16.mxu1 %v9547_v52  ;;  %v9574_v46 = vld [vmem:[#allocation8 + $0xc4] ss:$16 sps:$4 sm:$0xff]  }
 0x2d6   :  { %2920 = vmatprep.subr.bf16.mxu0 %v9553_v55 }
 0x2d8   :  { %2465 = vmatpush1.bf16.msra.mxu1 %v9550_v31 }
 0x2d9   :  { %2961 = vmatprep.subr.bf16.mxu1 %v9556_v33 }
 0x337   :  { %v1638_v35 = vpop.f32.mrf.mxu0  ;;  %v1679_v16 = vpop.f32.mrf.mxu1 }
 0x338   :  { %v1686_v30 = vadd.f32 %v1638_v35, %v11099_v45  ;;  %v1688_v10 = vadd.f32 %v1679_v16, %v11102_v62  ;;  %v9576_v35 = vld [vmem:[#allocation8 + $0xcc] ss:$16 sps:$4 sm:$0xff]   ;;  %v9584_v16 = vld [vmem:[#allocation8 + $0xc8] ss:$16 sps:$4 sm:$0xff]   ;;  %v9588_v45 = vld [vmem:[#allocation8 + $0xa4] ss:$16 sps:$4 sm:$0xff]  }
 0x339   :  { %v1640_v34 = vpop.f32.mrf.mxu0  ;;  %v1681_v1 = vpop.f32.mrf.mxu1  ;;  %v9626_v62 = vld [vmem:[#allocation8 + $0x4c] ss:$16 sps:$4 sm:$0xff]  }
 0x33a   :  { %v1690_v9 = vmul.f32 0.5, %v1686_v30  ;;  %v1687_v22 = vadd.f32 %v1640_v34, %v11100_v8  ;;  %v1689_v20 = vadd.f32 %v1681_v1, %v11101_v32  ;;  %v1692_v58 = vmul.f32 0.5, %v1688_v10  ;;  %v9590_v30 = vld [vmem:[#allocation8 + $0xac] ss:$16 sps:$4 sm:$0xff]   ;;  %v9594_v34 = vld [vmem:[#allocation8 + $0xa0] ss:$16 sps:$4 sm:$0xff]  }
 0x33b   :  { %v1642_v5 = vpop.f32.mrf.mxu0  ;;  %v1683_v38 = vpop.f32.mrf.mxu1  ;;  %v9596_v1 = vld [vmem:[#allocation8 + $0xa8] ss:$16 sps:$4 sm:$0xff]   ;;  %v9602_v8 = vld [vmem:[#allocation8 + $0x8c] ss:$16 sps:$4 sm:$0xff]   ;;  %v1773_v32 = vld [vmem:[#allocation9] sm:$0xf] }
 0x33c   :  { %8488 = vtanh.f32 %v1690_v9  ;;  %v1691_v25 = vmul.f32 0.5, %v1687_v22  ;;  %v9600_v9 = vld [vmem:[#allocation8 + $0x84] ss:$16 sps:$4 sm:$0xff]   ;;  %v9606_v22 = vld [vmem:[#allocation8 + $0x80] ss:$16 sps:$4 sm:$0xff]   ;;  %11103 = vst [vmem:[#allocation49_spill] sm:$0xff] %v9626_v62  ;;  %v1778_v10 = vrot.slane %v1773_v32, %v9077_v12 }
 0x33d   :  { %v1643_v28 = vpop.f32.mrf.mxu0  ;;  %v1684_v60 = vpop.f32.mrf.mxu1  ;;  %v9608_v5 = vld [vmem:[#allocation8 + $0x88] ss:$16 sps:$4 sm:$0xff]   ;;  %v9612_v38 = vld [vmem:[#allocation8 + $0x64] ss:$16 sps:$4 sm:$0xff]  }
 0x33e   :  { %8490 = vtanh.f32 %v1691_v25  ;;  %v9614_v25 = vld [vmem:[#allocation8 + $0x6c] ss:$16 sps:$4 sm:$0xff]   ;;  %v9620_v28 = vld [vmem:[#allocation8 + $0x68] ss:$16 sps:$4 sm:$0xff]   ;;  %v9624_v60 = vld [vmem:[#allocation8 + $0x44] ss:$16 sps:$4 sm:$0xff]  }
 0x33f   :  { %8492 = vtanh.f32 %v1689_v20  ;;  %v9618_v20 = vld [vmem:[#allocation8 + $0x60] ss:$16 sps:$4 sm:$0xff]  }
 0x340   :  { %8494 = vtanh.f32 %v1692_v58  ;;  %v1782_v58 = vrot.slane %v1773_v32, %v9079_v15 }
 0x349   :  { %v8489_v40 = vpop.eup %8488 }
 0x34a   :  { %v1696_v42 = vmul.f32 0.5, %v8489_v40  ;;  %v9632_v40 = vld [vmem:[#allocation8 + $0x40] ss:$16 sps:$4 sm:$0xff]  }
 0x34b   :  { %v8491_v27 = vpop.eup %8490 }
 0x34c   :  { %v1699_v21 = vadd.f32 0.5, %v1696_v42  ;;  %v1697_v14 = vmul.f32 0.5, %v8491_v27  ;;  %v8493_v43 = vpop.eup %8492  ;;  %v9634_v42 = vld [vmem:[#allocation8 + $0x48] ss:$16 sps:$4 sm:$0xff]  }
 0x34d   :  { %v8495_v61 = vpop.eup %8494 }
 0x34e   :  { %v1700_v47 = vadd.f32 0.5, %v1697_v14  ;;  %v1704_v49 = vmul.f32 %v8493_v43, %v1699_v21  ;;  %v1698_v63 = vmul.f32 0.5, %v8495_v61  ;;  %v9638_v14 = vld [vmem:[#allocation8 + $0x24] ss:$16 sps:$4 sm:$0xff]   ;;  %v9640_v43 = vld [vmem:[#allocation8 + $0x2c] ss:$16 sps:$4 sm:$0xff]  }
 0x34f   :  { %11104 = vst [vmem:[#allocation50_spill] sm:$0xff] %v9640_v43 }
 0x350   :  { %v1703_v56 = vmul.f32 %v1700_v47, %v9403_v3  ;;  %v1701_v4 = vadd.f32 0.5, %v1698_v63  ;;  %v9582_v3 = vld [vmem:[#allocation8 + $0xc0] ss:$16 sps:$4 sm:$0xff]  }
 0x352   :  { %v9565_v59 = vadd.f32 %v1704_v49, %v1703_v56 }
 0x354   :  { %8496 = vtanh.f32 %v9565_v59 }
 0x361   :  { %v8497_v6 = vpop.eup %8496 }
 0x362   :  { %v1707_v13 = vmul.f32 %v8497_v6, %v1701_v4  ;;  %v1790_v4 = vrot.slane %v1773_v32, %v9113_v53  ;;  %v9645_v6 = vld [vmem:[#allocation8 + $0x20] ss:$16 sps:$4 sm:$0xff]  }
 0x364   :  { %v9572_v18 = vpack.c.bf16 %v1707_v13, %v1707_v13  ;;  %v9647_v13 = vld [vmem:[#allocation8 + $0x28] ss:$16 sps:$4 sm:$0xff]  }
 0x366   :  { %2442 = vmatmul.mubr.bf16.vlgmr.msra.gmra.mxu0 %v9572_v18  ;;  %2483 = vmatmul.mubr.bf16.vlgmr.msra.gmra.mxu1 %v9572_v18 }
 0x367   :  { %2921 = vmatpush1.bf16.msra.mxu0 %v9568_v23  ;;  %2962 = vmatpush1.bf16.msra.mxu1 %v9570_v57 }
 0x368   :  { %2922 = vmatprep.subr.bf16.mxu0 %v9574_v46  ;;  %2963 = vmatprep.subr.bf16.mxu1 %v9576_v35 }
 0x36b   :  { %2923 = vmatpush1.bf16.msra.mxu0 %v9582_v3  ;;  %2964 = vmatpush1.bf16.msra.mxu1 %v9584_v16 }
 0x36c   :  { %2924 = vmatprep.subr.bf16.mxu0 %v9588_v45  ;;  %2965 = vmatprep.subr.bf16.mxu1 %v9590_v30 }
 0x36f   :  { %2925 = vmatpush1.bf16.msra.mxu0 %v9594_v34  ;;  %2966 = vmatpush1.bf16.msra.mxu1 %v9596_v1 }
 0x370   :  { %2926 = vmatprep.subr.bf16.mxu0 %v9600_v9  ;;  %2967 = vmatprep.subr.bf16.mxu1 %v9602_v8 }
 0x373   :  { %2927 = vmatpush1.bf16.msra.mxu0 %v9606_v22  ;;  %2968 = vmatpush1.bf16.msra.mxu1 %v9608_v5 }
 0x374   :  { %2928 = vmatprep.subr.bf16.mxu0 %v9612_v38  ;;  %2969 = vmatprep.subr.bf16.mxu1 %v9614_v25 }
 0x377   :  { %2929 = vmatpush1.bf16.msra.mxu0 %v9618_v20  ;;  %2970 = vmatpush1.bf16.msra.mxu1 %v9620_v28 }
 0x378   :  { %v2149_v27 = vpop.f32.mrf.mxu0  ;;  %v2190_v21 = vpop.f32.mrf.mxu1  ;;  %2930 = vmatprep.subr.bf16.mxu0 %v9624_v60  ;;  %2971 = vmatprep.subr.bf16.mxu1 %v9626_v62 }
 0x379   :  { %v2150_v47 = vadd.f32 %v2149_v27, %v1778_v10  ;;  %v9651_v10 = vld [vmem:[#allocation8 + $0x4] ss:$16 sps:$4 sm:$0xff]   ;;  %v9653_v27 = vld [vmem:[#allocation8 + $0xc] ss:$16 sps:$4 sm:$0xff]  }
 0x37a   :  { %v2151_v49 = vpop.f32.mrf.mxu0  ;;  %v2192_v56 = vpop.f32.mrf.mxu1  ;;  %11105 = vst [vmem:[#allocation51_spill] sm:$0xff] %v9653_v27 }
 0x37b   :  { %v2197_v61 = vmul.f32 0.5, %v2150_v47  ;;  %v2152_v63 = vadd.f32 %v2151_v49, %v1782_v58  ;;  %2931 = vmatpush1.bf16.msra.mxu0 %v9632_v40  ;;  %2972 = vmatpush1.bf16.msra.mxu1 %v9634_v42  ;;  %v2193_v53 = vadd.f32 %v2192_v56, %v1790_v4  ;;  %v9670_v56 = vld [vmem:[#allocation8 + $0x1e0] ss:$16 sps:$4 sm:$0xff]   ;;  %v9672_v4 = vld [vmem:[#allocation8 + $0x1e8] ss:$16 sps:$4 sm:$0xff]  }
 0x37c   :  { %v2153_v19 = vpop.f32.mrf.mxu0  ;;  %v2194_v62 = vpop.f32.mrf.mxu1  ;;  %2932 = vmatprep.subr.bf16.mxu0 %v9638_v14  ;;  %2973 = vmatprep.subr.bf16.mxu1 %v9640_v43  ;;  %v9663_v43 = vld [vmem:[#allocation8 + $0x1e4] ss:$16 sps:$4 sm:$0xff]   ;;  %11110 = vst [vmem:[#allocation56_spill] sm:$0xff] %v9670_v56  ;;  %11111 = vst [vmem:[#allocation57_spill] sm:$0xff] %v9672_v4 }
 0x37d   :  { %8498 = vtanh.f32 %v2197_v61  ;;  %v2198_v58 = vmul.f32 0.5, %v2152_v63  ;;  %v9657_v19 = vld [vmem:[#allocation8] ss:$16 sps:$4 sm:$0xff]   ;;  %v9659_v62 = vld [vmem:[#allocation8 + $0x8] ss:$16 sps:$4 sm:$0xff]   ;;  %11108 = vst [vmem:[#allocation54_spill] sm:$0xff] %v9663_v43  ;;  %v1786_v63 = vrot.slane %v1773_v32, %v9111_v51 }
 0x37e   :  { %v2154_v47 = vpop.f32.mrf.mxu0  ;;  %v2195_v49 = vpop.f32.mrf.mxu1  ;;  %11106 = vst [vmem:[#allocation52_spill] sm:$0xff] %v9657_v19  ;;  %11107 = vst [vmem:[#allocation53_spill] sm:$0xff] %v9659_v62  ;;  %v9665_v61 = vld [vmem:[#allocation8 + $0x1ec] ss:$16 sps:$4 sm:$0xff]   ;;  %v9684_v32 = vld [vmem:[#allocation8 + $0x1c8] ss:$16 sps:$4 sm:$0xff]  }
 0x37f   :  { %8500 = vtanh.f32 %v2198_v58  ;;  %2933 = vmatpush1.bf16.msra.mxu0 %v9645_v6  ;;  %2974 = vmatpush1.bf16.msra.mxu1 %v9647_v13  ;;  %11109 = vst [vmem:[#allocation55_spill] sm:$0xff] %v9665_v61  ;;  %v9676_v58 = vld [vmem:[#allocation8 + $0x1c4] ss:$16 sps:$4 sm:$0xff]   ;;  %v9678_v47 = vld [vmem:[#allocation8 + $0x1cc] ss:$16 sps:$4 sm:$0xff]   ;;  %v2191_v49 = vadd.f32 %v2190_v21, %v1786_v63  ;;  %11115 = vst [vmem:[#allocation61_spill] sm:$0xff] %v9684_v32 }
 0x380   :  { %2934 = vmatprep.subr.bf16.mxu0 %v9651_v10  ;;  %2975 = vmatprep.subr.bf16.mxu1 %v9653_v27  ;;  %8502 = vtanh.f32 %v2193_v53  ;;  %11112 = vst [vmem:[#allocation58_spill] sm:$0xff] %v9676_v58  ;;  %11113 = vst [vmem:[#allocation59_spill] sm:$0xff] %v9678_v47  ;;  %v9682_v53 = vld [vmem:[#allocation8 + $0x1c0] ss:$16 sps:$4 sm:$0xff]   ;;  %v9696_v63 = vld [vmem:[#allocation8 + $0x1a8] ss:$16 sps:$4 sm:$0xff]  }
 0x381   :  { %11114 = vst [vmem:[#allocation60_spill] sm:$0xff] %v9682_v53  ;;  %v9694_v21 = vld [vmem:[#allocation8 + $0x1a0] ss:$16 sps:$4 sm:$0xff]   ;;  %11118 = vst [vmem:[#allocation64_spill] sm:$0xff] %v9696_v63 }
 0x383   :  { %2935 = vmatpush1.bf16.msra.mxu0 %v9657_v19  ;;  %2976 = vmatpush1.bf16.msra.mxu1 %v9659_v62  ;;  %v2199_v62 = vmul.f32 0.5, %v2191_v49 }
 0x384   :  { %2936 = vmatprep.subr.bf16.mxu0 %v9663_v43  ;;  %2977 = vmatprep.subr.bf16.mxu1 %v9665_v61  ;;  %v9688_v43 = vld [vmem:[#allocation8 + $0x1a4] ss:$16 sps:$4 sm:$0xff]   ;;  %v9690_v61 = vld [vmem:[#allocation8 + $0x1ac] ss:$16 sps:$4 sm:$0xff]  }
 0x385   :  { %11116 = vst [vmem:[#allocation62_spill] sm:$0xff] %v9688_v43  ;;  %11117 = vst [vmem:[#allocation63_spill] sm:$0xff] %v9690_v61  ;;  %8504 = vtanh.f32 %v2199_v62 }
 0x387   :  { %2937 = vmatpush2.bf16.msra.mxu0 %v9670_v56  ;;  %2978 = vmatpush2.bf16.msra.mxu1 %v9672_v4 }
 0x388   :  { %2938 = vmatprep.subr.bf16.mxu0 %v9676_v58  ;;  %2979 = vmatprep.subr.bf16.mxu1 %v9678_v47  ;;  %v9700_v47 = vld [vmem:[#allocation8 + $0x184] ss:$16 sps:$4 sm:$0xff]   ;;  %v9702_v58 = vld [vmem:[#allocation8 + $0x18c] ss:$16 sps:$4 sm:$0xff]  }
 0x389   :  { %11119 = vst [vmem:[#allocation65_spill] sm:$0xff] %v9700_v47  ;;  %11120 = vst [vmem:[#allocation66_spill] sm:$0xff] %v9702_v58 }
 0x38a   :  { %v8499_v19 = vpop.eup %8498 }
 0x38b   :  { %v2203_v51 = vmul.f32 0.5, %v8499_v19  ;;  %2939 = vmatpush2.bf16.msra.mxu0 %v9682_v53  ;;  %2980 = vmatpush2.bf16.msra.mxu1 %v9684_v32  ;;  %v9706_v32 = vld [vmem:[#allocation8 + $0x180] ss:$16 sps:$4 sm:$0xff]   ;;  %v9708_v53 = vld [vmem:[#allocation8 + $0x188] ss:$16 sps:$4 sm:$0xff]  }
 0x38c   :  { %v8501_v4 = vpop.eup %8500  ;;  %2940 = vmatprep.subr.bf16.mxu0 %v9688_v43  ;;  %2981 = vmatprep.subr.bf16.mxu1 %v9690_v61  ;;  %v9712_v61 = vld [vmem:[#allocation8 + $0x164] ss:$16 sps:$4 sm:$0xff]   ;;  %v9714_v43 = vld [vmem:[#allocation8 + $0x16c] ss:$16 sps:$4 sm:$0xff]  }
 0x38d   :  { %v2206_v49 = vadd.f32 0.5, %v2203_v51  ;;  %v2204_v19 = vmul.f32 0.5, %v8501_v4  ;;  %v8503_v27 = vpop.eup %8502  ;;  %11121 = vst [vmem:[#allocation67_spill] sm:$0xff] %v9714_v43 }
 0x38f   :  { %v2207_v56 = vadd.f32 0.5, %v2204_v19  ;;  %2941 = vmatpush2.bf16.msra.mxu0 %v9694_v21  ;;  %2982 = vmatpush2.bf16.msra.mxu1 %v9696_v63  ;;  %v2211_v62 = vmul.f32 %v8503_v27, %v2206_v49  ;;  %v9721_v19 = vld [vmem:[#allocation8 + $0x160] ss:$16 sps:$4 sm:$0xff]   ;;  %v9723_v63 = vld [vmem:[#allocation8 + $0x168] ss:$16 sps:$4 sm:$0xff]  }
 0x390   :  { %2942 = vmatprep.subr.bf16.mxu0 %v9700_v47  ;;  %2983 = vmatprep.subr.bf16.mxu1 %v9702_v58  ;;  %11122 = vst [vmem:[#allocation68_spill] sm:$0xff] %v9721_v19  ;;  %11123 = vst [vmem:[#allocation69_spill] sm:$0xff] %v9723_v63  ;;  %v9727_v58 = vld [vmem:[#allocation8 + $0x144] ss:$16 sps:$4 sm:$0xff]   ;;  %v9729_v47 = vld [vmem:[#allocation8 + $0x14c] ss:$16 sps:$4 sm:$0xff]  }
 0x391   :  { %v2210_v51 = vmul.f32 %v2207_v56, %v9461_v29  ;;  %11124 = vst [vmem:[#allocation70_spill] sm:$0xff] %v9727_v58  ;;  %11125 = vst [vmem:[#allocation71_spill] sm:$0xff] %v9729_v47  ;;  %v9734_v29 = vld [vmem:[#allocation8 + $0x140] ss:$16 sps:$4 sm:$0xff]   ;;  %v9736_v27 = vld [vmem:[#allocation8 + $0x148] ss:$16 sps:$4 sm:$0xff]  }
 0x392   :  { %11126 = vst [vmem:[#allocation72_spill] sm:$0xff] %v9734_v29  ;;  %11127 = vst [vmem:[#allocation73_spill] sm:$0xff] %v9736_v27  ;;  %v9740_v56 = vld [vmem:[#allocation8 + $0x124] ss:$16 sps:$4 sm:$0xff]   ;;  %v9742_v49 = vld [vmem:[#allocation8 + $0x12c] ss:$16 sps:$4 sm:$0xff]  }
 0x393   :  { %v9717_v4 = vadd.f32 %v2211_v62, %v2210_v51  ;;  %2943 = vmatpush2.bf16.msra.mxu0 %v9706_v32  ;;  %2984 = vmatpush2.bf16.msra.mxu1 %v9708_v53  ;;  %11128 = vst [vmem:[#allocation74_spill] sm:$0xff] %v9740_v56  ;;  %11129 = vst [vmem:[#allocation75_spill] sm:$0xff] %v9742_v49  ;;  %v8505_v51 = vpop.eup %8504  ;;  %v9746_v62 = vld [vmem:[#allocation8 + $0x120] ss:$16 sps:$4 sm:$0xff]  }
 0x394   :  { %2944 = vmatprep.subr.bf16.mxu0 %v9712_v61  ;;  %2985 = vmatprep.subr.bf16.mxu1 %v9714_v43 }
 0x395   :  { %8506 = vtanh.f32 %v9717_v4 }
 0x397   :  { %2945 = vmatpush2.bf16.msra.mxu0 %v9721_v19  ;;  %2986 = vmatpush2.bf16.msra.mxu1 %v9723_v63  ;;  %v9748_v63 = vld [vmem:[#allocation8 + $0x128] ss:$16 sps:$4 sm:$0xff]   ;;  %v2205_v19 = vmul.f32 0.5, %v8505_v51 }
 0x398   :  { %2946 = vmatprep.subr.bf16.mxu0 %v9727_v58  ;;  %2987 = vmatprep.subr.bf16.mxu1 %v9729_v47  ;;  %v9752_v58 = vld [vmem:[#allocation8 + $0x104] ss:$16 sps:$4 sm:$0xff]   ;;  %v9754_v47 = vld [vmem:[#allocation8 + $0x10c] ss:$16 sps:$4 sm:$0xff]  }
 0x39b   :  { %2947 = vmatpush2.bf16.msra.mxu0 %v9734_v29  ;;  %2988 = vmatpush2.bf16.msra.mxu1 %v9736_v27  ;;  %v9758_v29 = vld [vmem:[#allocation8 + $0x100] ss:$16 sps:$4 sm:$0xff]   ;;  %v9760_v27 = vld [vmem:[#allocation8 + $0x108] ss:$16 sps:$4 sm:$0xff]  }
 0x39c   :  { %2948 = vmatprep.subr.bf16.mxu0 %v9740_v56  ;;  %2989 = vmatprep.subr.bf16.mxu1 %v9742_v49  ;;  %v2208_v56 = vadd.f32 0.5, %v2205_v19 }
 0x39f   :  { %2949 = vmatpush2.bf16.msra.mxu0 %v9746_v62  ;;  %2990 = vmatpush2.bf16.msra.mxu1 %v9748_v63 }
 0x3a0   :  { %2950 = vmatprep.subr.bf16.mxu0 %v9752_v58  ;;  %2991 = vmatprep.subr.bf16.mxu1 %v9754_v47 }
 0x3a2   :  { %v8507_v43 = vpop.eup %8506 }
 0x3a3   :  { %2951 = vmatpush2.bf16.msra.mxu0 %v9758_v29  ;;  %2992 = vmatpush2.bf16.msra.mxu1 %v9760_v27  ;;  %v9766_v49 = vmul.f32 %v8507_v43, %v2208_v56  ;;  %v11144_v43 = vld [vmem:[#allocation24_spill] sm:$0xff] }
 0x3a4   :  { %3255 = vmatprep.subr.bf16.mxu1 %v9499_v36  ;;  %v9783_v36 = vld [vmem:[#allocation3 + $0xe4] ss:$16 sps:$4 sm:$0xff]  }
 0x3a5   :  { %11130 = vst [vmem:[#allocation76_spill] sm:$0xff] %v9766_v49  ;;  %v2513_v51 = vpack.c.bf16 %v9766_v49, %v9766_v49  ;;  %3214 = vmatprep.subr.bf16.mxu0 %v9783_v36 }
 0x3a7   :  { %2952 = vmatprep.mubr.bf16.mxu0 %v2513_v51  ;;  %2993 = vmatprep.mubr.bf16.mxu1 %v2513_v51 }
 0x3a8   :  { %2953 = vmatmul.mubr.bf16.vlgmr.msra.gmra.mxu0 %v9572_v18  ;;  %2994 = vmatmul.mubr.bf16.vlgmr.msra.gmra.mxu1 %v9572_v18 }
 0x3a9   :  { %3256 = vmatpush1.bf16.msra.mxu1 %v9501_v2  ;;  %3246 = vmatprep.mubr.bf16.mxu0 %v11084_v17  ;;  %v9785_v2 = vld [vmem:[#allocation3 + $0xe0] ss:$16 sps:$4 sm:$0xff]  }
 0x3aa   :  { %3257 = vmatprep.subr.bf16.mxu1 %v9507_v7  ;;  %3287 = vmatprep.mubr.bf16.mxu1 %v11084_v17  ;;  %v9791_v7 = vld [vmem:[#allocation3 + $0xc4] ss:$16 sps:$4 sm:$0xff]  }
 0x3ab   :  { %3215 = vmatpush1.bf16.msra.mxu0 %v9785_v2 }
 0x3ac   :  { %3216 = vmatprep.subr.bf16.mxu0 %v9791_v7 }
 0x3ad   :  { %3258 = vmatpush1.bf16.msra.mxu1 %v9509_v11  ;;  %v9793_v11 = vld [vmem:[#allocation3 + $0xc0] ss:$16 sps:$4 sm:$0xff]  }
 0x3ae   :  { %3259 = vmatprep.subr.bf16.mxu1 %v9515_v0  ;;  %11131 = vst [vmem:[#allocation77_spill] sm:$0xff] %v9793_v11  ;;  %v9799_v0 = vld [vmem:[#allocation3 + $0xa4] ss:$16 sps:$4 sm:$0xff]  }
 0x3af   :  { %3217 = vmatpush1.bf16.msra.mxu0 %v9793_v11  ;;  %11132 = vst [vmem:[#allocation78_spill] sm:$0xff] %v9799_v0 }
 0x3b0   :  { %3218 = vmatprep.subr.bf16.mxu0 %v9799_v0 }
 0x3b1   :  { %3260 = vmatpush1.bf16.msra.mxu1 %v9517_v54  ;;  %v9801_v54 = vld [vmem:[#allocation3 + $0xa0] ss:$16 sps:$4 sm:$0xff]  }
 0x3b2   :  { %3261 = vmatprep.subr.bf16.mxu1 %v9525_v48  ;;  %11133 = vst [vmem:[#allocation79_spill] sm:$0xff] %v9801_v54  ;;  %v9809_v48 = vld [vmem:[#allocation3 + $0x84] ss:$16 sps:$4 sm:$0xff]  }
 0x3b3   :  { %3219 = vmatpush1.bf16.msra.mxu0 %v9801_v54  ;;  %11135 = vst [vmem:[#allocation81_spill] sm:$0xff] %v9809_v48 }
 0x3b4   :  { %3220 = vmatprep.subr.bf16.mxu0 %v9809_v48 }
 0x3b5   :  { %3262 = vmatpush1.bf16.msra.mxu1 %v9523_v50  ;;  %v9807_v50 = vld [vmem:[#allocation3 + $0x80] ss:$16 sps:$4 sm:$0xff]  }
 0x3b6   :  { %3263 = vmatprep.subr.bf16.mxu1 %v9527_v37  ;;  %11134 = vst [vmem:[#allocation80_spill] sm:$0xff] %v9807_v50  ;;  %v9811_v37 = vld [vmem:[#allocation3 + $0x64] ss:$16 sps:$4 sm:$0xff]  }
 0x3b7   :  { %11136 = vst [vmem:[#allocation82_spill] sm:$0xff] %v9811_v37  ;;  %3221 = vmatpush1.bf16.msra.mxu0 %v9807_v50 }
 0x3b8   :  { %3222 = vmatprep.subr.bf16.mxu0 %v9811_v37  ;;  %v11146_v37 = vld [vmem:[#allocation39_spill] sm:$0xff] }
 0x3b9   :  { %3264 = vmatpush1.bf16.msra.mxu1 %v9532_v39  ;;  %v9816_v39 = vld [vmem:[#allocation3 + $0x60] ss:$16 sps:$4 sm:$0xff]  }
 0x3ba   :  { %3265 = vmatprep.subr.bf16.mxu1 %v9535_v44  ;;  %11137 = vst [vmem:[#allocation83_spill] sm:$0xff] %v9816_v39  ;;  %v9820_v44 = vld [vmem:[#allocation3 + $0x44] ss:$16 sps:$4 sm:$0xff]  }
 0x3bb   :  { %11138 = vst [vmem:[#allocation84_spill] sm:$0xff] %v9820_v44  ;;  %3223 = vmatpush1.bf16.msra.mxu0 %v9816_v39 }
 0x3bc   :  { %3224 = vmatprep.subr.bf16.mxu0 %v9820_v44 }
 0x3bd   :  { %3266 = vmatpush1.bf16.msra.mxu1 %v9538_v41  ;;  %v9823_v41 = vld [vmem:[#allocation3 + $0x40] ss:$16 sps:$4 sm:$0xff]  }
 0x3be   :  { %3267 = vmatprep.subr.bf16.mxu1 %v9541_v24  ;;  %11139 = vst [vmem:[#allocation85_spill] sm:$0xff] %v9823_v41  ;;  %v9826_v24 = vld [vmem:[#allocation3 + $0x24] ss:$16 sps:$4 sm:$0xff]  }
 0x3bf   :  { %11140 = vst [vmem:[#allocation86_spill] sm:$0xff] %v9826_v24  ;;  %3225 = vmatpush1.bf16.msra.mxu0 %v9823_v41 }
 0x3c0   :  { %3226 = vmatprep.subr.bf16.mxu0 %v9826_v24  ;;  %v11145_v24 = vld [vmem:[#allocation25_spill] sm:$0xff] }
 0x3c1   :  { %3268 = vmatpush1.bf16.msra.mxu1 %v9544_v26  ;;  %v9829_v26 = vld [vmem:[#allocation3 + $0x20] ss:$16 sps:$4 sm:$0xff]  }
 0x3c2   :  { %3269 = vmatprep.subr.bf16.mxu1 %v9547_v52  ;;  %11141 = vst [vmem:[#allocation87_spill] sm:$0xff] %v9829_v26  ;;  %v9832_v52 = vld [vmem:[#allocation3 + $0x4] ss:$16 sps:$4 sm:$0xff]  }
 0x3c3   :  { %11142 = vst [vmem:[#allocation22_spill] sm:$0xff] %v9832_v52  ;;  %3227 = vmatpush1.bf16.msra.mxu0 %v9829_v26 }
 0x3c4   :  { %3228 = vmatprep.subr.bf16.mxu0 %v9832_v52 }
 0x3c5   :  { %3270 = vmatpush1.bf16.msra.mxu1 %v9550_v31  ;;  %v9835_v31 = vld [vmem:[#allocation3] ss:$16 sps:$4 sm:$0xff]  }
 0x3c6   :  { %3766 = vmatprep.subr.bf16.mxu1 %v9556_v33  ;;  %11143 = vst [vmem:[#allocation23_spill] sm:$0xff] %v9835_v31 }
 0x3c7   :  { %3229 = vmatpush1.bf16.msra.mxu0 %v9835_v31 }
 0x3c8   :  { %3725 = vmatprep.subr.bf16.mxu0 %v9553_v55  ;;  %v11147_v55 = vld [vmem:[#allocation38_spill] sm:$0xff] }
 0x426   :  { %v2443_v33 = vpop.f32.mrf.mxu0  ;;  %v2484_v18 = vpop.f32.mrf.mxu1 }
 0x427   :  { %v2491_v19 = vadd.f32 %v2443_v33, %v11144_v43  ;;  %v2493_v31 = vadd.f32 %v2484_v18, %v11147_v55  ;;  %v11156_v18 = vld [vmem:[#allocation55_spill] sm:$0xff] }
 0x428   :  { %v2445_v56 = vpop.f32.mrf.mxu0  ;;  %v2486_v51 = vpop.f32.mrf.mxu1 }
 0x429   :  { %v2495_v49 = vmul.f32 0.5, %v2491_v19  ;;  %v2492_v41 = vadd.f32 %v2445_v56, %v11145_v24  ;;  %v2494_v50 = vadd.f32 %v2486_v51, %v11146_v37  ;;  %v2497_v54 = vmul.f32 0.5, %v2493_v31  ;;  %v11157_v56 = vld [vmem:[#allocation56_spill] sm:$0xff]  ;;  %v11159_v51 = vld [vmem:[#allocation58_spill] sm:$0xff] }
 0x42a   :  { %v2447_v44 = vpop.f32.mrf.mxu0  ;;  %v2488_v39 = vpop.f32.mrf.mxu1 }
 0x42b   :  { %8508 = vtanh.f32 %v2495_v49  ;;  %v2496_v26 = vmul.f32 0.5, %v2492_v41 }
 0x42c   :  { %v2448_v52 = vpop.f32.mrf.mxu0  ;;  %v2489_v48 = vpop.f32.mrf.mxu1 }
 0x42d   :  { %8510 = vtanh.f32 %v2496_v26 }
 0x42e   :  { %8512 = vtanh.f32 %v2494_v50 }
 0x42f   :  { %8514 = vtanh.f32 %v2497_v54  ;;  %v11155_v54 = vld [vmem:[#allocation54_spill] sm:$0xff] }
 0x438   :  { %v8509_v0 = vpop.eup %8508 }
 0x439   :  { %v2501_v33 = vmul.f32 0.5, %v8509_v0  ;;  %v11154_v0 = vld [vmem:[#allocation53_spill] sm:$0xff] }
 0x43a   :  { %v8511_v43 = vpop.eup %8510 }
 0x43b   :  { %v2504_v11 = vadd.f32 0.5, %v2501_v33  ;;  %v2502_v19 = vmul.f32 0.5, %v8511_v43  ;;  %v8513_v24 = vpop.eup %8512  ;;  %v11161_v43 = vld [vmem:[#allocation60_spill] sm:$0xff] }
 0x43c   :  { %v8515_v48 = vpop.eup %8514 }
 0x43d   :  { %v2505_v44 = vadd.f32 0.5, %v2502_v19  ;;  %v2509_v39 = vmul.f32 %v8513_v24, %v2504_v11  ;;  %v2503_v50 = vmul.f32 0.5, %v8515_v48  ;;  %v11153_v11 = vld [vmem:[#allocation52_spill] sm:$0xff]  ;;  %v11162_v19 = vld [vmem:[#allocation61_spill] sm:$0xff] }
 0x43f   :  { %v2508_v49 = vmul.f32 %v2505_v44, %v9565_v59  ;;  %v2506_v37 = vadd.f32 0.5, %v2503_v50  ;;  %v2578_v59 = vld [vmem:[#allocation9] sm:$0xf]  ;;  %v11163_v44 = vld [vmem:[#allocation62_spill] sm:$0xff] }
 0x441   :  { %v9845_v41 = vadd.f32 %v2509_v39, %v2508_v49  ;;  %v11164_v39 = vld [vmem:[#allocation63_spill] sm:$0xff] }
 0x443   :  { %8516 = vtanh.f32 %v9845_v41 }
 0x450   :  { %v8517_v26 = vpop.eup %8516 }
 0x451   :  { %v2512_v52 = vmul.f32 %v8517_v26, %v2506_v37  ;;  %v11165_v37 = vld [vmem:[#allocation64_spill] sm:$0xff] }
 0x453   :  { %v9848_v31 = vpack.c.bf16 %v2512_v52, %v2512_v52  ;;  %v11166_v52 = vld [vmem:[#allocation65_spill] sm:$0xff] }
 0x455   :  { %3247 = vmatmul.mubr.bf16.vlgmr.msra.gmra.mxu0 %v9848_v31  ;;  %3288 = vmatmul.mubr.bf16.vlgmr.msra.gmra.mxu1 %v9848_v31 }
 0x456   :  { %3726 = vmatpush1.bf16.msra.mxu0 %v9568_v23  ;;  %3767 = vmatpush1.bf16.msra.mxu1 %v9570_v57  ;;  %v2583_v23 = vrot.slane %v2578_v59, %v9077_v12  ;;  %v2587_v57 = vrot.slane %v2578_v59, %v9079_v15 }
 0x457   :  { %3727 = vmatprep.subr.bf16.mxu0 %v9574_v46  ;;  %3768 = vmatprep.subr.bf16.mxu1 %v9576_v35  ;;  %v11148_v46 = vld [vmem:[#allocation49_spill] sm:$0xff] }
 0x45a   :  { %3728 = vmatpush1.bf16.msra.mxu0 %v9582_v3  ;;  %3769 = vmatpush1.bf16.msra.mxu1 %v9584_v16 }
 0x45b   :  { %3729 = vmatprep.subr.bf16.mxu0 %v9588_v45  ;;  %3770 = vmatprep.subr.bf16.mxu1 %v9590_v30 }
 0x45e   :  { %3730 = vmatpush1.bf16.msra.mxu0 %v9594_v34  ;;  %3771 = vmatpush1.bf16.msra.mxu1 %v9596_v1 }
 0x45f   :  { %3731 = vmatprep.subr.bf16.mxu0 %v9600_v9  ;;  %3772 = vmatprep.subr.bf16.mxu1 %v9602_v8  ;;  %v11149_v9 = vld [vmem:[#allocation35_spill] sm:$0xff] }
 0x460   :  { %v2595_v8 = vrot.slane %v2578_v59, %v11149_v9 }
 0x462   :  { %3732 = vmatpush1.bf16.msra.mxu0 %v9606_v22  ;;  %3773 = vmatpush1.bf16.msra.mxu1 %v9608_v5  ;;  %v11150_v22 = vld [vmem:[#allocation50_spill] sm:$0xff] }
 0x463   :  { %3733 = vmatprep.subr.bf16.mxu0 %v9612_v38  ;;  %3774 = vmatprep.subr.bf16.mxu1 %v9614_v25 }
 0x466   :  { %3734 = vmatpush1.bf16.msra.mxu0 %v9618_v20  ;;  %3775 = vmatpush1.bf16.msra.mxu1 %v9620_v28 }
 0x467   :  { %3735 = vmatprep.subr.bf16.mxu0 %v9624_v60  ;;  %3776 = vmatprep.subr.bf16.mxu1 %v11148_v46 }
 0x468   :  { %v2954_v35 = vpop.f32.mrf.mxu0  ;;  %v2995_v3 = vpop.f32.mrf.mxu1 }
 0x469   :  { %v2955_v16 = vadd.f32 %v2954_v35, %v2583_v23 }
 0x46a   :  { %v2956_v45 = vpop.f32.mrf.mxu0  ;;  %v2997_v30 = vpop.f32.mrf.mxu1  ;;  %3736 = vmatpush1.bf16.msra.mxu0 %v9632_v40  ;;  %3777 = vmatpush1.bf16.msra.mxu1 %v9634_v42  ;;  %v11151_v40 = vld [vmem:[#allocation51_spill] sm:$0xff]  ;;  %v11152_v42 = vld [vmem:[#allocation34_spill] sm:$0xff] }
 0x46b   :  { %v3002_v34 = vmul.f32 0.5, %v2955_v16  ;;  %v2957_v1 = vadd.f32 %v2956_v45, %v2587_v57  ;;  %3737 = vmatprep.subr.bf16.mxu0 %v9638_v14  ;;  %3778 = vmatprep.subr.bf16.mxu1 %v11150_v22  ;;  %v2998_v60 = vadd.f32 %v2997_v30, %v2595_v8  ;;  %v2591_v14 = vrot.slane %v2578_v59, %v11152_v42  ;;  %v11167_v59 = vld [vmem:[#allocation66_spill] sm:$0xff]  ;;  %v11170_v16 = vld [vmem:[#allocation69_spill] sm:$0xff] }
 0x46c   :  { %v2958_v5 = vpop.f32.mrf.mxu0  ;;  %v2999_v38 = vpop.f32.mrf.mxu1  ;;  %v11171_v45 = vld [vmem:[#allocation70_spill] sm:$0xff] }
 0x46d   :  { %8518 = vtanh.f32 %v3002_v34  ;;  %v3003_v25 = vmul.f32 0.5, %v2957_v1  ;;  %v11175_v34 = vld [vmem:[#allocation74_spill] sm:$0xff] }
 0x46e   :  { %v2959_v20 = vpop.f32.mrf.mxu0  ;;  %v3000_v28 = vpop.f32.mrf.mxu1  ;;  %3738 = vmatpush1.bf16.msra.mxu0 %v9645_v6  ;;  %3779 = vmatpush1.bf16.msra.mxu1 %v9647_v13  ;;  %v2996_v6 = vadd.f32 %v2995_v3, %v2591_v14  ;;  %v11158_v13 = vld [vmem:[#allocation57_spill] sm:$0xff]  ;;  %v11169_v3 = vld [vmem:[#allocation68_spill] sm:$0xff] }
 0x46f   :  { %8520 = vtanh.f32 %v3003_v25  ;;  %3739 = vmatprep.subr.bf16.mxu0 %v9651_v10  ;;  %3780 = vmatprep.subr.bf16.mxu1 %v11151_v40  ;;  %v11160_v10 = vld [vmem:[#allocation59_spill] sm:$0xff]  ;;  %v11185_v25 = vld [vmem:[#allocation84_spill] sm:$0xff]  ;;  %v11186_v28 = vld [vmem:[#allocation85_spill] sm:$0xff] }
 0x470   :  { %8522 = vtanh.f32 %v2998_v60  ;;  %v3004_v55 = vmul.f32 0.5, %v2996_v6  ;;  %v9949_v20 = vld [vmem:[#allocation3 + $0xc8] ss:$16 sps:$4 sm:$0xff]   ;;  %v9954_v60 = vld [vmem:[#allocation3 + $0xac] ss:$16 sps:$4 sm:$0xff]  }
 0x471   :  { %v11187_v40 = vld [vmem:[#allocation86_spill] sm:$0xff] }
 0x472   :  { %3740 = vmatpush1.bf16.msra.mxu0 %v11153_v11  ;;  %3781 = vmatpush1.bf16.msra.mxu1 %v11154_v0  ;;  %8524 = vtanh.f32 %v3004_v55  ;;  %v9957_v14 = vld [vmem:[#allocation3 + $0xa8] ss:$16 sps:$4 sm:$0xff]   ;;  %v9967_v6 = vld [vmem:[#allocation3 + $0x6c] ss:$16 sps:$4 sm:$0xff]  }
 0x473   :  { %3741 = vmatprep.subr.bf16.mxu0 %v11155_v54  ;;  %3782 = vmatprep.subr.bf16.mxu1 %v11156_v18  ;;  %v11188_v11 = vld [vmem:[#allocation87_spill] sm:$0xff]  ;;  %v9964_v54 = vld [vmem:[#allocation3 + $0x8c] ss:$16 sps:$4 sm:$0xff]  }
 0x474   :  { %v9962_v0 = vld [vmem:[#allocation3 + $0x88] ss:$16 sps:$4 sm:$0xff]   ;;  %v9981_v55 = vld [vmem:[#allocation3 + $0x2c] ss:$16 sps:$4 sm:$0xff]  }
 0x475   :  { %v11189_v18 = vld [vmem:[#allocation22_spill] sm:$0xff] }
 0x476   :  { %3742 = vmatpush2.bf16.msra.mxu0 %v11157_v56  ;;  %3783 = vmatpush2.bf16.msra.mxu1 %v11158_v13  ;;  %v9971_v56 = vld [vmem:[#allocation3 + $0x68] ss:$16 sps:$4 sm:$0xff]  }
 0x477   :  { %3743 = vmatprep.subr.bf16.mxu0 %v11159_v51  ;;  %3784 = vmatprep.subr.bf16.mxu1 %v11160_v10  ;;  %v11190_v13 = vld [vmem:[#allocation23_spill] sm:$0xff]  ;;  %v9975_v51 = vld [vmem:[#allocation3 + $0x4c] ss:$16 sps:$4 sm:$0xff]  }
 0x478   :  { %v9978_v10 = vld [vmem:[#allocation3 + $0x48] ss:$16 sps:$4 sm:$0xff]  }
 0x47a   :  { %v8519_v33 = vpop.eup %8518  ;;  %3744 = vmatpush2.bf16.msra.mxu0 %v11161_v43  ;;  %3785 = vmatpush2.bf16.msra.mxu1 %v11162_v19  ;;  %v9987_v43 = vld [vmem:[#allocation3 + $0xc] ss:$16 sps:$4 sm:$0xff]   ;;  %v9990_v19 = vld [vmem:[#allocation3 + $0x8] ss:$16 sps:$4 sm:$0xff]  }
 0x47b   :  { %v3008_v24 = vmul.f32 0.5, %v8519_v33  ;;  %3745 = vmatprep.subr.bf16.mxu0 %v11163_v44  ;;  %3786 = vmatprep.subr.bf16.mxu1 %v11164_v39  ;;  %v9984_v33 = vld [vmem:[#allocation3 + $0x28] ss:$16 sps:$4 sm:$0xff]   ;;  %v9996_v44 = vld [vmem:[#allocation8 + $0xec] ss:$16 sps:$4 sm:$0xff]  }
 0x47c   :  { %v8521_v49 = vpop.eup %8520 }
 0x47d   :  { %v3011_v48 = vadd.f32 0.5, %v3008_v24  ;;  %v3009_v50 = vmul.f32 0.5, %v8521_v49  ;;  %v8523_v23 = vpop.eup %8522  ;;  %v9993_v24 = vld [vmem:[#allocation8 + $0xe4] ss:$16 sps:$4 sm:$0xff]  }
 0x47e   :  { %3746 = vmatpush2.bf16.msra.mxu0 %v9694_v21  ;;  %3787 = vmatpush2.bf16.msra.mxu1 %v11165_v37  ;;  %v11168_v21 = vld [vmem:[#allocation67_spill] sm:$0xff] }
 0x47f   :  { %v3012_v26 = vadd.f32 0.5, %v3009_v50  ;;  %3747 = vmatprep.subr.bf16.mxu0 %v11166_v52  ;;  %3788 = vmatprep.subr.bf16.mxu1 %v11167_v59  ;;  %v3016_v46 = vmul.f32 %v8523_v23, %v3011_v48  ;;  %v8525_v30 = vpop.eup %8524  ;;  %v11191_v48 = vld [vmem:[#allocation26_spill] sm:$0xff]  ;;  %v11192_v59 = vld [vmem:[#allocation27_spill] sm:$0xff] }
 0x480   :  { %v3010_v1 = vmul.f32 0.5, %v8525_v30  ;;  %v11194_v30 = vld [vmem:[#allocation40_spill] sm:$0xff] }
 0x481   :  { %v3015_v57 = vmul.f32 %v3012_v26, %v9717_v4  ;;  %v11172_v4 = vld [vmem:[#allocation71_spill] sm:$0xff] }
 0x482   :  { %3748 = vmatpush2.bf16.msra.mxu0 %v9706_v32  ;;  %3789 = vmatpush2.bf16.msra.mxu1 %v9708_v53  ;;  %v11173_v32 = vld [vmem:[#allocation72_spill] sm:$0xff]  ;;  %v11174_v53 = vld [vmem:[#allocation73_spill] sm:$0xff]  ;;  %v3013_v8 = vadd.f32 0.5, %v3010_v1 }
 0x483   :  { %v9903_v35 = vadd.f32 %v3016_v46, %v3015_v57  ;;  %3749 = vmatprep.subr.bf16.mxu0 %v9712_v61  ;;  %3790 = vmatprep.subr.bf16.mxu1 %v11168_v21  ;;  %v11176_v61 = vld [vmem:[#allocation75_spill] sm:$0xff] }
 0x485   :  { %8526 = vtanh.f32 %v9903_v35 }
 0x486   :  { %3750 = vmatpush2.bf16.msra.mxu0 %v11169_v3  ;;  %3791 = vmatpush2.bf16.msra.mxu1 %v11170_v16  ;;  %v11193_v3 = vld [vmem:[#allocation41_spill] sm:$0xff] }
 0x487   :  { %3751 = vmatprep.subr.bf16.mxu0 %v11171_v45  ;;  %3792 = vmatprep.subr.bf16.mxu1 %v11172_v4 }
 0x48a   :  { %3752 = vmatpush2.bf16.msra.mxu0 %v11173_v32  ;;  %3793 = vmatpush2.bf16.msra.mxu1 %v11174_v53 }
 0x48b   :  { %3753 = vmatprep.subr.bf16.mxu0 %v11175_v34  ;;  %3794 = vmatprep.subr.bf16.mxu1 %v11176_v61 }
 0x48e   :  { %3754 = vmatpush2.bf16.msra.mxu0 %v9746_v62  ;;  %3795 = vmatpush2.bf16.msra.mxu1 %v9748_v63  ;;  %v11180_v63 = vld [vmem:[#allocation79_spill] sm:$0xff]  ;;  %v9938_v62 = vld [vmem:[#allocation3 + $0xec] ss:$16 sps:$4 sm:$0xff]  }
 0x48f   :  { %3755 = vmatprep.subr.bf16.mxu0 %v9752_v58  ;;  %3796 = vmatprep.subr.bf16.mxu1 %v9754_v47  ;;  %v11178_v58 = vld [vmem:[#allocation77_spill] sm:$0xff]  ;;  %v11179_v47 = vld [vmem:[#allocation78_spill] sm:$0xff] }
 0x492   :  { %v8527_v22 = vpop.eup %8526  ;;  %3756 = vmatpush2.bf16.msra.mxu0 %v9758_v29  ;;  %3797 = vmatpush2.bf16.msra.mxu1 %v9760_v27  ;;  %v11181_v29 = vld [vmem:[#allocation81_spill] sm:$0xff]  ;;  %v11182_v27 = vld [vmem:[#allocation80_spill] sm:$0xff] }
 0x493   :  { %v9922_v5 = vmul.f32 %v8527_v22, %v3013_v8  ;;  %4019 = vmatprep.subr.bf16.mxu0 %v9783_v36  ;;  %v11183_v36 = vld [vmem:[#allocation82_spill] sm:$0xff]  ;;  %4060 = vmatprep.subr.bf16.mxu1 %v9938_v62 }
 0x495   :  { %11177 = vst [vmem:[#allocation37_spill] sm:$0xff] %v9922_v5  ;;  %v3318_v38 = vpack.c.bf16 %v9922_v5, %v9922_v5 }
 0x497   :  { %3757 = vmatprep.mubr.bf16.mxu0 %v3318_v38  ;;  %3798 = vmatprep.mubr.bf16.mxu1 %v3318_v38 }
 0x498   :  { %3758 = vmatmul.mubr.bf16.vlgmr.msra.gmra.mxu0 %v9848_v31  ;;  %3799 = vmatmul.mubr.bf16.vlgmr.msra.gmra.mxu1 %v9848_v31  ;;  %v9946_v31 = vld [vmem:[#allocation3 + $0xcc] ss:$16 sps:$4 sm:$0xff]  }
 0x499   :  { %4020 = vmatpush1.bf16.msra.mxu0 %v9785_v2  ;;  %4051 = vmatprep.mubr.bf16.mxu0 %v11084_v17  ;;  %v9941_v2 = vld [vmem:[#allocation3 + $0xe8] ss:$16 sps:$4 sm:$0xff]  }
 0x49a   :  { %4021 = vmatprep.subr.bf16.mxu0 %v9791_v7  ;;  %4092 = vmatprep.mubr.bf16.mxu1 %v11084_v17  ;;  %v11184_v7 = vld [vmem:[#allocation83_spill] sm:$0xff] }
 0x49b   :  { %4061 = vmatpush1.bf16.msra.mxu1 %v9941_v2 }
 0x49c   :  { %4062 = vmatprep.subr.bf16.mxu1 %v9946_v31 }
 0x49d   :  { %4022 = vmatpush1.bf16.msra.mxu0 %v11178_v58 }
 0x49e   :  { %4023 = vmatprep.subr.bf16.mxu0 %v11179_v47 }
 0x49f   :  { %4063 = vmatpush1.bf16.msra.mxu1 %v9949_v20 }
 0x4a0   :  { %4064 = vmatprep.subr.bf16.mxu1 %v9954_v60 }
 0x4a1   :  { %4024 = vmatpush1.bf16.msra.mxu0 %v11180_v63 }
 0x4a2   :  { %4025 = vmatprep.subr.bf16.mxu0 %v11181_v29 }
 0x4a3   :  { %4065 = vmatpush1.bf16.msra.mxu1 %v9957_v14 }
 0x4a4   :  { %4066 = vmatprep.subr.bf16.mxu1 %v9964_v54 }
 0x4a5   :  { %4026 = vmatpush1.bf16.msra.mxu0 %v11182_v27 }
 0x4a6   :  { %4027 = vmatprep.subr.bf16.mxu0 %v11183_v36 }
 0x4a7   :  { %4067 = vmatpush1.bf16.msra.mxu1 %v9962_v0 }
 0x4a8   :  { %4068 = vmatprep.subr.bf16.mxu1 %v9967_v6 }
 0x4a9   :  { %4028 = vmatpush1.bf16.msra.mxu0 %v11184_v7 }
 0x4aa   :  { %4029 = vmatprep.subr.bf16.mxu0 %v11185_v25 }
 0x4ab   :  { %4069 = vmatpush1.bf16.msra.mxu1 %v9971_v56 }
 0x4ac   :  { %4070 = vmatprep.subr.bf16.mxu1 %v9975_v51 }
 0x4ad   :  { %4030 = vmatpush1.bf16.msra.mxu0 %v11186_v28 }
 0x4ae   :  { %4031 = vmatprep.subr.bf16.mxu0 %v11187_v40  ;;  %v10008_v40 = vld [vmem:[#allocation8 + $0xe0] ss:$16 sps:$4 sm:$0xff]  }
 0x4af   :  { %4071 = vmatpush1.bf16.msra.mxu1 %v9978_v10 }
 0x4b0   :  { %4072 = vmatprep.subr.bf16.mxu1 %v9981_v55 }
 0x4b1   :  { %4032 = vmatpush1.bf16.msra.mxu0 %v11188_v11  ;;  %v10010_v11 = vld [vmem:[#allocation8 + $0xe8] ss:$16 sps:$4 sm:$0xff]  }
 0x4b2   :  { %4033 = vmatprep.subr.bf16.mxu0 %v11189_v18 }
 0x4b3   :  { %4073 = vmatpush1.bf16.msra.mxu1 %v9984_v33 }
 0x4b4   :  { %4074 = vmatprep.subr.bf16.mxu1 %v9987_v43 }
 0x4b5   :  { %4034 = vmatpush1.bf16.msra.mxu0 %v11190_v13  ;;  %v10014_v13 = vld [vmem:[#allocation8 + $0xc4] ss:$16 sps:$4 sm:$0xff]  }
 0x4b6   :  { %4530 = vmatprep.subr.bf16.mxu0 %v9993_v24 }
 0x4b7   :  { %4075 = vmatpush1.bf16.msra.mxu1 %v9990_v19 }
 0x4b8   :  { %4571 = vmatprep.subr.bf16.mxu1 %v9996_v44 }
 0x515   :  { %v3248_v39 = vpop.f32.mrf.mxu0  ;;  %v3289_v49 = vpop.f32.mrf.mxu1 }
 0x516   :  { %v3296_v50 = vadd.f32 %v3248_v39, %v11191_v48  ;;  %v3298_v32 = vadd.f32 %v3289_v49, %v11194_v30  ;;  %v10016_v39 = vld [vmem:[#allocation8 + $0xcc] ss:$16 sps:$4 sm:$0xff]   ;;  %v10024_v49 = vld [vmem:[#allocation8 + $0xc8] ss:$16 sps:$4 sm:$0xff]   ;;  %v10028_v48 = vld [vmem:[#allocation8 + $0xa4] ss:$16 sps:$4 sm:$0xff]  }
 0x517   :  { %v3250_v37 = vpop.f32.mrf.mxu0  ;;  %v3291_v26 = vpop.f32.mrf.mxu1  ;;  %v10066_v30 = vld [vmem:[#allocation8 + $0x4c] ss:$16 sps:$4 sm:$0xff]  }
 0x518   :  { %v3300_v52 = vmul.f32 0.5, %v3296_v50  ;;  %v3297_v23 = vadd.f32 %v3250_v37, %v11192_v59  ;;  %v3299_v16 = vadd.f32 %v3291_v26, %v11193_v3  ;;  %v3302_v53 = vmul.f32 0.5, %v3298_v32  ;;  %v10030_v50 = vld [vmem:[#allocation8 + $0xac] ss:$16 sps:$4 sm:$0xff]   ;;  %v10034_v37 = vld [vmem:[#allocation8 + $0xa0] ss:$16 sps:$4 sm:$0xff]  }
 0x519   :  { %v3252_v57 = vpop.f32.mrf.mxu0  ;;  %v3293_v46 = vpop.f32.mrf.mxu1  ;;  %v10036_v26 = vld [vmem:[#allocation8 + $0xa8] ss:$16 sps:$4 sm:$0xff]   ;;  %v10042_v59 = vld [vmem:[#allocation8 + $0x8c] ss:$16 sps:$4 sm:$0xff]   ;;  %v10058_v3 = vld [vmem:[#allocation8 + $0x60] ss:$16 sps:$4 sm:$0xff]  }
 0x51a   :  { %8528 = vtanh.f32 %v3300_v52  ;;  %v3301_v21 = vmul.f32 0.5, %v3297_v23  ;;  %v10040_v52 = vld [vmem:[#allocation8 + $0x84] ss:$16 sps:$4 sm:$0xff]   ;;  %v10046_v23 = vld [vmem:[#allocation8 + $0x80] ss:$16 sps:$4 sm:$0xff]   ;;  %11195 = vst [vmem:[#allocation36_spill] sm:$0xff] %v10066_v30 }
 0x51b   :  { %v3253_v45 = vpop.f32.mrf.mxu0  ;;  %v3294_v4 = vpop.f32.mrf.mxu1  ;;  %v10048_v57 = vld [vmem:[#allocation8 + $0x88] ss:$16 sps:$4 sm:$0xff]   ;;  %v10052_v46 = vld [vmem:[#allocation8 + $0x64] ss:$16 sps:$4 sm:$0xff]  }
 0x51c   :  { %8530 = vtanh.f32 %v3301_v21  ;;  %v10054_v21 = vld [vmem:[#allocation8 + $0x6c] ss:$16 sps:$4 sm:$0xff]   ;;  %v3383_v45 = vld [vmem:[#allocation9] sm:$0xf]  ;;  %v10064_v4 = vld [vmem:[#allocation8 + $0x44] ss:$16 sps:$4 sm:$0xff]  }
 0x51d   :  { %8532 = vtanh.f32 %v3299_v16  ;;  %v10060_v16 = vld [vmem:[#allocation8 + $0x68] ss:$16 sps:$4 sm:$0xff]   ;;  %v3388_v32 = vrot.slane %v3383_v45, %v9077_v12 }
 0x51e   :  { %8534 = vtanh.f32 %v3302_v53  ;;  %v10071_v53 = vld [vmem:[#allocation8 + $0x40] ss:$16 sps:$4 sm:$0xff]  }
 0x51f   :  { %11196 = vst [vmem:[#allocation24_spill] sm:$0xff] %v10071_v53 }
 0x527   :  { %v8529_v34 = vpop.eup %8528 }
 0x528   :  { %v3306_v61 = vmul.f32 0.5, %v8529_v34  ;;  %v10073_v34 = vld [vmem:[#allocation8 + $0x48] ss:$16 sps:$4 sm:$0xff]  }
 0x529   :  { %v8531_v1 = vpop.eup %8530  ;;  %11197 = vst [vmem:[#allocation25_spill] sm:$0xff] %v10073_v34 }
 0x52a   :  { %v3309_v8 = vadd.f32 0.5, %v3306_v61  ;;  %v3307_v22 = vmul.f32 0.5, %v8531_v1  ;;  %v8533_v38 = vpop.eup %8532  ;;  %v10077_v61 = vld [vmem:[#allocation8 + $0x24] ss:$16 sps:$4 sm:$0xff]   ;;  %v10079_v1 = vld [vmem:[#allocation8 + $0x2c] ss:$16 sps:$4 sm:$0xff]  }
 0x52b   :  { %v8535_v27 = vpop.eup %8534  ;;  %11198 = vst [vmem:[#allocation39_spill] sm:$0xff] %v10077_v61  ;;  %11199 = vst [vmem:[#allocation38_spill] sm:$0xff] %v10079_v1 }
 0x52c   :  { %v3310_v58 = vadd.f32 0.5, %v3307_v22  ;;  %v3314_v47 = vmul.f32 %v8533_v38, %v3309_v8  ;;  %v3308_v36 = vmul.f32 0.5, %v8535_v27  ;;  %v3392_v8 = vrot.slane %v3383_v45, %v9079_v15  ;;  %v10097_v15 = vld [vmem:[#allocation8] ss:$16 sps:$4 sm:$0xff]  }
 0x52e   :  { %v3313_v63 = vmul.f32 %v3310_v58, %v9845_v41  ;;  %v3311_v7 = vadd.f32 0.5, %v3308_v36  ;;  %v10022_v41 = vld [vmem:[#allocation8 + $0xc0] ss:$16 sps:$4 sm:$0xff]  }
 0x530   :  { %v10005_v29 = vadd.f32 %v3314_v47, %v3313_v63  ;;  %v10084_v47 = vld [vmem:[#allocation8 + $0x20] ss:$16 sps:$4 sm:$0xff]   ;;  %v10086_v63 = vld [vmem:[#allocation8 + $0x28] ss:$16 sps:$4 sm:$0xff]  }
 0x532   :  { %8536 = vtanh.f32 %v10005_v29 }
 0x53f   :  { %v8537_v25 = vpop.eup %8536 }
 0x540   :  { %v3317_v28 = vmul.f32 %v8537_v25, %v3311_v7  ;;  %v10090_v7 = vld [vmem:[#allocation8 + $0x4] ss:$16 sps:$4 sm:$0xff]   ;;  %v10092_v25 = vld [vmem:[#allocation8 + $0xc] ss:$16 sps:$4 sm:$0xff]  }
 0x542   :  { %v10012_v18 = vpack.c.bf16 %v3317_v28, %v3317_v28 }
 0x544   :  { %4052 = vmatmul.mubr.bf16.vlgmr.msra.gmra.mxu0 %v10012_v18  ;;  %4093 = vmatmul.mubr.bf16.vlgmr.msra.gmra.mxu1 %v10012_v18 }
 0x545   :  { %4531 = vmatpush1.bf16.msra.mxu0 %v10008_v40  ;;  %4572 = vmatpush1.bf16.msra.mxu1 %v10010_v11 }
 0x546   :  { %4532 = vmatprep.subr.bf16.mxu0 %v10014_v13  ;;  %4573 = vmatprep.subr.bf16.mxu1 %v10016_v39 }
 0x549   :  { %4533 = vmatpush1.bf16.msra.mxu0 %v10022_v41  ;;  %4574 = vmatpush1.bf16.msra.mxu1 %v10024_v49 }
 0x54a   :  { %4534 = vmatprep.subr.bf16.mxu0 %v10028_v48  ;;  %4575 = vmatprep.subr.bf16.mxu1 %v10030_v50 }
 0x54d   :  { %4535 = vmatpush1.bf16.msra.mxu0 %v10034_v37  ;;  %4576 = vmatpush1.bf16.msra.mxu1 %v10036_v26 }
 0x54e   :  { %4536 = vmatprep.subr.bf16.mxu0 %v10040_v52  ;;  %4577 = vmatprep.subr.bf16.mxu1 %v10042_v59 }
 0x551   :  { %4537 = vmatpush1.bf16.msra.mxu0 %v10046_v23  ;;  %4578 = vmatpush1.bf16.msra.mxu1 %v10048_v57 }
 0x552   :  { %4538 = vmatprep.subr.bf16.mxu0 %v10052_v46  ;;  %4579 = vmatprep.subr.bf16.mxu1 %v10054_v21 }
 0x555   :  { %4539 = vmatpush1.bf16.msra.mxu0 %v10058_v3  ;;  %4580 = vmatpush1.bf16.msra.mxu1 %v10060_v16 }
 0x556   :  { %4540 = vmatprep.subr.bf16.mxu0 %v10064_v4  ;;  %4581 = vmatprep.subr.bf16.mxu1 %v10066_v30 }
 0x558   :  { %v3759_v22 = vpop.f32.mrf.mxu0  ;;  %v3800_v38 = vpop.f32.mrf.mxu1 }
 0x559   :  { %v3760_v58 = vadd.f32 %v3759_v22, %v3388_v32  ;;  %4541 = vmatpush1.bf16.msra.mxu0 %v10071_v53  ;;  %4582 = vmatpush1.bf16.msra.mxu1 %v10073_v34  ;;  %v3400_v22 = vrot.slane %v3383_v45, %v11149_v9 }
 0x55a   :  { %v3761_v27 = vpop.f32.mrf.mxu0  ;;  %v3802_v36 = vpop.f32.mrf.mxu1  ;;  %4542 = vmatprep.subr.bf16.mxu0 %v10077_v61  ;;  %4583 = vmatprep.subr.bf16.mxu1 %v10079_v1  ;;  %v10099_v61 = vld [vmem:[#allocation8 + $0x8] ss:$16 sps:$4 sm:$0xff]  }
 0x55b   :  { %v3807_v28 = vmul.f32 0.5, %v3760_v58  ;;  %v3762_v32 = vadd.f32 %v3761_v27, %v3392_v8  ;;  %v10103_v8 = vld [vmem:[#allocation8 + $0x1e4] ss:$16 sps:$4 sm:$0xff]   ;;  %v3396_v58 = vrot.slane %v3383_v45, %v11152_v42  ;;  %v10110_v27 = vld [vmem:[#allocation8 + $0x1e0] ss:$16 sps:$4 sm:$0xff]  }
 0x55c   :  { %v3763_v5 = vpop.f32.mrf.mxu0  ;;  %v3804_v34 = vpop.f32.mrf.mxu1  ;;  %11200 = vst [vmem:[#allocation49_spill] sm:$0xff] %v10103_v8  ;;  %11202 = vst [vmem:[#allocation51_spill] sm:$0xff] %v10110_v27  ;;  %v10122_v45 = vld [vmem:[#allocation8 + $0x1c0] ss:$16 sps:$4 sm:$0xff]  }
 0x55d   :  { %8538 = vtanh.f32 %v3807_v28  ;;  %v3808_v53 = vmul.f32 0.5, %v3762_v32  ;;  %4543 = vmatpush1.bf16.msra.mxu0 %v10084_v47  ;;  %4584 = vmatpush1.bf16.msra.mxu1 %v10086_v63  ;;  %v10105_v5 = vld [vmem:[#allocation8 + $0x1ec] ss:$16 sps:$4 sm:$0xff]   ;;  %v3803_v34 = vadd.f32 %v3802_v36, %v3400_v22  ;;  %11206 = vst [vmem:[#allocation55_spill] sm:$0xff] %v10122_v45  ;;  %v10124_v36 = vld [vmem:[#allocation8 + $0x1c8] ss:$16 sps:$4 sm:$0xff]  }
 0x55e   :  { %v3764_v1 = vpop.f32.mrf.mxu0  ;;  %v3805_v30 = vpop.f32.mrf.mxu1  ;;  %4544 = vmatprep.subr.bf16.mxu0 %v10090_v7  ;;  %4585 = vmatprep.subr.bf16.mxu1 %v10092_v25  ;;  %11201 = vst [vmem:[#allocation50_spill] sm:$0xff] %v10105_v5  ;;  %v10118_v28 = vld [vmem:[#allocation8 + $0x1cc] ss:$16 sps:$4 sm:$0xff]   ;;  %11207 = vst [vmem:[#allocation56_spill] sm:$0xff] %v10124_v36  ;;  %v10128_v32 = vld [vmem:[#allocation8 + $0x1a4] ss:$16 sps:$4 sm:$0xff]  }
 0x55f   :  { %8540 = vtanh.f32 %v3808_v53  ;;  %v10112_v1 = vld [vmem:[#allocation8 + $0x1e8] ss:$16 sps:$4 sm:$0xff]   ;;  %v10116_v30 = vld [vmem:[#allocation8 + $0x1c4] ss:$16 sps:$4 sm:$0xff]   ;;  %11205 = vst [vmem:[#allocation54_spill] sm:$0xff] %v10118_v28  ;;  %v3801_v53 = vadd.f32 %v3800_v38, %v3396_v58  ;;  %11208 = vst [vmem:[#allocation57_spill] sm:$0xff] %v10128_v32 }
 0x560   :  { %11203 = vst [vmem:[#allocation52_spill] sm:$0xff] %v10112_v1  ;;  %11204 = vst [vmem:[#allocation53_spill] sm:$0xff] %v10116_v30  ;;  %8542 = vtanh.f32 %v3803_v34  ;;  %v10130_v22 = vld [vmem:[#allocation8 + $0x1ac] ss:$16 sps:$4 sm:$0xff]   ;;  %v10134_v38 = vld [vmem:[#allocation8 + $0x1a0] ss:$16 sps:$4 sm:$0xff]  }
 0x561   :  { %4545 = vmatpush1.bf16.msra.mxu0 %v10097_v15  ;;  %4586 = vmatpush1.bf16.msra.mxu1 %v10099_v61  ;;  %11209 = vst [vmem:[#allocation58_spill] sm:$0xff] %v10130_v22  ;;  %11210 = vst [vmem:[#allocation59_spill] sm:$0xff] %v10134_v38  ;;  %v10136_v34 = vld [vmem:[#allocation8 + $0x1a8] ss:$16 sps:$4 sm:$0xff]  }
 0x562   :  { %4546 = vmatprep.subr.bf16.mxu0 %v10103_v8  ;;  %4587 = vmatprep.subr.bf16.mxu1 %v10105_v5  ;;  %v3809_v5 = vmul.f32 0.5, %v3801_v53  ;;  %11211 = vst [vmem:[#allocation60_spill] sm:$0xff] %v10136_v34  ;;  %v10148_v8 = vld [vmem:[#allocation8 + $0x188] ss:$16 sps:$4 sm:$0xff]  }
 0x564   :  { %8544 = vtanh.f32 %v3809_v5 }
 0x565   :  { %4547 = vmatpush2.bf16.msra.mxu0 %v10110_v27  ;;  %4588 = vmatpush2.bf16.msra.mxu1 %v10112_v1 }
 0x566   :  { %4548 = vmatprep.subr.bf16.mxu0 %v10116_v30  ;;  %4589 = vmatprep.subr.bf16.mxu1 %v10118_v28  ;;  %v10140_v30 = vld [vmem:[#allocation8 + $0x184] ss:$16 sps:$4 sm:$0xff]   ;;  %v10142_v28 = vld [vmem:[#allocation8 + $0x18c] ss:$16 sps:$4 sm:$0xff]  }
 0x567   :  { %11212 = vst [vmem:[#allocation61_spill] sm:$0xff] %v10140_v30  ;;  %11213 = vst [vmem:[#allocation62_spill] sm:$0xff] %v10142_v28 }
 0x569   :  { %4549 = vmatpush2.bf16.msra.mxu0 %v10122_v45  ;;  %4590 = vmatpush2.bf16.msra.mxu1 %v10124_v36  ;;  %v10146_v36 = vld [vmem:[#allocation8 + $0x180] ss:$16 sps:$4 sm:$0xff]  }
 0x56a   :  { %v8539_v58 = vpop.eup %8538  ;;  %4550 = vmatprep.subr.bf16.mxu0 %v10128_v32  ;;  %4591 = vmatprep.subr.bf16.mxu1 %v10130_v22  ;;  %v10152_v22 = vld [vmem:[#allocation8 + $0x164] ss:$16 sps:$4 sm:$0xff]   ;;  %v10154_v32 = vld [vmem:[#allocation8 + $0x16c] ss:$16 sps:$4 sm:$0xff]  }
 0x56b   :  { %v3813_v1 = vmul.f32 0.5, %v8539_v58 }
 0x56c   :  { %v8541_v27 = vpop.eup %8540 }
 0x56d   :  { %v3816_v53 = vadd.f32 0.5, %v3813_v1  ;;  %v3814_v45 = vmul.f32 0.5, %v8541_v27  ;;  %4551 = vmatpush2.bf16.msra.mxu0 %v10134_v38  ;;  %4592 = vmatpush2.bf16.msra.mxu1 %v10136_v34  ;;  %v8543_v1 = vpop.eup %8542  ;;  %v10159_v34 = vld [vmem:[#allocation8 + $0x160] ss:$16 sps:$4 sm:$0xff]   ;;  %v10161_v38 = vld [vmem:[#allocation8 + $0x168] ss:$16 sps:$4 sm:$0xff]  }
 0x56e   :  { %4552 = vmatprep.subr.bf16.mxu0 %v10140_v30  ;;  %4593 = vmatprep.subr.bf16.mxu1 %v10142_v28  ;;  %11214 = vst [vmem:[#allocation63_spill] sm:$0xff] %v10159_v34  ;;  %11215 = vst [vmem:[#allocation64_spill] sm:$0xff] %v10161_v38  ;;  %v10165_v28 = vld [vmem:[#allocation8 + $0x144] ss:$16 sps:$4 sm:$0xff]   ;;  %v10167_v30 = vld [vmem:[#allocation8 + $0x14c] ss:$16 sps:$4 sm:$0xff]  }
 0x56f   :  { %v3817_v58 = vadd.f32 0.5, %v3814_v45  ;;  %v3821_v27 = vmul.f32 %v8543_v1, %v3816_v53  ;;  %11216 = vst [vmem:[#allocation65_spill] sm:$0xff] %v10165_v28  ;;  %11217 = vst [vmem:[#allocation66_spill] sm:$0xff] %v10167_v30  ;;  %v10176_v53 = vld [vmem:[#allocation8 + $0x148] ss:$16 sps:$4 sm:$0xff]  }
 0x570   :  { %11219 = vst [vmem:[#allocation68_spill] sm:$0xff] %v10176_v53  ;;  %v10182_v1 = vld [vmem:[#allocation8 + $0x12c] ss:$16 sps:$4 sm:$0xff]  }
 0x571   :  { %v3820_v5 = vmul.f32 %v3817_v58, %v9903_v35  ;;  %4553 = vmatpush2.bf16.msra.mxu0 %v10146_v36  ;;  %4594 = vmatpush2.bf16.msra.mxu1 %v10148_v8  ;;  %v10174_v35 = vld [vmem:[#allocation8 + $0x140] ss:$16 sps:$4 sm:$0xff]   ;;  %v10180_v58 = vld [vmem:[#allocation8 + $0x124] ss:$16 sps:$4 sm:$0xff]   ;;  %11221 = vst [vmem:[#allocation70_spill] sm:$0xff] %v10182_v1 }
 0x572   :  { %4554 = vmatprep.subr.bf16.mxu0 %v10152_v22  ;;  %4595 = vmatprep.subr.bf16.mxu1 %v10154_v32  ;;  %11218 = vst [vmem:[#allocation67_spill] sm:$0xff] %v10174_v35  ;;  %11220 = vst [vmem:[#allocation69_spill] sm:$0xff] %v10180_v58 }
 0x573   :  { %v10169_v45 = vadd.f32 %v3821_v27, %v3820_v5  ;;  %v10186_v5 = vld [vmem:[#allocation8 + $0x120] ss:$16 sps:$4 sm:$0xff]   ;;  %v10188_v27 = vld [vmem:[#allocation8 + $0x128] ss:$16 sps:$4 sm:$0xff]  }
 0x574   :  { %11222 = vst [vmem:[#allocation71_spill] sm:$0xff] %v10188_v27 }
 0x575   :  { %8546 = vtanh.f32 %v10169_v45  ;;  %4555 = vmatpush2.bf16.msra.mxu0 %v10159_v34  ;;  %4596 = vmatpush2.bf16.msra.mxu1 %v10161_v38  ;;  %v8545_v38 = vpop.eup %8544 }
 0x576   :  { %4556 = vmatprep.subr.bf16.mxu0 %v10165_v28  ;;  %4597 = vmatprep.subr.bf16.mxu1 %v10167_v30  ;;  %v10192_v28 = vld [vmem:[#allocation8 + $0x104] ss:$16 sps:$4 sm:$0xff]   ;;  %v10194_v30 = vld [vmem:[#allocation8 + $0x10c] ss:$16 sps:$4 sm:$0xff]   ;;  %v3815_v34 = vmul.f32 0.5, %v8545_v38 }
 0x579   :  { %4557 = vmatpush2.bf16.msra.mxu0 %v10174_v35  ;;  %4598 = vmatpush2.bf16.msra.mxu1 %v10176_v53  ;;  %v10198_v35 = vld [vmem:[#allocation8 + $0x100] ss:$16 sps:$4 sm:$0xff]   ;;  %v10200_v53 = vld [vmem:[#allocation8 + $0x108] ss:$16 sps:$4 sm:$0xff]  }
 0x57a   :  { %4558 = vmatprep.subr.bf16.mxu0 %v10180_v58  ;;  %4599 = vmatprep.subr.bf16.mxu1 %v10182_v1  ;;  %v3818_v58 = vadd.f32 0.5, %v3815_v34  ;;  %v11237_v34 = vld [vmem:[#allocation28_spill] sm:$0xff] }
 0x57d   :  { %4559 = vmatpush2.bf16.msra.mxu0 %v10186_v5  ;;  %4600 = vmatpush2.bf16.msra.mxu1 %v10188_v27 }
 0x57e   :  { %4560 = vmatprep.subr.bf16.mxu0 %v10192_v28  ;;  %4601 = vmatprep.subr.bf16.mxu1 %v10194_v30 }
 0x581   :  { %4561 = vmatpush2.bf16.msra.mxu0 %v10198_v35  ;;  %4602 = vmatpush2.bf16.msra.mxu1 %v10200_v53 }
 0x582   :  { %v8547_v1 = vpop.eup %8546  ;;  %4865 = vmatprep.subr.bf16.mxu1 %v9938_v62  ;;  %v10221_v62 = vld [vmem:[#allocation3 + $0xe4] ss:$16 sps:$4 sm:$0xff]  }
 0x583   :  { %v10207_v38 = vmul.f32 %v8547_v1, %v3818_v58  ;;  %4824 = vmatprep.subr.bf16.mxu0 %v10221_v62 }
 0x585   :  { %11223 = vst [vmem:[#allocation72_spill] sm:$0xff] %v10207_v38  ;;  %v4123_v27 = vpack.c.bf16 %v10207_v38, %v10207_v38 }
 0x587   :  { %4562 = vmatprep.mubr.bf16.mxu0 %v4123_v27  ;;  %4603 = vmatprep.mubr.bf16.mxu1 %v4123_v27 }
 0x588   :  { %4563 = vmatmul.mubr.bf16.vlgmr.msra.gmra.mxu0 %v10012_v18  ;;  %4604 = vmatmul.mubr.bf16.vlgmr.msra.gmra.mxu1 %v10012_v18  ;;  %v10224_v18 = vld [vmem:[#allocation3 + $0xe0] ss:$16 sps:$4 sm:$0xff]  }
 0x589   :  { %4866 = vmatpush1.bf16.msra.mxu1 %v9941_v2  ;;  %4856 = vmatprep.mubr.bf16.mxu0 %v11084_v17  ;;  %v10229_v2 = vld [vmem:[#allocation3 + $0xc4] ss:$16 sps:$4 sm:$0xff]  }
 0x58a   :  { %4867 = vmatprep.subr.bf16.mxu1 %v9946_v31  ;;  %4897 = vmatprep.mubr.bf16.mxu1 %v11084_v17  ;;  %v10232_v31 = vld [vmem:[#allocation3 + $0xc0] ss:$16 sps:$4 sm:$0xff]  }
 0x58b   :  { %4825 = vmatpush1.bf16.msra.mxu0 %v10224_v18  ;;  %11224 = vst [vmem:[#allocation73_spill] sm:$0xff] %v10232_v31 }
 0x58c   :  { %4826 = vmatprep.subr.bf16.mxu0 %v10229_v2 }
 0x58d   :  { %4868 = vmatpush1.bf16.msra.mxu1 %v9949_v20  ;;  %v10237_v20 = vld [vmem:[#allocation3 + $0xa4] ss:$16 sps:$4 sm:$0xff]  }
 0x58e   :  { %4869 = vmatprep.subr.bf16.mxu1 %v9954_v60  ;;  %11225 = vst [vmem:[#allocation74_spill] sm:$0xff] %v10237_v20  ;;  %v10240_v60 = vld [vmem:[#allocation3 + $0xa0] ss:$16 sps:$4 sm:$0xff]  }
 0x58f   :  { %4827 = vmatpush1.bf16.msra.mxu0 %v10232_v31  ;;  %11226 = vst [vmem:[#allocation75_spill] sm:$0xff] %v10240_v60 }
 0x590   :  { %4828 = vmatprep.subr.bf16.mxu0 %v10237_v20 }
 0x591   :  { %4870 = vmatpush1.bf16.msra.mxu1 %v9957_v14  ;;  %v10245_v14 = vld [vmem:[#allocation3 + $0x80] ss:$16 sps:$4 sm:$0xff]  }
 0x592   :  { %4871 = vmatprep.subr.bf16.mxu1 %v9964_v54  ;;  %11227 = vst [vmem:[#allocation77_spill] sm:$0xff] %v10245_v14  ;;  %v10250_v54 = vld [vmem:[#allocation3 + $0x64] ss:$16 sps:$4 sm:$0xff]  }
 0x593   :  { %4829 = vmatpush1.bf16.msra.mxu0 %v10240_v60  ;;  %11229 = vst [vmem:[#allocation79_spill] sm:$0xff] %v10250_v54 }
 0x595   :  { %4872 = vmatpush1.bf16.msra.mxu1 %v9962_v0  ;;  %v10247_v0 = vld [vmem:[#allocation3 + $0x84] ss:$16 sps:$4 sm:$0xff]  }
 0x596   :  { %4873 = vmatprep.subr.bf16.mxu1 %v9967_v6  ;;  %11228 = vst [vmem:[#allocation78_spill] sm:$0xff] %v10247_v0  ;;  %4830 = vmatprep.subr.bf16.mxu0 %v10247_v0  ;;  %v10255_v6 = vld [vmem:[#allocation3 + $0x60] ss:$16 sps:$4 sm:$0xff]  }
 0x597   :  { %4831 = vmatpush1.bf16.msra.mxu0 %v10245_v14  ;;  %11230 = vst [vmem:[#allocation81_spill] sm:$0xff] %v10255_v6 }
 0x598   :  { %4832 = vmatprep.subr.bf16.mxu0 %v10250_v54  ;;  %v11239_v54 = vld [vmem:[#allocation43_spill] sm:$0xff] }
 0x599   :  { %4874 = vmatpush1.bf16.msra.mxu1 %v9971_v56  ;;  %v10258_v56 = vld [vmem:[#allocation3 + $0x44] ss:$16 sps:$4 sm:$0xff]  }
 0x59a   :  { %4875 = vmatprep.subr.bf16.mxu1 %v9975_v51  ;;  %11231 = vst [vmem:[#allocation80_spill] sm:$0xff] %v10258_v56  ;;  %v10263_v51 = vld [vmem:[#allocation3 + $0x40] ss:$16 sps:$4 sm:$0xff]  }
 0x59b   :  { %4833 = vmatpush1.bf16.msra.mxu0 %v10255_v6  ;;  %11232 = vst [vmem:[#allocation82_spill] sm:$0xff] %v10263_v51 }
 0x59c   :  { %4834 = vmatprep.subr.bf16.mxu0 %v10258_v56 }
 0x59d   :  { %4876 = vmatpush1.bf16.msra.mxu1 %v9978_v10  ;;  %v10266_v10 = vld [vmem:[#allocation3 + $0x24] ss:$16 sps:$4 sm:$0xff]  }
 0x59e   :  { %4877 = vmatprep.subr.bf16.mxu1 %v9981_v55  ;;  %11233 = vst [vmem:[#allocation83_spill] sm:$0xff] %v10266_v10  ;;  %v10269_v55 = vld [vmem:[#allocation3 + $0x20] ss:$16 sps:$4 sm:$0xff]  }
 0x59f   :  { %4835 = vmatpush1.bf16.msra.mxu0 %v10263_v51  ;;  %11234 = vst [vmem:[#allocation84_spill] sm:$0xff] %v10269_v55 }
 0x5a0   :  { %4836 = vmatprep.subr.bf16.mxu0 %v10266_v10  ;;  %v11238_v10 = vld [vmem:[#allocation29_spill] sm:$0xff] }
 0x5a1   :  { %4878 = vmatpush1.bf16.msra.mxu1 %v9984_v33  ;;  %v10272_v33 = vld [vmem:[#allocation3 + $0x4] ss:$16 sps:$4 sm:$0xff]  }
 0x5a2   :  { %4879 = vmatprep.subr.bf16.mxu1 %v9987_v43  ;;  %11235 = vst [vmem:[#allocation85_spill] sm:$0xff] %v10272_v33  ;;  %v10275_v43 = vld [vmem:[#allocation3] ss:$16 sps:$4 sm:$0xff]  }
 0x5a3   :  { %4837 = vmatpush1.bf16.msra.mxu0 %v10269_v55  ;;  %11236 = vst [vmem:[#allocation86_spill] sm:$0xff] %v10275_v43 }
 0x5a4   :  { %4838 = vmatprep.subr.bf16.mxu0 %v10272_v33 }
 0x5a5   :  { %4880 = vmatpush1.bf16.msra.mxu1 %v9990_v19 }
 0x5a6   :  { %5376 = vmatprep.subr.bf16.mxu1 %v9996_v44 }
 0x5a7   :  { %4839 = vmatpush1.bf16.msra.mxu0 %v10275_v43 }
 0x5a8   :  { %5335 = vmatprep.subr.bf16.mxu0 %v9993_v24  ;;  %v11240_v24 = vld [vmem:[#allocation42_spill] sm:$0xff] }
 0x604   :  { %v4053_v19 = vpop.f32.mrf.mxu0  ;;  %v4094_v44 = vpop.f32.mrf.mxu1 }
 0x605   :  { %v4101_v58 = vadd.f32 %v4053_v19, %v11237_v34  ;;  %v4103_v43 = vadd.f32 %v4094_v44, %v11240_v24  ;;  %v11252_v24 = vld [vmem:[#allocation54_spill] sm:$0xff] }
 0x606   :  { %v4055_v1 = vpop.f32.mrf.mxu0  ;;  %v4096_v27 = vpop.f32.mrf.mxu1 }
 0x607   :  { %v4105_v38 = vmul.f32 0.5, %v4101_v58  ;;  %v4102_v51 = vadd.f32 %v4055_v1, %v11238_v10  ;;  %v4104_v14 = vadd.f32 %v4096_v27, %v11239_v54  ;;  %v4107_v60 = vmul.f32 0.5, %v4103_v43  ;;  %v11247_v1 = vld [vmem:[#allocation49_spill] sm:$0xff] }
 0x608   :  { %v4057_v56 = vpop.f32.mrf.mxu0  ;;  %v4098_v6 = vpop.f32.mrf.mxu1  ;;  %v11251_v27 = vld [vmem:[#allocation53_spill] sm:$0xff] }
 0x609   :  { %8548 = vtanh.f32 %v4105_v38  ;;  %v4106_v55 = vmul.f32 0.5, %v4102_v51 }
 0x60a   :  { %v4058_v33 = vpop.f32.mrf.mxu0  ;;  %v4099_v0 = vpop.f32.mrf.mxu1 }
 0x60b   :  { %8550 = vtanh.f32 %v4106_v55 }
 0x60c   :  { %8552 = vtanh.f32 %v4104_v14 }
 0x60d   :  { %8554 = vtanh.f32 %v4107_v60 }
 0x616   :  { %v8549_v20 = vpop.eup %8548 }
 0x617   :  { %v4111_v19 = vmul.f32 0.5, %v8549_v20 }
 0x618   :  { %v8551_v34 = vpop.eup %8550 }
 0x619   :  { %v4114_v31 = vadd.f32 0.5, %v4111_v19  ;;  %v4112_v58 = vmul.f32 0.5, %v8551_v34  ;;  %v8553_v10 = vpop.eup %8552  ;;  %v11253_v19 = vld [vmem:[#allocation55_spill] sm:$0xff]  ;;  %v11255_v34 = vld [vmem:[#allocation57_spill] sm:$0xff] }
 0x61a   :  { %v8555_v0 = vpop.eup %8554 }
 0x61b   :  { %v4115_v56 = vadd.f32 0.5, %v4112_v58  ;;  %v4119_v6 = vmul.f32 %v8553_v10, %v4114_v31  ;;  %v4113_v14 = vmul.f32 0.5, %v8555_v0  ;;  %v11256_v58 = vld [vmem:[#allocation58_spill] sm:$0xff]  ;;  %v11258_v0 = vld [vmem:[#allocation60_spill] sm:$0xff] }
 0x61d   :  { %v4118_v38 = vmul.f32 %v4115_v56, %v10005_v29  ;;  %v4116_v54 = vadd.f32 0.5, %v4113_v14  ;;  %v4188_v29 = vld [vmem:[#allocation9] sm:$0xf] }
 0x61e   :  { %v4201_v44 = vrot.slane %v4188_v29, %v11152_v42 }
 0x61f   :  { %v10285_v51 = vadd.f32 %v4119_v6, %v4118_v38  ;;  %v11257_v38 = vld [vmem:[#allocation59_spill] sm:$0xff] }
 0x621   :  { %8556 = vtanh.f32 %v10285_v51 }
 0x62e   :  { %v8557_v55 = vpop.eup %8556 }
 0x62f   :  { %v4122_v33 = vmul.f32 %v8557_v55, %v4116_v54  ;;  %v11259_v55 = vld [vmem:[#allocation61_spill] sm:$0xff] }
 0x631   :  { %v10288_v43 = vpack.c.bf16 %v4122_v33, %v4122_v33  ;;  %v11260_v33 = vld [vmem:[#allocation62_spill] sm:$0xff] }
 0x633   :  { %4857 = vmatmul.mubr.bf16.vlgmr.msra.gmra.mxu0 %v10288_v43  ;;  %4898 = vmatmul.mubr.bf16.vlgmr.msra.gmra.mxu1 %v10288_v43 }
 0x634   :  { %5336 = vmatpush1.bf16.msra.mxu0 %v10008_v40  ;;  %5377 = vmatpush1.bf16.msra.mxu1 %v10010_v11  ;;  %v4193_v40 = vrot.slane %v4188_v29, %v9077_v12  ;;  %v11241_v11 = vld [vmem:[#allocation36_spill] sm:$0xff] }
 0x635   :  { %5337 = vmatprep.subr.bf16.mxu0 %v10014_v13  ;;  %5378 = vmatprep.subr.bf16.mxu1 %v10016_v39  ;;  %v11242_v13 = vld [vmem:[#allocation21_spill] sm:$0xff] }
 0x636   :  { %v4197_v39 = vrot.slane %v4188_v29, %v11242_v13 }
 0x638   :  { %5338 = vmatpush1.bf16.msra.mxu0 %v10022_v41  ;;  %5379 = vmatpush1.bf16.msra.mxu1 %v10024_v49 }
 0x639   :  { %5339 = vmatprep.subr.bf16.mxu0 %v10028_v48  ;;  %5380 = vmatprep.subr.bf16.mxu1 %v10030_v50  ;;  %v11243_v48 = vld [vmem:[#allocation24_spill] sm:$0xff]  ;;  %v11244_v50 = vld [vmem:[#allocation25_spill] sm:$0xff] }
 0x63c   :  { %5340 = vmatpush1.bf16.msra.mxu0 %v10034_v37  ;;  %5381 = vmatpush1.bf16.msra.mxu1 %v10036_v26  ;;  %v11245_v26 = vld [vmem:[#allocation39_spill] sm:$0xff] }
 0x63d   :  { %5341 = vmatprep.subr.bf16.mxu0 %v10040_v52  ;;  %5382 = vmatprep.subr.bf16.mxu1 %v10042_v59  ;;  %v11246_v52 = vld [vmem:[#allocation38_spill] sm:$0xff] }
 0x640   :  { %5342 = vmatpush1.bf16.msra.mxu0 %v10046_v23  ;;  %5383 = vmatpush1.bf16.msra.mxu1 %v10048_v57 }
 0x641   :  { %5343 = vmatprep.subr.bf16.mxu0 %v10052_v46  ;;  %5384 = vmatprep.subr.bf16.mxu1 %v10054_v21  ;;  %v4205_v21 = vrot.slane %v4188_v29, %v11149_v9 }
 0x644   :  { %5344 = vmatpush1.bf16.msra.mxu0 %v10058_v3  ;;  %5385 = vmatpush1.bf16.msra.mxu1 %v10060_v16 }
 0x645   :  { %5345 = vmatprep.subr.bf16.mxu0 %v10064_v4  ;;  %5386 = vmatprep.subr.bf16.mxu1 %v11241_v11 }
 0x648   :  { %v4564_v41 = vpop.f32.mrf.mxu0  ;;  %v4605_v49 = vpop.f32.mrf.mxu1  ;;  %5346 = vmatpush1.bf16.msra.mxu0 %v11243_v48  ;;  %5387 = vmatpush1.bf16.msra.mxu1 %v11244_v50  ;;  %v11262_v48 = vld [vmem:[#allocation64_spill] sm:$0xff]  ;;  %v11263_v50 = vld [vmem:[#allocation65_spill] sm:$0xff] }
 0x649   :  { %v4565_v37 = vadd.f32 %v4564_v41, %v4193_v40  ;;  %5347 = vmatprep.subr.bf16.mxu0 %v11245_v26  ;;  %5388 = vmatprep.subr.bf16.mxu1 %v11246_v52  ;;  %v11269_v26 = vld [vmem:[#allocation71_spill] sm:$0xff] }
 0x64a   :  { %v4566_v59 = vpop.f32.mrf.mxu0  ;;  %v4607_v23 = vpop.f32.mrf.mxu1 }
 0x64b   :  { %v4612_v57 = vmul.f32 0.5, %v4565_v37  ;;  %v4567_v46 = vadd.f32 %v4566_v59, %v4197_v39  ;;  %v4608_v60 = vadd.f32 %v4607_v23, %v4205_v21  ;;  %v11267_v37 = vld [vmem:[#allocation69_spill] sm:$0xff] }
 0x64c   :  { %v4568_v3 = vpop.f32.mrf.mxu0  ;;  %v4609_v16 = vpop.f32.mrf.mxu1  ;;  %5348 = vmatpush1.bf16.msra.mxu0 %v10084_v47  ;;  %5389 = vmatpush1.bf16.msra.mxu1 %v10086_v63  ;;  %v11248_v47 = vld [vmem:[#allocation50_spill] sm:$0xff]  ;;  %v11249_v63 = vld [vmem:[#allocation51_spill] sm:$0xff]  ;;  %v11275_v21 = vld [vmem:[#allocation77_spill] sm:$0xff] }
 0x64d   :  { %8558 = vtanh.f32 %v4612_v57  ;;  %v4613_v4 = vmul.f32 0.5, %v4567_v46  ;;  %5349 = vmatprep.subr.bf16.mxu0 %v10090_v7  ;;  %5390 = vmatprep.subr.bf16.mxu1 %v10092_v25  ;;  %v11250_v7 = vld [vmem:[#allocation52_spill] sm:$0xff]  ;;  %v4606_v25 = vadd.f32 %v4605_v49, %v4201_v44  ;;  %v11261_v49 = vld [vmem:[#allocation63_spill] sm:$0xff]  ;;  %v11277_v3 = vld [vmem:[#allocation81_spill] sm:$0xff] }
 0x64e   :  { %v4569_v31 = vpop.f32.mrf.mxu0  ;;  %v4610_v20 = vpop.f32.mrf.mxu1  ;;  %v8314_v46 = vld [vmem:[#allocation3 + $0xe8] ss:$16 sps:$4 sm:$0xff]  }
 0x64f   :  { %8560 = vtanh.f32 %v4613_v4  ;;  %v11278_v16 = vld [vmem:[#allocation80_spill] sm:$0xff]  ;;  %v11279_v20 = vld [vmem:[#allocation82_spill] sm:$0xff] }
 0x650   :  { %5350 = vmatpush1.bf16.msra.mxu0 %v10097_v15  ;;  %5391 = vmatpush1.bf16.msra.mxu1 %v10099_v61  ;;  %8562 = vtanh.f32 %v4608_v60  ;;  %v11254_v15 = vld [vmem:[#allocation56_spill] sm:$0xff]  ;;  %v4614_v61 = vmul.f32 0.5, %v4606_v25  ;;  %v11280_v60 = vld [vmem:[#allocation83_spill] sm:$0xff] }
 0x651   :  { %5351 = vmatprep.subr.bf16.mxu0 %v11247_v1  ;;  %5392 = vmatprep.subr.bf16.mxu1 %v11248_v47  ;;  %v8322_v4 = vld [vmem:[#allocation3 + $0xac] ss:$16 sps:$4 sm:$0xff]   ;;  %v8320_v31 = vld [vmem:[#allocation3 + $0xa8] ss:$16 sps:$4 sm:$0xff]  }
 0x652   :  { %8564 = vtanh.f32 %v4614_v61  ;;  %v8323_v44 = vld [vmem:[#allocation3 + $0x88] ss:$16 sps:$4 sm:$0xff]   ;;  %v8325_v1 = vld [vmem:[#allocation3 + $0x8c] ss:$16 sps:$4 sm:$0xff]  }
 0x653   :  { %v8328_v47 = vld [vmem:[#allocation3 + $0x6c] ss:$16 sps:$4 sm:$0xff]   ;;  %v8326_v25 = vld [vmem:[#allocation3 + $0x68] ss:$16 sps:$4 sm:$0xff]  }
 0x654   :  { %5352 = vmatpush2.bf16.msra.mxu0 %v11249_v63  ;;  %5393 = vmatpush2.bf16.msra.mxu1 %v11250_v7  ;;  %v11281_v63 = vld [vmem:[#allocation84_spill] sm:$0xff]  ;;  %v11282_v7 = vld [vmem:[#allocation85_spill] sm:$0xff] }
 0x655   :  { %5353 = vmatprep.subr.bf16.mxu0 %v11251_v27  ;;  %5394 = vmatprep.subr.bf16.mxu1 %v11252_v24  ;;  %v8331_v27 = vld [vmem:[#allocation3 + $0x4c] ss:$16 sps:$4 sm:$0xff]   ;;  %v8332_v61 = vld [vmem:[#allocation3 + $0x28] ss:$16 sps:$4 sm:$0xff]  }
 0x656   :  { %v11283_v24 = vld [vmem:[#allocation86_spill] sm:$0xff] }
 0x658   :  { %5354 = vmatpush2.bf16.msra.mxu0 %v11253_v19  ;;  %5395 = vmatpush2.bf16.msra.mxu1 %v11254_v15  ;;  %v8329_v19 = vld [vmem:[#allocation3 + $0x48] ss:$16 sps:$4 sm:$0xff]   ;;  %v8334_v15 = vld [vmem:[#allocation3 + $0x2c] ss:$16 sps:$4 sm:$0xff]  }
 0x659   :  { %5355 = vmatprep.subr.bf16.mxu0 %v11255_v34  ;;  %5396 = vmatprep.subr.bf16.mxu1 %v11256_v58  ;;  %v8337_v34 = vld [vmem:[#allocation3 + $0xc] ss:$16 sps:$4 sm:$0xff]   ;;  %v8335_v58 = vld [vmem:[#allocation3 + $0x8] ss:$16 sps:$4 sm:$0xff]  }
 0x65a   :  { %v8559_v10 = vpop.eup %8558 }
 0x65b   :  { %v4618_v56 = vmul.f32 0.5, %v8559_v10  ;;  %v10386_v10 = vld [vmem:[#allocation8 + $0xe4] ss:$16 sps:$4 sm:$0xff]  }
 0x65c   :  { %v8561_v6 = vpop.eup %8560  ;;  %5356 = vmatpush2.bf16.msra.mxu0 %v11257_v38  ;;  %5397 = vmatpush2.bf16.msra.mxu1 %v11258_v0  ;;  %v11284_v0 = vld [vmem:[#allocation30_spill] sm:$0xff] }
 0x65d   :  { %v4621_v14 = vadd.f32 0.5, %v4618_v56  ;;  %v4619_v54 = vmul.f32 0.5, %v8561_v6  ;;  %5357 = vmatprep.subr.bf16.mxu0 %v11259_v55  ;;  %5398 = vmatprep.subr.bf16.mxu1 %v11260_v33  ;;  %v8563_v40 = vpop.eup %8562  ;;  %v10388_v56 = vld [vmem:[#allocation8 + $0xec] ss:$16 sps:$4 sm:$0xff]  }
 0x65f   :  { %v4622_v29 = vadd.f32 0.5, %v4619_v54  ;;  %v4626_v39 = vmul.f32 %v8563_v40, %v4621_v14 }
 0x660   :  { %5358 = vmatpush2.bf16.msra.mxu0 %v10146_v36  ;;  %5399 = vmatpush2.bf16.msra.mxu1 %v10148_v8  ;;  %v11264_v36 = vld [vmem:[#allocation66_spill] sm:$0xff]  ;;  %v11265_v8 = vld [vmem:[#allocation67_spill] sm:$0xff] }
 0x661   :  { %v4625_v11 = vmul.f32 %v4622_v29, %v10169_v45  ;;  %5359 = vmatprep.subr.bf16.mxu0 %v10152_v22  ;;  %5400 = vmatprep.subr.bf16.mxu1 %v10154_v32  ;;  %v11266_v45 = vld [vmem:[#allocation68_spill] sm:$0xff]  ;;  %v11268_v22 = vld [vmem:[#allocation70_spill] sm:$0xff]  ;;  %v8565_v32 = vpop.eup %8564  ;;  %v11285_v29 = vld [vmem:[#allocation31_spill] sm:$0xff] }
 0x662   :  { %v4620_v52 = vmul.f32 0.5, %v8565_v32 }
 0x663   :  { %v10345_v41 = vadd.f32 %v4626_v39, %v4625_v11 }
 0x664   :  { %5360 = vmatpush2.bf16.msra.mxu0 %v11261_v49  ;;  %5401 = vmatpush2.bf16.msra.mxu1 %v11262_v48  ;;  %v4623_v59 = vadd.f32 0.5, %v4620_v52  ;;  %v11286_v48 = vld [vmem:[#allocation45_spill] sm:$0xff] }
 0x665   :  { %8566 = vtanh.f32 %v10345_v41  ;;  %5361 = vmatprep.subr.bf16.mxu0 %v11263_v50  ;;  %5402 = vmatprep.subr.bf16.mxu1 %v11264_v36 }
 0x668   :  { %5362 = vmatpush2.bf16.msra.mxu0 %v11265_v8  ;;  %5403 = vmatpush2.bf16.msra.mxu1 %v11266_v45  ;;  %v11287_v45 = vld [vmem:[#allocation44_spill] sm:$0xff] }
 0x669   :  { %5363 = vmatprep.subr.bf16.mxu0 %v11267_v37  ;;  %5404 = vmatprep.subr.bf16.mxu1 %v11268_v22 }
 0x66c   :  { %5364 = vmatpush2.bf16.msra.mxu0 %v10186_v5  ;;  %5405 = vmatpush2.bf16.msra.mxu1 %v11269_v26 }
 0x66d   :  { %5365 = vmatprep.subr.bf16.mxu0 %v10192_v28  ;;  %5406 = vmatprep.subr.bf16.mxu1 %v10194_v30  ;;  %v11271_v30 = vld [vmem:[#allocation73_spill] sm:$0xff]  ;;  %v11272_v28 = vld [vmem:[#allocation74_spill] sm:$0xff] }
 0x670   :  { %5366 = vmatpush2.bf16.msra.mxu0 %v10198_v35  ;;  %5407 = vmatpush2.bf16.msra.mxu1 %v10200_v53  ;;  %v11273_v35 = vld [vmem:[#allocation75_spill] sm:$0xff]  ;;  %v11274_v53 = vld [vmem:[#allocation78_spill] sm:$0xff] }
 0x671   :  { %5629 = vmatprep.subr.bf16.mxu0 %v10221_v62  ;;  %v8316_v62 = vld [vmem:[#allocation3 + $0xec] ss:$16 sps:$4 sm:$0xff]  }
 0x672   :  { %v8567_v23 = vpop.eup %8566  ;;  %5670 = vmatprep.subr.bf16.mxu1 %v8316_v62 }
 0x673   :  { %v10363_v57 = vmul.f32 %v8567_v23, %v4623_v59 }
 0x675   :  { %11270 = vst [vmem:[#allocation87_spill] sm:$0xff] %v10363_v57  ;;  %v4928_v5 = vpack.c.bf16 %v10363_v57, %v10363_v57 }
 0x677   :  { %5367 = vmatprep.mubr.bf16.mxu0 %v4928_v5  ;;  %5408 = vmatprep.mubr.bf16.mxu1 %v4928_v5 }
 0x678   :  { %5368 = vmatmul.mubr.bf16.vlgmr.msra.gmra.mxu0 %v10288_v43  ;;  %5409 = vmatmul.mubr.bf16.vlgmr.msra.gmra.mxu1 %v10288_v43  ;;  %v8319_v43 = vld [vmem:[#allocation3 + $0xcc] ss:$16 sps:$4 sm:$0xff]  }
 0x679   :  { %5630 = vmatpush1.bf16.msra.mxu0 %v10224_v18  ;;  %5661 = vmatprep.mubr.bf16.mxu0 %v11084_v17  ;;  %v11276_v18 = vld [vmem:[#allocation79_spill] sm:$0xff] }
 0x67a   :  { %5631 = vmatprep.subr.bf16.mxu0 %v10229_v2  ;;  %5702 = vmatprep.mubr.bf16.mxu1 %v11084_v17  ;;  %v8317_v2 = vld [vmem:[#allocation3 + $0xc8] ss:$16 sps:$4 sm:$0xff]   ;;  %v10550_v17 = vld [vmem:[#allocation8 + $0x160] ss:$16 sps:$4 sm:$0xff]  }
 0x67b   :  { %5671 = vmatpush1.bf16.msra.mxu1 %v8314_v46 }
 0x67c   :  { %5672 = vmatprep.subr.bf16.mxu1 %v8319_v43 }
 0x67d   :  { %5632 = vmatpush1.bf16.msra.mxu0 %v11271_v30 }
 0x67e   :  { %5633 = vmatprep.subr.bf16.mxu0 %v11272_v28 }
 0x67f   :  { %5673 = vmatpush1.bf16.msra.mxu1 %v8317_v2  ;;  %v10400_v2 = vld [vmem:[#allocation8 + $0xe0] ss:$16 sps:$4 sm:$0xff]  }
 0x680   :  { %5674 = vmatprep.subr.bf16.mxu1 %v8322_v4  ;;  %v10406_v4 = vld [vmem:[#allocation8 + $0xc4] ss:$16 sps:$4 sm:$0xff]  }
 0x681   :  { %5634 = vmatpush1.bf16.msra.mxu0 %v11273_v35 }
 0x682   :  { %5635 = vmatprep.subr.bf16.mxu0 %v11274_v53 }
 0x683   :  { %5675 = vmatpush1.bf16.msra.mxu1 %v8320_v31  ;;  %v10408_v31 = vld [vmem:[#allocation8 + $0xcc] ss:$16 sps:$4 sm:$0xff]  }
 0x684   :  { %5676 = vmatprep.subr.bf16.mxu1 %v8325_v1  ;;  %v10426_v1 = vld [vmem:[#allocation8 + $0xa0] ss:$16 sps:$4 sm:$0xff]  }
 0x685   :  { %5636 = vmatpush1.bf16.msra.mxu0 %v11275_v21 }
 0x686   :  { %5637 = vmatprep.subr.bf16.mxu0 %v11276_v18 }
 0x687   :  { %5677 = vmatpush1.bf16.msra.mxu1 %v8323_v44  ;;  %v10422_v44 = vld [vmem:[#allocation8 + $0xac] ss:$16 sps:$4 sm:$0xff]  }
 0x688   :  { %5678 = vmatprep.subr.bf16.mxu1 %v8328_v47  ;;  %v10428_v47 = vld [vmem:[#allocation8 + $0xa8] ss:$16 sps:$4 sm:$0xff]  }
 0x689   :  { %5638 = vmatpush1.bf16.msra.mxu0 %v11277_v3  ;;  %v10402_v3 = vld [vmem:[#allocation8 + $0xe8] ss:$16 sps:$4 sm:$0xff]  }
 0x68a   :  { %5639 = vmatprep.subr.bf16.mxu0 %v11278_v16 }
 0x68b   :  { %5679 = vmatpush1.bf16.msra.mxu1 %v8326_v25  ;;  %v10438_v25 = vld [vmem:[#allocation8 + $0x80] ss:$16 sps:$4 sm:$0xff]  }
 0x68c   :  { %5680 = vmatprep.subr.bf16.mxu1 %v8331_v27  ;;  %v10440_v27 = vld [vmem:[#allocation8 + $0x88] ss:$16 sps:$4 sm:$0xff]  }
 0x68d   :  { %5640 = vmatpush1.bf16.msra.mxu0 %v11279_v20  ;;  %v10416_v20 = vld [vmem:[#allocation8 + $0xc8] ss:$16 sps:$4 sm:$0xff]  }
 0x68e   :  { %5641 = vmatprep.subr.bf16.mxu0 %v11280_v60  ;;  %v10420_v60 = vld [vmem:[#allocation8 + $0xa4] ss:$16 sps:$4 sm:$0xff]  }
 0x68f   :  { %5681 = vmatpush1.bf16.msra.mxu1 %v8329_v19  ;;  %v10446_v19 = vld [vmem:[#allocation8 + $0x6c] ss:$16 sps:$4 sm:$0xff]  }
 0x690   :  { %5682 = vmatprep.subr.bf16.mxu1 %v8334_v15  ;;  %v10450_v15 = vld [vmem:[#allocation8 + $0x60] ss:$16 sps:$4 sm:$0xff]  }
 0x691   :  { %5642 = vmatpush1.bf16.msra.mxu0 %v11281_v63  ;;  %v10432_v63 = vld [vmem:[#allocation8 + $0x84] ss:$16 sps:$4 sm:$0xff]  }
 0x692   :  { %5643 = vmatprep.subr.bf16.mxu0 %v11282_v7  ;;  %v10434_v7 = vld [vmem:[#allocation8 + $0x8c] ss:$16 sps:$4 sm:$0xff]  }
 0x693   :  { %5683 = vmatpush1.bf16.msra.mxu1 %v8332_v61  ;;  %v10452_v61 = vld [vmem:[#allocation8 + $0x68] ss:$16 sps:$4 sm:$0xff]  }
 0x694   :  { %5684 = vmatprep.subr.bf16.mxu1 %v8337_v34  ;;  %v10456_v34 = vld [vmem:[#allocation8 + $0x44] ss:$16 sps:$4 sm:$0xff]  }
 0x695   :  { %5644 = vmatpush1.bf16.msra.mxu0 %v11283_v24  ;;  %v10444_v24 = vld [vmem:[#allocation8 + $0x64] ss:$16 sps:$4 sm:$0xff]  }
 0x696   :  { %6140 = vmatprep.subr.bf16.mxu0 %v10386_v10 }
 0x697   :  { %5685 = vmatpush1.bf16.msra.mxu1 %v8335_v58  ;;  %v10458_v58 = vld [vmem:[#allocation8 + $0x4c] ss:$16 sps:$4 sm:$0xff]  }
 0x698   :  { %6181 = vmatprep.subr.bf16.mxu1 %v10388_v56 }
 0x6f3   :  { %v4858_v6 = vpop.f32.mrf.mxu0  ;;  %v4899_v38 = vpop.f32.mrf.mxu1 }
 0x6f4   :  { %v4906_v14 = vadd.f32 %v4858_v6, %v11284_v0  ;;  %v4908_v37 = vadd.f32 %v4899_v38, %v11287_v45  ;;  %v4993_v6 = vld [vmem:[#allocation9] sm:$0xf]  ;;  %v10464_v0 = vld [vmem:[#allocation8 + $0x48] ss:$16 sps:$4 sm:$0xff]  }
 0x6f5   :  { %v4860_v54 = vpop.f32.mrf.mxu0  ;;  %v4901_v55 = vpop.f32.mrf.mxu1  ;;  %v10462_v38 = vld [vmem:[#allocation8 + $0x40] ss:$16 sps:$4 sm:$0xff]  }
 0x6f6   :  { %v4910_v33 = vmul.f32 0.5, %v4906_v14  ;;  %v4907_v40 = vadd.f32 %v4860_v54, %v11285_v29  ;;  %v4909_v50 = vadd.f32 %v4901_v55, %v11286_v48  ;;  %v4912_v22 = vmul.f32 0.5, %v4908_v37  ;;  %v10468_v14 = vld [vmem:[#allocation8 + $0x24] ss:$16 sps:$4 sm:$0xff]   ;;  %v10470_v54 = vld [vmem:[#allocation8 + $0x2c] ss:$16 sps:$4 sm:$0xff]  }
 0x6f7   :  { %v4862_v11 = vpop.f32.mrf.mxu0  ;;  %v4903_v39 = vpop.f32.mrf.mxu1  ;;  %v4998_v55 = vrot.slane %v4993_v6, %v9077_v12  ;;  %v10476_v29 = vld [vmem:[#allocation8 + $0x20] ss:$16 sps:$4 sm:$0xff]   ;;  %v10484_v48 = vld [vmem:[#allocation8 + $0xc] ss:$16 sps:$4 sm:$0xff]  }
 0x6f8   :  { %8568 = vtanh.f32 %v4910_v33  ;;  %v4911_v49 = vmul.f32 0.5, %v4907_v40  ;;  %v5002_v33 = vrot.slane %v4993_v6, %v11242_v13  ;;  %v10478_v40 = vld [vmem:[#allocation8 + $0x28] ss:$16 sps:$4 sm:$0xff]   ;;  %v10556_v13 = vld [vmem:[#allocation8 + $0x144] ss:$16 sps:$4 sm:$0xff]  }
 0x6f9   :  { %v4863_v36 = vpop.f32.mrf.mxu0  ;;  %v4904_v8 = vpop.f32.mrf.mxu1  ;;  %v10558_v12 = vld [vmem:[#allocation8 + $0x14c] ss:$16 sps:$4 sm:$0xff]  }
 0x6fa   :  { %8570 = vtanh.f32 %v4911_v49  ;;  %v10482_v49 = vld [vmem:[#allocation8 + $0x4] ss:$16 sps:$4 sm:$0xff]  }
 0x6fb   :  { %8572 = vtanh.f32 %v4909_v50 }
 0x6fc   :  { %8574 = vtanh.f32 %v4912_v22  ;;  %v5010_v22 = vrot.slane %v4993_v6, %v11149_v9 }
 0x705   :  { %v8569_v32 = vpop.eup %8568 }
 0x706   :  { %v4916_v26 = vmul.f32 0.5, %v8569_v32  ;;  %v10489_v32 = vld [vmem:[#allocation8] ss:$16 sps:$4 sm:$0xff]  }
 0x707   :  { %v8571_v52 = vpop.eup %8570 }
 0x708   :  { %v4919_v59 = vadd.f32 0.5, %v4916_v26  ;;  %v4917_v23 = vmul.f32 0.5, %v8571_v52  ;;  %v8573_v5 = vpop.eup %8572  ;;  %v10491_v26 = vld [vmem:[#allocation8 + $0x8] ss:$16 sps:$4 sm:$0xff]  }
 0x709   :  { %v8575_v62 = vpop.eup %8574 }
 0x70a   :  { %v4920_v30 = vadd.f32 0.5, %v4917_v23  ;;  %v4924_v28 = vmul.f32 %v8573_v5, %v4919_v59  ;;  %v4918_v46 = vmul.f32 0.5, %v8575_v62  ;;  %v10495_v23 = vld [vmem:[#allocation8 + $0x1e4] ss:$16 sps:$4 sm:$0xff]   ;;  %v10497_v5 = vld [vmem:[#allocation8 + $0x1ec] ss:$16 sps:$4 sm:$0xff]  }
 0x70c   :  { %v4923_v35 = vmul.f32 %v4920_v30, %v10285_v51  ;;  %v4921_v21 = vadd.f32 0.5, %v4918_v46  ;;  %v10414_v51 = vld [vmem:[#allocation8 + $0xc0] ss:$16 sps:$4 sm:$0xff]  }
 0x70d   :  { %v10501_v46 = vld [vmem:[#allocation8 + $0x1e0] ss:$16 sps:$4 sm:$0xff]  }
 0x70e   :  { %v10397_v53 = vadd.f32 %v4924_v28, %v4923_v35 }
 0x710   :  { %11288 = vst [vmem:[#allocation22_spill] sm:$0xff] %v10397_v53  ;;  %8576 = vtanh.f32 %v10397_v53  ;;  %v10567_v53 = vld [vmem:[#allocation8 + $0x148] ss:$16 sps:$4 sm:$0xff]  }
 0x711   :  { %11292 = vst [vmem:[#allocation41_spill] sm:$0xff] %v10567_v53 }
 0x71d   :  { %v8577_v18 = vpop.eup %8576 }
 0x71e   :  { %v4927_v43 = vmul.f32 %v8577_v18, %v4921_v21  ;;  %v10503_v21 = vld [vmem:[#allocation8 + $0x1e8] ss:$16 sps:$4 sm:$0xff]   ;;  %v10507_v18 = vld [vmem:[#allocation8 + $0x1c4] ss:$16 sps:$4 sm:$0xff]  }
 0x720   :  { %v10404_v16 = vpack.c.bf16 %v4927_v43, %v4927_v43  ;;  %v10509_v43 = vld [vmem:[#allocation8 + $0x1cc] ss:$16 sps:$4 sm:$0xff]  }
 0x722   :  { %5662 = vmatmul.mubr.bf16.vlgmr.msra.gmra.mxu0 %v10404_v16  ;;  %5703 = vmatmul.mubr.bf16.vlgmr.msra.gmra.mxu1 %v10404_v16 }
 0x723   :  { %6141 = vmatpush1.bf16.msra.mxu0 %v10400_v2  ;;  %6182 = vmatpush1.bf16.msra.mxu1 %v10402_v3 }
 0x724   :  { %6142 = vmatprep.subr.bf16.mxu0 %v10406_v4  ;;  %6183 = vmatprep.subr.bf16.mxu1 %v10408_v31 }
 0x727   :  { %6143 = vmatpush1.bf16.msra.mxu0 %v10414_v51  ;;  %6184 = vmatpush1.bf16.msra.mxu1 %v10416_v20 }
 0x728   :  { %6144 = vmatprep.subr.bf16.mxu0 %v10420_v60  ;;  %6185 = vmatprep.subr.bf16.mxu1 %v10422_v44 }
 0x72b   :  { %6145 = vmatpush1.bf16.msra.mxu0 %v10426_v1  ;;  %6186 = vmatpush1.bf16.msra.mxu1 %v10428_v47 }
 0x72c   :  { %6146 = vmatprep.subr.bf16.mxu0 %v10432_v63  ;;  %6187 = vmatprep.subr.bf16.mxu1 %v10434_v7 }
 0x72f   :  { %6147 = vmatpush1.bf16.msra.mxu0 %v10438_v25  ;;  %6188 = vmatpush1.bf16.msra.mxu1 %v10440_v27 }
 0x730   :  { %6148 = vmatprep.subr.bf16.mxu0 %v10444_v24  ;;  %6189 = vmatprep.subr.bf16.mxu1 %v10446_v19 }
 0x733   :  { %6149 = vmatpush1.bf16.msra.mxu0 %v10450_v15  ;;  %6190 = vmatpush1.bf16.msra.mxu1 %v10452_v61 }
 0x734   :  { %6150 = vmatprep.subr.bf16.mxu0 %v10456_v34  ;;  %6191 = vmatprep.subr.bf16.mxu1 %v10458_v58 }
 0x737   :  { %6151 = vmatpush1.bf16.msra.mxu0 %v10462_v38  ;;  %6192 = vmatpush1.bf16.msra.mxu1 %v10464_v0 }
 0x738   :  { %v5369_v11 = vpop.f32.mrf.mxu0  ;;  %v5410_v39 = vpop.f32.mrf.mxu1  ;;  %6152 = vmatprep.subr.bf16.mxu0 %v10468_v14  ;;  %6193 = vmatprep.subr.bf16.mxu1 %v10470_v54 }
 0x739   :  { %v5370_v50 = vadd.f32 %v5369_v11, %v4998_v55  ;;  %v5006_v55 = vrot.slane %v4993_v6, %v11152_v42  ;;  %v10516_v11 = vld [vmem:[#allocation8 + $0x1c8] ss:$16 sps:$4 sm:$0xff]   ;;  %v10526_v6 = vld [vmem:[#allocation8 + $0x1a0] ss:$16 sps:$4 sm:$0xff]  }
 0x73a   :  { %v5371_v36 = vpop.f32.mrf.mxu0  ;;  %v5412_v8 = vpop.f32.mrf.mxu1  ;;  %v10552_v42 = vld [vmem:[#allocation8 + $0x168] ss:$16 sps:$4 sm:$0xff]  }
 0x73b   :  { %v5417_v45 = vmul.f32 0.5, %v5370_v50  ;;  %v5372_v37 = vadd.f32 %v5371_v36, %v5002_v33  ;;  %6153 = vmatpush1.bf16.msra.mxu0 %v10476_v29  ;;  %6194 = vmatpush1.bf16.msra.mxu1 %v10478_v40  ;;  %v5413_v62 = vadd.f32 %v5412_v8, %v5010_v22  ;;  %v10514_v33 = vld [vmem:[#allocation8 + $0x1c0] ss:$16 sps:$4 sm:$0xff]   ;;  %v10520_v50 = vld [vmem:[#allocation8 + $0x1a4] ss:$16 sps:$4 sm:$0xff]   ;;  %v5411_v8 = vadd.f32 %v5410_v39, %v5006_v55 }
 0x73c   :  { %v5373_v52 = vpop.f32.mrf.mxu0  ;;  %v5414_v59 = vpop.f32.mrf.mxu1  ;;  %6154 = vmatprep.subr.bf16.mxu0 %v10482_v49  ;;  %6195 = vmatprep.subr.bf16.mxu1 %v10484_v48  ;;  %v10522_v36 = vld [vmem:[#allocation8 + $0x1ac] ss:$16 sps:$4 sm:$0xff]   ;;  %v10538_v39 = vld [vmem:[#allocation8 + $0x180] ss:$16 sps:$4 sm:$0xff]  }
 0x73d   :  { %8578 = vtanh.f32 %v5417_v45  ;;  %v5418_v30 = vmul.f32 0.5, %v5372_v37  ;;  %v10528_v45 = vld [vmem:[#allocation8 + $0x1a8] ss:$16 sps:$4 sm:$0xff]   ;;  %v10532_v37 = vld [vmem:[#allocation8 + $0x184] ss:$16 sps:$4 sm:$0xff]   ;;  %v5419_v52 = vmul.f32 0.5, %v5411_v8 }
 0x73e   :  { %v5374_v28 = vpop.f32.mrf.mxu0  ;;  %v5415_v35 = vpop.f32.mrf.mxu1  ;;  %v10534_v22 = vld [vmem:[#allocation8 + $0x18c] ss:$16 sps:$4 sm:$0xff]  }
 0x73f   :  { %8580 = vtanh.f32 %v5418_v30  ;;  %6155 = vmatpush1.bf16.msra.mxu0 %v10489_v32  ;;  %6196 = vmatpush1.bf16.msra.mxu1 %v10491_v26  ;;  %v10540_v28 = vld [vmem:[#allocation8 + $0x188] ss:$16 sps:$4 sm:$0xff]   ;;  %v10546_v55 = vld [vmem:[#allocation8 + $0x16c] ss:$16 sps:$4 sm:$0xff]  }
 0x740   :  { %6156 = vmatprep.subr.bf16.mxu0 %v10495_v23  ;;  %6197 = vmatprep.subr.bf16.mxu1 %v10497_v5  ;;  %8582 = vtanh.f32 %v5413_v62  ;;  %v10544_v62 = vld [vmem:[#allocation8 + $0x164] ss:$16 sps:$4 sm:$0xff]   ;;  %11290 = vst [vmem:[#allocation26_spill] sm:$0xff] %v10546_v55 }
 0x741   :  { %11289 = vst [vmem:[#allocation23_spill] sm:$0xff] %v10544_v62  ;;  %8584 = vtanh.f32 %v5419_v52 }
 0x743   :  { %6157 = vmatpush2.bf16.msra.mxu0 %v10501_v46  ;;  %6198 = vmatpush2.bf16.msra.mxu1 %v10503_v21 }
 0x744   :  { %6158 = vmatprep.subr.bf16.mxu0 %v10507_v18  ;;  %6199 = vmatprep.subr.bf16.mxu1 %v10509_v43 }
 0x747   :  { %6159 = vmatpush2.bf16.msra.mxu0 %v10514_v33  ;;  %6200 = vmatpush2.bf16.msra.mxu1 %v10516_v11 }
 0x748   :  { %6160 = vmatprep.subr.bf16.mxu0 %v10520_v50  ;;  %6201 = vmatprep.subr.bf16.mxu1 %v10522_v36 }
 0x74a   :  { %v8579_v59 = vpop.eup %8578 }
 0x74b   :  { %v5423_v30 = vmul.f32 0.5, %v8579_v59  ;;  %6161 = vmatpush2.bf16.msra.mxu0 %v10526_v6  ;;  %6202 = vmatpush2.bf16.msra.mxu1 %v10528_v45 }
 0x74c   :  { %v8581_v35 = vpop.eup %8580  ;;  %6162 = vmatprep.subr.bf16.mxu0 %v10532_v37  ;;  %6203 = vmatprep.subr.bf16.mxu1 %v10534_v22 }
 0x74d   :  { %v5426_v8 = vadd.f32 0.5, %v5423_v30  ;;  %v5424_v59 = vmul.f32 0.5, %v8581_v35  ;;  %v8583_v9 = vpop.eup %8582 }
 0x74f   :  { %v5427_v57 = vadd.f32 0.5, %v5424_v59  ;;  %6163 = vmatpush2.bf16.msra.mxu0 %v10538_v39  ;;  %6204 = vmatpush2.bf16.msra.mxu1 %v10540_v28  ;;  %v5431_v30 = vmul.f32 %v8583_v9, %v5426_v8  ;;  %v10565_v59 = vld [vmem:[#allocation8 + $0x140] ss:$16 sps:$4 sm:$0xff]   ;;  %v10586_v8 = vld [vmem:[#allocation8 + $0x10c] ss:$16 sps:$4 sm:$0xff]  }
 0x750   :  { %6164 = vmatprep.subr.bf16.mxu0 %v10544_v62  ;;  %6205 = vmatprep.subr.bf16.mxu1 %v10546_v55  ;;  %v10571_v55 = vld [vmem:[#allocation8 + $0x124] ss:$16 sps:$4 sm:$0xff]   ;;  %v10573_v62 = vld [vmem:[#allocation8 + $0x12c] ss:$16 sps:$4 sm:$0xff]   ;;  %v10578_v9 = vld [vmem:[#allocation8 + $0x120] ss:$16 sps:$4 sm:$0xff]  }
 0x751   :  { %v5430_v52 = vmul.f32 %v5427_v57, %v10345_v41  ;;  %11293 = vst [vmem:[#allocation40_spill] sm:$0xff] %v10571_v55  ;;  %11294 = vst [vmem:[#allocation28_spill] sm:$0xff] %v10573_v62  ;;  %v10580_v41 = vld [vmem:[#allocation8 + $0x128] ss:$16 sps:$4 sm:$0xff]   ;;  %v10584_v57 = vld [vmem:[#allocation8 + $0x104] ss:$16 sps:$4 sm:$0xff]  }
 0x752   :  { %11295 = vst [vmem:[#allocation29_spill] sm:$0xff] %v10578_v9  ;;  %11296 = vst [vmem:[#allocation43_spill] sm:$0xff] %v10580_v41 }
 0x753   :  { %v10561_v35 = vadd.f32 %v5431_v30, %v5430_v52  ;;  %6165 = vmatpush2.bf16.msra.mxu0 %v10550_v17  ;;  %6206 = vmatpush2.bf16.msra.mxu1 %v10552_v42  ;;  %v8585_v52 = vpop.eup %8584  ;;  %v10590_v30 = vld [vmem:[#allocation8 + $0x100] ss:$16 sps:$4 sm:$0xff]  }
 0x754   :  { %6166 = vmatprep.subr.bf16.mxu0 %v10556_v13  ;;  %6207 = vmatprep.subr.bf16.mxu1 %v10558_v12 }
 0x755   :  { %11291 = vst [vmem:[#allocation27_spill] sm:$0xff] %v10561_v35  ;;  %8586 = vtanh.f32 %v10561_v35  ;;  %v10592_v35 = vld [vmem:[#allocation8 + $0x108] ss:$16 sps:$4 sm:$0xff]  }
 0x757   :  { %6167 = vmatpush2.bf16.msra.mxu0 %v10565_v59  ;;  %6208 = vmatpush2.bf16.msra.mxu1 %v10567_v53 }
 0x758   :  { %6168 = vmatprep.subr.bf16.mxu0 %v10571_v55  ;;  %6209 = vmatprep.subr.bf16.mxu1 %v10573_v62  ;;  %v5425_v55 = vmul.f32 0.5, %v8585_v52 }
 0x75b   :  { %6169 = vmatpush2.bf16.msra.mxu0 %v10578_v9  ;;  %6210 = vmatpush2.bf16.msra.mxu1 %v10580_v41  ;;  %v5428_v9 = vadd.f32 0.5, %v5425_v55  ;;  %v11311_v55 = vld [vmem:[#allocation35_spill] sm:$0xff] }
 0x75c   :  { %6170 = vmatprep.subr.bf16.mxu0 %v10584_v57  ;;  %6211 = vmatprep.subr.bf16.mxu1 %v10586_v8 }
 0x75f   :  { %6171 = vmatpush2.bf16.msra.mxu0 %v10590_v30  ;;  %6212 = vmatpush2.bf16.msra.mxu1 %v10592_v35 }
 0x760   :  { %6649 = vmatprep.subr.bf16.mxu0 %v10386_v10  ;;  %6690 = vmatprep.subr.bf16.mxu1 %v10388_v56  ;;  %v11297_v10 = vld [vmem:[#allocation23_spill] sm:$0xff]  ;;  %v11298_v56 = vld [vmem:[#allocation26_spill] sm:$0xff] }
 0x762   :  { %v8587_v62 = vpop.eup %8586 }
 0x763   :  { %v10600_v41 = vmul.f32 %v8587_v62, %v5428_v9 }
 0x765   :  { %v5733_v53 = vpack.c.bf16 %v10600_v41, %v10600_v41 }
 0x767   :  { %6172 = vmatprep.mubr.bf16.mxu0 %v5733_v53  ;;  %6213 = vmatprep.mubr.bf16.mxu1 %v5733_v53  ;;  %v11299_v53 = vld [vmem:[#allocation41_spill] sm:$0xff] }
 0x768   :  { %6173 = vmatmul.mubr.bf16.vlgmr.msra.gmra.mxu0 %v10404_v16  ;;  %6214 = vmatmul.mubr.bf16.vlgmr.msra.gmra.mxu1 %v10404_v16  ;;  %v11302_v16 = vld [vmem:[#allocation29_spill] sm:$0xff] }
 0x769   :  { %6650 = vmatpush1.bf16.msra.mxu0 %v10400_v2  ;;  %6691 = vmatpush1.bf16.msra.mxu1 %v10402_v3  ;;  %v11300_v2 = vld [vmem:[#allocation40_spill] sm:$0xff] }
 0x76a   :  { %6651 = vmatprep.subr.bf16.mxu0 %v10406_v4  ;;  %6692 = vmatprep.subr.bf16.mxu1 %v10408_v31  ;;  %v11301_v3 = vld [vmem:[#allocation28_spill] sm:$0xff]  ;;  %v11303_v4 = vld [vmem:[#allocation43_spill] sm:$0xff] }
 0x76d   :  { %6652 = vmatpush1.bf16.msra.mxu0 %v10414_v51  ;;  %6693 = vmatpush1.bf16.msra.mxu1 %v10416_v20 }
 0x76e   :  { %6653 = vmatprep.subr.bf16.mxu0 %v10420_v60  ;;  %6694 = vmatprep.subr.bf16.mxu1 %v10422_v44  ;;  %v11305_v44 = vld [vmem:[#allocation33_spill] sm:$0xff] }
 0x771   :  { %6654 = vmatpush1.bf16.msra.mxu0 %v10426_v1  ;;  %6695 = vmatpush1.bf16.msra.mxu1 %v10428_v47 }
 0x772   :  { %6655 = vmatprep.subr.bf16.mxu0 %v10432_v63  ;;  %6696 = vmatprep.subr.bf16.mxu1 %v10434_v7 }
 0x775   :  { %6656 = vmatpush1.bf16.msra.mxu0 %v10438_v25  ;;  %6697 = vmatpush1.bf16.msra.mxu1 %v10440_v27  ;;  %v11306_v25 = vld [vmem:[#allocation47_spill] sm:$0xff] }
 0x776   :  { %6657 = vmatprep.subr.bf16.mxu0 %v10444_v24  ;;  %6698 = vmatprep.subr.bf16.mxu1 %v10446_v19 }
 0x779   :  { %6658 = vmatpush1.bf16.msra.mxu0 %v10450_v15  ;;  %6699 = vmatpush1.bf16.msra.mxu1 %v10452_v61  ;;  %v11307_v15 = vld [vmem:[#allocation46_spill] sm:$0xff] }
 0x77a   :  { %6659 = vmatprep.subr.bf16.mxu0 %v10456_v34  ;;  %6700 = vmatprep.subr.bf16.mxu1 %v10458_v58 }
 0x77d   :  { %6660 = vmatpush1.bf16.msra.mxu0 %v10462_v38  ;;  %6701 = vmatpush1.bf16.msra.mxu1 %v10464_v0 }
 0x77e   :  { %6661 = vmatprep.subr.bf16.mxu0 %v10468_v14  ;;  %6702 = vmatprep.subr.bf16.mxu1 %v10470_v54 }
 0x781   :  { %6662 = vmatpush1.bf16.msra.mxu0 %v10476_v29  ;;  %6703 = vmatpush1.bf16.msra.mxu1 %v10478_v40 }
 0x782   :  { %6663 = vmatprep.subr.bf16.mxu0 %v10482_v49  ;;  %6704 = vmatprep.subr.bf16.mxu1 %v10484_v48  ;;  %v11308_v48 = vld [vmem:[#allocation22_spill] sm:$0xff] }
 0x785   :  { %6664 = vmatpush1.bf16.msra.mxu0 %v10489_v32  ;;  %6705 = vmatpush1.bf16.msra.mxu1 %v10491_v26 }
 0x786   :  { %6665 = vmatprep.subr.bf16.mxu0 %v10495_v23  ;;  %6706 = vmatprep.subr.bf16.mxu1 %v10497_v5 }
 0x789   :  { %6666 = vmatpush2.bf16.msra.mxu0 %v10501_v46  ;;  %6707 = vmatpush2.bf16.msra.mxu1 %v10503_v21 }
 0x78a   :  { %6667 = vmatprep.subr.bf16.mxu0 %v10507_v18  ;;  %6708 = vmatprep.subr.bf16.mxu1 %v10509_v43  ;;  %v5798_v43 = vld [vmem:[#allocation9] sm:$0xf] }
 0x78d   :  { %6668 = vmatpush2.bf16.msra.mxu0 %v10514_v33  ;;  %6709 = vmatpush2.bf16.msra.mxu1 %v10516_v11  ;;  %v11309_v33 = vld [vmem:[#allocation20_spill] sm:$0xff] }
 0x78e   :  { %6669 = vmatprep.subr.bf16.mxu0 %v10520_v50  ;;  %6710 = vmatprep.subr.bf16.mxu1 %v10522_v36  ;;  %v5803_v11 = vrot.slane %v5798_v43, %v11309_v33  ;;  %v11310_v50 = vld [vmem:[#allocation21_spill] sm:$0xff] }
 0x78f   :  { %v5807_v36 = vrot.slane %v5798_v43, %v11310_v50 }
 0x791   :  { %6670 = vmatpush2.bf16.msra.mxu0 %v10526_v6  ;;  %6711 = vmatpush2.bf16.msra.mxu1 %v10528_v45 }
 0x792   :  { %6671 = vmatprep.subr.bf16.mxu0 %v10532_v37  ;;  %6712 = vmatprep.subr.bf16.mxu1 %v10534_v22 }
 0x795   :  { %6672 = vmatpush2.bf16.msra.mxu0 %v10538_v39  ;;  %6713 = vmatpush2.bf16.msra.mxu1 %v10540_v28 }
 0x796   :  { %6673 = vmatprep.subr.bf16.mxu0 %v11297_v10  ;;  %6714 = vmatprep.subr.bf16.mxu1 %v11298_v56  ;;  %v11312_v10 = vld [vmem:[#allocation34_spill] sm:$0xff] }
 0x797   :  { %v5811_v56 = vrot.slane %v5798_v43, %v11312_v10 }
 0x799   :  { %6674 = vmatpush2.bf16.msra.mxu0 %v10550_v17  ;;  %6715 = vmatpush2.bf16.msra.mxu1 %v10552_v42 }
 0x79a   :  { %6675 = vmatprep.subr.bf16.mxu0 %v10556_v13  ;;  %6716 = vmatprep.subr.bf16.mxu1 %v10558_v12  ;;  %v8436_v12 = vld [vmem:[%s10831_s6 + $0x74] ss:$8 sps:$4 sm:$0xff]   ;;  %v11304_v13 = vld [vmem:[#allocation32_spill] sm:$0xff] }
 0x79d   :  { %6676 = vmatpush2.bf16.msra.mxu0 %v10565_v59  ;;  %6717 = vmatpush2.bf16.msra.mxu1 %v11299_v53 }
 0x79e   :  { %6677 = vmatprep.subr.bf16.mxu0 %v11300_v2  ;;  %6718 = vmatprep.subr.bf16.mxu1 %v11301_v3 }
 0x7a1   :  { %6678 = vmatpush2.bf16.msra.mxu0 %v11302_v16  ;;  %6719 = vmatpush2.bf16.msra.mxu1 %v11303_v4 }
 0x7a2   :  { %6679 = vmatprep.subr.bf16.mxu0 %v10584_v57  ;;  %6720 = vmatprep.subr.bf16.mxu1 %v10586_v8 }
 0x7a5   :  { %6680 = vmatpush2.bf16.msra.mxu0 %v10590_v30  ;;  %6721 = vmatpush2.bf16.msra.mxu1 %v10592_v35  ;;  %v5815_v35 = vrot.slane %v5798_v43, %v11311_v55 }
 0x7a6   :  { %6876 = vmatprep.subr.bf16.mxu0 %v8436_v12 }
 0x7e2   :  { %v5663_v17 = vpop.f32.mrf.mxu0  ;;  %v5704_v42 = vpop.f32.mrf.mxu1 }
 0x7e3   :  { %v5711_v31 = vadd.f32 %v5663_v17, %v11304_v13  ;;  %v5713_v61 = vadd.f32 %v5704_v42, %v11307_v15  ;;  %v8437_v15 = vld [vmem:[%s10831_s6 + $0x60] ss:$8 sps:$4 sm:$0xff]  }
 0x7e4   :  { %v5665_v51 = vpop.f32.mrf.mxu0  ;;  %v5706_v20 = vpop.f32.mrf.mxu1 }
 0x7e5   :  { %v5715_v60 = vmul.f32 0.5, %v5711_v31  ;;  %v5712_v1 = vadd.f32 %v5665_v51, %v11305_v44  ;;  %v5714_v27 = vadd.f32 %v5706_v20, %v11306_v25  ;;  %v5717_v34 = vmul.f32 0.5, %v5713_v61  ;;  %v11313_v31 = vld [vmem:[#allocation27_spill] sm:$0xff] }
 0x7e6   :  { %v5667_v47 = vpop.f32.mrf.mxu0  ;;  %v5708_v63 = vpop.f32.mrf.mxu1  ;;  %v11314_v61 = vmov 0  }
 0x7e7   :  { %8588 = vtanh.f32 %v5715_v60  ;;  %v5716_v7 = vmul.f32 0.5, %v5712_v1 }
 0x7e8   :  { %v5668_v24 = vpop.f32.mrf.mxu0  ;;  %v5709_v19 = vpop.f32.mrf.mxu1 }
 0x7e9   :  { %8590 = vtanh.f32 %v5716_v7  ;;  %v8439_v19 = vld [vmem:[%s10831_s6 + $0x64] ss:$8 sps:$4 sm:$0xff]  }
 0x7ea   :  { %8592 = vtanh.f32 %v5714_v27  ;;  %v8434_v27 = vld [vmem:[%s10831_s6 + $0x70] ss:$8 sps:$4 sm:$0xff]  }
 0x7eb   :  { %8594 = vtanh.f32 %v5717_v34  ;;  %v8442_v34 = vld [vmem:[%s10831_s6 + $0x54] ss:$8 sps:$4 sm:$0xff]  }
 0x7f4   :  { %v8589_v58 = vpop.eup %8588 }
 0x7f5   :  { %v5721_v38 = vmul.f32 0.5, %v8589_v58  ;;  %v8440_v58 = vld [vmem:[%s10831_s6 + $0x50] ss:$8 sps:$4 sm:$0xff]  }
 0x7f6   :  { %v8591_v0 = vpop.eup %8590 }
 0x7f7   :  { %v5724_v14 = vadd.f32 0.5, %v5721_v38  ;;  %v5722_v54 = vmul.f32 0.5, %v8591_v0  ;;  %v8593_v29 = vpop.eup %8592  ;;  %v8445_v38 = vld [vmem:[%s10831_s6 + $0x44] ss:$8 sps:$4 sm:$0xff]   ;;  %v8443_v0 = vld [vmem:[%s10831_s6 + $0x40] ss:$8 sps:$4 sm:$0xff]  }
 0x7f8   :  { %v8595_v23 = vpop.eup %8594 }
 0x7f9   :  { %v5725_v40 = vadd.f32 0.5, %v5722_v54  ;;  %v5729_v49 = vmul.f32 %v8593_v29, %v5724_v14  ;;  %v5723_v5 = vmul.f32 0.5, %v8595_v23  ;;  %v8448_v14 = vld [vmem:[%s10831_s6 + $0x34] ss:$8 sps:$4 sm:$0xff]   ;;  %v8446_v54 = vld [vmem:[%s10831_s6 + $0x30] ss:$8 sps:$4 sm:$0xff]  }
 0x7fa   :  { %v8451_v29 = vld [vmem:[%s10831_s6 + $0x24] ss:$8 sps:$4 sm:$0xff]  }
 0x7fb   :  { %v5728_v32 = vmul.f32 %v5725_v40, %v11308_v48  ;;  %v5726_v46 = vadd.f32 0.5, %v5723_v5  ;;  %v8449_v40 = vld [vmem:[%s10831_s6 + $0x20] ss:$8 sps:$4 sm:$0xff]   ;;  %v8452_v48 = vld [vmem:[%s10831_s6 + $0x10] ss:$8 sps:$4 sm:$0xff]  }
 0x7fc   :  { %v11315_v23 = vld [vmem:[#allocation48_spill] sm:$0xff] }
 0x7fd   :  { %v5730_v26 = vadd.f32 %v5729_v49, %v5728_v32  ;;  %v8454_v49 = vld [vmem:[%s10831_s6 + $0x14] ss:$8 sps:$4 sm:$0xff]   ;;  %v8457_v32 = vld [vmem:[%s10831_s6 + $0x4] ss:$8 sps:$4 sm:$0xff]  }
 0x7fe   :  { %v11316_v5 = vld [vmem:[#allocation76_spill] sm:$0xff] }
 0x7ff   :  { %8596 = vtanh.f32 %v5730_v26  ;;  %6751 = vst [vmem:[#allocation13] sm:$0xff] %v5730_v26  ;;  %v8455_v26 = vld [vmem:[%s10831_s6] ss:$8 sps:$4 sm:$0xff]  }
 0x80c   :  { %v8597_v21 = vpop.eup %8596 }
 0x80d   :  { %v5732_v18 = vmul.f32 %v8597_v21, %v5726_v46  ;;  %v6764_v46 = vpack.c.bf16 %v11316_v5, %v11315_v23  ;;  %v11317_v21 = vld [vmem:[#allocation37_spill] sm:$0xff] }
 0x80f   :  { %6750 = vst [vmem:[#allocation12] sm:$0xff] %v5732_v18  ;;  %v6241_v24 = vpack.c.bf16 %v5732_v18, %v5732_v18  ;;  %v11318_v18 = vld [vmem:[#allocation72_spill] sm:$0xff] }
 0x810   :  { %v6765_v43 = vpack.c.bf16 %v11318_v18, %v11317_v21 }
 0x828   :  { %v6174_v6 = vpop.f32.mrf.mxu0  ;;  %v6215_v45 = vpop.f32.mrf.mxu1 }
 0x829   :  { %v6175_v37 = vadd.f32 %v6174_v6, %v5803_v11  ;;  %v6216_v53 = vadd.f32 %v6215_v45, %v5811_v56  ;;  %v11319_v11 = vld [vmem:[#allocation87_spill] sm:$0xff] }
 0x82a   :  { %v6176_v22 = vpop.f32.mrf.mxu0  ;;  %v6217_v39 = vpop.f32.mrf.mxu1  ;;  %v6307_v6 = vld [vmem:[#allocation9] sm:$0xf] }
 0x82b   :  { %v6222_v28 = vmul.f32 0.5, %v6175_v37  ;;  %v6177_v62 = vadd.f32 %v6176_v22, %v5807_v36  ;;  %v6218_v30 = vadd.f32 %v6217_v39, %v5815_v35  ;;  %v6224_v2 = vmul.f32 0.5, %v6216_v53 }
 0x82c   :  { %v6178_v59 = vpop.f32.mrf.mxu0  ;;  %v6219_v9 = vpop.f32.mrf.mxu1  ;;  %v6766_v36 = vpack.c.bf16 %v10600_v41, %v11319_v11  ;;  %v6312_v45 = vrot.slane %v6307_v6, %v11309_v33  ;;  %v6316_v37 = vrot.slane %v6307_v6, %v11310_v50 }
 0x82d   :  { %8598 = vtanh.f32 %v6222_v28  ;;  %v6223_v57 = vmul.f32 0.5, %v6177_v62 }
 0x82e   :  { %v6179_v8 = vpop.f32.mrf.mxu0  ;;  %v6220_v52 = vpop.f32.mrf.mxu1 }
 0x82f   :  { %8600 = vtanh.f32 %v6223_v57  ;;  %v6324_v57 = vrot.slane %v6307_v6, %v11311_v55 }
 0x830   :  { %8602 = vtanh.f32 %v6218_v30 }
 0x831   :  { %8604 = vtanh.f32 %v6224_v2  ;;  %v6320_v2 = vrot.slane %v6307_v6, %v11312_v10 }
 0x83a   :  { %v8599_v3 = vpop.eup %8598 }
 0x83b   :  { %v6228_v16 = vmul.f32 0.5, %v8599_v3 }
 0x83c   :  { %v8601_v4 = vpop.eup %8600 }
 0x83d   :  { %v6231_v12 = vadd.f32 0.5, %v6228_v16  ;;  %v6229_v17 = vmul.f32 0.5, %v8601_v4  ;;  %v8603_v13 = vpop.eup %8602 }
 0x83e   :  { %v8605_v44 = vpop.eup %8604 }
 0x83f   :  { %v6232_v42 = vadd.f32 0.5, %v6229_v17  ;;  %v6236_v20 = vmul.f32 %v8603_v13, %v6231_v12  ;;  %v6230_v1 = vmul.f32 0.5, %v8605_v44  ;;  %v6784_v44 = vld [vmem:[#allocation11] sm:$0x3] }
 0x840   :  { %v10749_v10 = vrot.slane %v6784_v44, %v11309_v33 }
 0x841   :  { %v6235_v51 = vmul.f32 %v6232_v42, %v11313_v31  ;;  %v6233_v47 = vadd.f32 0.5, %v6230_v1 }
 0x843   :  { %v10681_v60 = vadd.f32 %v6236_v20, %v6235_v51 }
 0x845   :  { %8606 = vtanh.f32 %v10681_v60 }
 0x852   :  { %v8607_v63 = vpop.eup %8606 }
 0x853   :  { %v10684_v7 = vmul.f32 %v8607_v63, %v6233_v47  ;;  %v10752_v47 = vrot.slane %v6784_v44, %v11310_v50 }
 0x855   :  { %v6242_v25 = vpack.c.bf16 %v10684_v7, %v10684_v7 }
 0x857   :  { %6681 = vmatprep.mubr.bf16.mxu0 %v6242_v25  ;;  %6722 = vmatprep.mubr.bf16.mxu1 %v6242_v25 }
 0x858   :  { %6682 = vmatmul.mubr.bf16.vlgmr.msra.gmra.mxu0 %v6241_v24  ;;  %6723 = vmatmul.mubr.bf16.vlgmr.msra.gmra.mxu1 %v6241_v24 }
 0x859   :  { %6877 = vmatpush1.bf16.msra.mxu0 %v8434_v27  ;;  %6908 = vmatprep.mubr.bf16.mxu0 %v11314_v61 }
 0x85a   :  { %6878 = vmatprep.subr.bf16.mxu0 %v8439_v19 }
 0x85d   :  { %6879 = vmatpush1.bf16.msra.mxu0 %v8437_v15 }
 0x85e   :  { %6880 = vmatprep.subr.bf16.mxu0 %v8442_v34 }
 0x861   :  { %6881 = vmatpush1.bf16.msra.mxu0 %v8440_v58 }
 0x862   :  { %6882 = vmatprep.subr.bf16.mxu0 %v8445_v38 }
 0x865   :  { %6883 = vmatpush1.bf16.msra.mxu0 %v8443_v0 }
 0x866   :  { %6884 = vmatprep.subr.bf16.mxu0 %v8448_v14 }
 0x869   :  { %6885 = vmatpush1.bf16.msra.mxu0 %v8446_v54 }
 0x86a   :  { %6886 = vmatprep.subr.bf16.mxu0 %v8451_v29 }
 0x86d   :  { %6887 = vmatpush1.bf16.msra.mxu0 %v8449_v40 }
 0x86e   :  { %6888 = vmatprep.subr.bf16.mxu0 %v8454_v49 }
 0x871   :  { %6889 = vmatpush1.bf16.msra.mxu0 %v8452_v48 }
 0x872   :  { %6890 = vmatprep.subr.bf16.mxu0 %v8457_v32 }
 0x875   :  { %6891 = vmatpush1.bf16.msra.mxu0 %v8455_v26 }
 0x878   :  { %6909 = vmatmul.mubr.bf16.vlgmr.msra.gmra.mxu0 %v6764_v46 }
 0x879   :  { %6918 = vmatprep.mubr.bf16.mxu0 %v11314_v61 }
 0x880   :  { %6919 = vmatmul.mubr.bf16.gmra.mxu0 %v6765_v43 }
 0x881   :  { %6928 = vmatprep.mubr.bf16.mxu0 %v11314_v61 }
 0x888   :  { %6929 = vmatmul.mubr.bf16.gmra.mxu0 %v6766_v36 }
 0x889   :  { %6938 = vmatprep.mubr.bf16.mxu0 %v11314_v61 }
 0x918   :  { %v6683_v22 = vpop.f32.mrf.mxu0  ;;  %v6724_v39 = vpop.f32.mrf.mxu1 }
 0x919   :  { %v6684_v28 = vadd.f32 %v6683_v22, %v6312_v45  ;;  %v6725_v3 = vadd.f32 %v6724_v39, %v6320_v2 }
 0x91a   :  { %v6685_v62 = vpop.f32.mrf.mxu0  ;;  %v6726_v35 = vpop.f32.mrf.mxu1 }
 0x91b   :  { %v6731_v59 = vmul.f32 0.5, %v6684_v28  ;;  %v6686_v9 = vadd.f32 %v6685_v62, %v6316_v37  ;;  %v6727_v53 = vadd.f32 %v6726_v35, %v6324_v57  ;;  %v6733_v16 = vmul.f32 0.5, %v6725_v3 }
 0x91c   :  { %v6687_v8 = vpop.f32.mrf.mxu0  ;;  %v6728_v52 = vpop.f32.mrf.mxu1 }
 0x91d   :  { %8608 = vtanh.f32 %v6731_v59  ;;  %v6732_v41 = vmul.f32 0.5, %v6686_v9 }
 0x91e   :  { %v6688_v30 = vpop.f32.mrf.mxu0  ;;  %v6729_v56 = vpop.f32.mrf.mxu1 }
 0x91f   :  { %8610 = vtanh.f32 %v6732_v41 }
 0x920   :  { %8612 = vtanh.f32 %v6727_v53 }
 0x921   :  { %8614 = vtanh.f32 %v6733_v16 }
 0x92a   :  { %v8609_v4 = vpop.eup %8608 }
 0x92b   :  { %v6737_v12 = vmul.f32 0.5, %v8609_v4 }
 0x92c   :  { %v8611_v17 = vpop.eup %8610 }
 0x92d   :  { %v6740_v42 = vadd.f32 0.5, %v6737_v12  ;;  %v6738_v13 = vmul.f32 0.5, %v8611_v17  ;;  %v8613_v31 = vpop.eup %8612 }
 0x92e   :  { %v8615_v27 = vpop.eup %8614 }
 0x92f   :  { %v6741_v55 = vadd.f32 0.5, %v6738_v13  ;;  %v6745_v20 = vmul.f32 %v8613_v31, %v6740_v42  ;;  %v6739_v15 = vmul.f32 0.5, %v8615_v27 }
 0x931   :  { %v6744_v51 = vmul.f32 %v6741_v55, %v10681_v60  ;;  %v6742_v58 = vadd.f32 0.5, %v6739_v15 }
 0x933   :  { %v6746_v1 = vadd.f32 %v6745_v20, %v6744_v51 }
 0x935   :  { %8616 = vtanh.f32 %v6746_v1  ;;  %6755 = vst [vmem:[#allocation13 + $0x8] sm:$0xff] %v6746_v1 }
 0x938   :  { %v6910_v63 = vpop.f32.mrf.mxu0 }
 0x939   :  { %v6911_v25 = vadd.f32 %v6910_v63, %v10749_v10 }
 0x93a   :  { %v6912_v24 = vpop.f32.mrf.mxu0 }
 0x93b   :  { %6949 = vst [vmem:[%s10835_s10] sm:$0xff] %v6911_v25  ;;  %v6913_v60 = vadd.f32 %v6912_v24, %v10752_v47 }
 0x93c   :  { %v6914_v19 = vpop.f32.mrf.mxu0 }
 0x93d   :  { %6950 = vst [vmem:[%s10835_s10 + $0x8] sm:$0xff] %v6913_v60  ;;  %v6915_v33 = vadd.f32 %v6914_v19, %v10749_v10 }
 0x93e   :  { %v6916_v50 = vpop.f32.mrf.mxu0 }
 0x93f   :  { %6951 = vst [vmem:[%s10835_s10 + $0x10] sm:$0xff] %v6915_v33  ;;  %v6917_v61 = vadd.f32 %v6916_v50, %v10752_v47 }
 0x940   :  { %v6920_v34 = vpop.f32.mrf.mxu0 }
 0x941   :  { %6952 = vst [vmem:[%s10835_s10 + $0x18] sm:$0xff] %v6917_v61  ;;  %v6921_v38 = vadd.f32 %v6920_v34, %v10749_v10 }
 0x942   :  { %v8617_v0 = vpop.eup %8616  ;;  %v6922_v14 = vpop.f32.mrf.mxu0 }
 0x943   :  { %6953 = vst [vmem:[%s10835_s10 + $0x20] sm:$0xff] %v6921_v38  ;;  %v6923_v54 = vadd.f32 %v6922_v14, %v10752_v47  ;;  %v6748_v29 = vmul.f32 %v8617_v0, %v6742_v58 }
 0x944   :  { %v6924_v40 = vpop.f32.mrf.mxu0 }
 0x945   :  { %6954 = vst [vmem:[%s10835_s10 + $0x28] sm:$0xff] %v6923_v54  ;;  %v6925_v49 = vadd.f32 %v6924_v40, %v10749_v10  ;;  %6753 = vst [vmem:[#allocation12 + $0x8] sm:$0xff] %v6748_v29  ;;  %v6767_v48 = vpack.c.bf16 %v6748_v29, %v10684_v7 }
 0x946   :  { %v6926_v32 = vpop.f32.mrf.mxu0 }
 0x947   :  { %6955 = vst [vmem:[%s10835_s10 + $0x30] sm:$0xff] %v6925_v49  ;;  %v6927_v26 = vadd.f32 %v6926_v32, %v10752_v47  ;;  %6939 = vmatmul.mubr.bf16.gmra.mxu0 %v6767_v48 }
 0x948   :  { %v6930_v23 = vpop.f32.mrf.mxu0 }
 0x949   :  { %6956 = vst [vmem:[%s10835_s10 + $0x38] sm:$0xff] %v6927_v26  ;;  %v6931_v5 = vadd.f32 %v6930_v23, %v10749_v10 }
 0x94a   :  { %v6932_v46 = vpop.f32.mrf.mxu0 }
 0x94b   :  { %6957 = vst [vmem:[%s10835_s10 + $0x40] sm:$0xff] %v6931_v5  ;;  %v6933_v7 = vadd.f32 %v6932_v46, %v10752_v47 }
 0x94c   :  { %v6934_v21 = vpop.f32.mrf.mxu0 }
 0x94d   :  { %6958 = vst [vmem:[%s10835_s10 + $0x48] sm:$0xff] %v6933_v7  ;;  %v6935_v18 = vadd.f32 %v6934_v21, %v10749_v10 }
 0x94e   :  { %v6936_v43 = vpop.f32.mrf.mxu0 }
 0x94f   :  { %6959 = vst [vmem:[%s10835_s10 + $0x50] sm:$0xff] %v6935_v18  ;;  %v6937_v11 = vadd.f32 %v6936_v43, %v10752_v47 }
 0x951   :  { %6960 = vst [vmem:[%s10835_s10 + $0x58] sm:$0xff] %v6937_v11 }
 0x952   :  { %8745 = shalt.err (!%p8742_p1)
}
 0x953   :  { %s8793_s17 = smov 128   ;;  %s8794_s6 = smov 8  }
 0x954   :  { %6978 = dma.vmem_to_hbm [thread:$0]  %s6973_s3, 256, %s10836_s11, [#allocation5], %s8793_s17, %s8793_s17, %s8794_s6  }
 0x955   :  { %s8795_s20 = smov [#allocation13]  }
 0x956   :  { %s6984_s5 = sshll.u32 %s8795_s20, 4  ;;  %s6985_s5 = int_to_ptr.vmem [resolvable:$true] %s6984_s5 }
 0x957   :  { %s8754_s21 = scalar_lea.vmem %s6985_s5, 256  ;;  %p8759_p3 = scmp.lt.s32.totalorder %s6985_s5, %s6985_s5 }
 0x958   :  { %p8755_p2 = scmp.ne.s32.totalorder %s6985_s5, %s8754_s21  ;;  %p8760_p4 = scmp.lt.s32.totalorder %s8754_s21, %s8754_s21 }
 0x95a   :  { %p8761_p5 = por %p8760_p4, %p8759_p3 }
 0x95c   :  { %p8762_p6 = pnand %p8761_p5, %p8755_p2 }
 0x95e   :  { %8765 = shalt.err (!%p8762_p6)
}
 0x95f   :  { %6990 = dma.vmem_to_hbm [thread:$0]  %s6985_s5, 256, %s10837_s12, [#allocation14], %s8793_s17, %s8793_s17, %s8794_s6  }
 0xa07   :  { %v6940_v36 = vpop.f32.mrf.mxu0 }
 0xa08   :  { %v6941_v6 = vadd.f32 %v6940_v36, %v10749_v10 }
 0xa09   :  { %v6942_v45 = vpop.f32.mrf.mxu0 }
 0xa0a   :  { %6961 = vst [vmem:[%s10835_s10 + $0x60] sm:$0xff] %v6941_v6  ;;  %v6943_v37 = vadd.f32 %v6942_v45, %v10752_v47 }
 0xa0b   :  { %v6944_v22 = vpop.f32.mrf.mxu0 }
 0xa0c   :  { %6962 = vst [vmem:[%s10835_s10 + $0x68] sm:$0xff] %v6943_v37  ;;  %v6945_v39 = vadd.f32 %v6944_v22, %v10749_v10 }
 0xa0d   :  { %v6946_v28 = vpop.f32.mrf.mxu0 }
 0xa0e   :  { %6963 = vst [vmem:[%s10835_s10 + $0x70] sm:$0xff] %v6945_v39  ;;  %v6947_v62 = vadd.f32 %v6946_v28, %v10752_v47 }
 0xa10   :  { %6964 = vst [vmem:[%s10835_s10 + $0x78] sm:$0xff] %v6947_v62 }
 0xa11   :  { %8780 = dma.done.wait [#allocation5], 256  }
 0xa12   :  { %8781 = vsyncadd [#allocation5], 4294967040 }
 0xa13   :  { %8782 = dma.done.wait [#allocation14], 256  }
 0xa14   :  { %8783 = vsyncadd [#allocation14], 4294967040 }
 0xa15   :  { %6999 = vsyncpa [#allocation4], 1 }
 0xa16   :  { %7000 = vsyncpa [#allocation7], 1 }
 0xa17   :  { %7001 = vsyncpa [#allocation10], 1 }
 0xa18   :  { %7002 = vsyncpa [#allocation5], 1 }
 0xa19   :  { %7003 = vsyncpa [#allocation14], 1 }

</bundles_post_ra>
